<compile_context>
chip_gen: v7x
topology: tpu7x:2x2x1
jax: 0.10.0
libtpu: 0.0.40
codegen_flags: <defaults>
</compile_context>

<pallas_src>
import jax
import jax.numpy as jnp
from jax.experimental import pallas as pl
from jax.experimental.pallas import tpu as pltpu

EPS = 1e-5
LANE = 128                                # TPU lane width
VMEM_LIMIT_BYTES = 48 * 1024 * 1024       # re-derive per generation; < 64 MiB for v7x


# --------------------------------------------------------------------------
# helpers
# --------------------------------------------------------------------------
def _round_up(n, m):
    return ((n + m - 1) // m) * m


def _pick_tile(m, target):
    """Largest divisor of m that is <= target and a multiple of 8 (else full m)."""
    for cand in range(min(target, m), 0, -1):
        if m % cand == 0 and cand % 8 == 0:
            return cand
    return m


def _write_partial_stats(h, ps_ref, pq_ref):
    """h: (rows, C) f32 conv output. Emit per-tile sum / sum-of-squares.

    Row 0 of the (1, 8, C) block carries the data; the other 7 rows are
    broadcast copies so the store stays (8, 128)-tile aligned / unmasked.
    """
    c = h.shape[-1]
    s = jnp.sum(h, axis=0, keepdims=True)            # (1, C) f32
    sq = jnp.sum(h * h, axis=0, keepdims=True)       # (1, C) f32
    ps_ref[...] = jnp.broadcast_to(s[:, None, :], (1, 8, c))
    pq_ref[...] = jnp.broadcast_to(sq[:, None, :], (1, 8, c))


def _finish_bn(psum, psumsq, count, gamma, beta):
    """Reduce per-tile partial stats (tiny arrays) -> per-channel scale/shift."""
    s = jnp.sum(psum[:, 0, :], axis=0)
    sq = jnp.sum(psumsq[:, 0, :], axis=0)
    mean = s / count
    var = jnp.maximum(sq / count - mean * mean, 0.0)   # biased variance (PyTorch train)
    scale = gamma * jax.lax.rsqrt(var + EPS)
    shift = beta - mean * scale
    return scale.reshape(1, -1), shift.reshape(1, -1)


# --------------------------------------------------------------------------
# kernels
# --------------------------------------------------------------------------
def _conv1x1_stats_kernel(x_ref, w_ref, h_ref, ps_ref, pq_ref):
    """Stage 1: conv1 (1x1) on a row-tile + partial BN stats."""
    x = x_ref[...].astype(jnp.bfloat16)                                 # (TM, Cp)
    h = jnp.dot(x, w_ref[...], preferred_element_type=jnp.float32)     # (TM, C4p) f32
    _write_partial_stats(h, ps_ref, pq_ref)
    h_ref[...] = h.astype(h_ref.dtype)


def _bn_relu_conv3x3_stats_kernel(h1_ref, s_ref, t_ref, w2_ref,
                                  h2_ref, ps_ref, pq_ref, pad_ref):
    """Stage 2 (one image per grid step): bn1-apply + ReLU + 3x3 conv + stats."""
    _, H, W, C = h1_ref.shape
    h1 = h1_ref[0].astype(jnp.float32)                                  # (H, W, C)
    a1 = jnp.maximum(h1 * s_ref[...] + t_ref[...], 0.0).astype(jnp.bfloat16)

    # 1-pixel zero halo: zero only the border (not the whole buffer), re-zeroed
    # every step so the grid axis can stay "parallel" (megacore-safe on v7x).
    zrow = jnp.zeros((1, W + 2, C), jnp.bfloat16)
    zcol = jnp.zeros((H + 2, 1, C), jnp.bfloat16)
    pad_ref[0:1, :, :] = zrow
    pad_ref[H + 1:H + 2, :, :] = zrow
    pad_ref[:, 0:1, :] = zcol
    pad_ref[:, W + 1:W + 2, :] = zcol
    pad_ref[1:H + 1, 1:W + 1, :] = a1

    # 3x3 conv as 3 wide-K matmuls (K = 3*C), one per kernel row dy; the three
    # dx taps are concatenated along the contraction dim (fused-K im2col).
    acc = None
    for dy in range(3):
        rows = pad_ref[dy:dy + H, :, :]                                 # (H, W+2, C)
        xk = jnp.concatenate(
            [rows[:, 0:W, :], rows[:, 1:W + 1, :], rows[:, 2:W + 2, :]],
            axis=-1).reshape(H * W, 3 * C)                              # (H*W, 3C) bf16
        part = jnp.dot(xk, w2_ref[dy], preferred_element_type=jnp.float32)
        acc = part if acc is None else acc + part                       # init from tap 0

    _write_partial_stats(acc, ps_ref, pq_ref)
    h2_ref[...] = acc.reshape(1, H, W, C).astype(h2_ref.dtype)


def _bn_relu_conv1x1_stats_kernel(h_ref, s_ref, t_ref, w_ref, o_ref, ps_ref, pq_ref):
    """Stage 3: bn2-apply + ReLU + conv3 (1x1) on a row-tile + partial BN stats."""
    h = h_ref[...].astype(jnp.float32)                                  # (TM, C4p)
    a = jnp.maximum(h * s_ref[...] + t_ref[...], 0.0).astype(jnp.bfloat16)
    o = jnp.dot(a, w_ref[...], preferred_element_type=jnp.float32)      # (TM, Cp) f32
    _write_partial_stats(o, ps_ref, pq_ref)
    o_ref[...] = o.astype(o_ref.dtype)


def _bn_residual_relu_kernel(h_ref, x_ref, s_ref, t_ref, o_ref):
    """Stage 4: bn3-apply + residual add + ReLU on a row-tile."""
    h = h_ref[...].astype(jnp.float32)
    x = x_ref[...].astype(jnp.float32)
    o_ref[...] = jnp.maximum(h * s_ref[...] + t_ref[...] + x, 0.0).astype(o_ref.dtype)


# --------------------------------------------------------------------------
# parameter preparation (lane-pad channels, bf16 weights, fused-K w2 layout)
# --------------------------------------------------------------------------
def _prepare_params(p, C, C4, Cp, C4p):
    w1 = jnp.zeros((Cp, C4p), jnp.float32).at[:C, :C4].set(p["w1"]).astype(jnp.bfloat16)
    w2 = (jnp.zeros((3, 3, C4p, C4p), jnp.float32).at[:, :, :C4, :C4].set(p["w2"])
          .reshape(3, 3 * C4p, C4p).astype(jnp.bfloat16))   # [dy, dx*C4p+cin, cout]
    w3 = jnp.zeros((C4p, Cp), jnp.float32).at[:C4, :C].set(p["w3"]).astype(jnp.bfloat16)

    def padvec(v, n):
        return jnp.zeros((n,), jnp.float32).at[:v.shape[0]].set(v.astype(jnp.float32))

    return dict(w1=w1, w2=w2, w3=w3,
                g1=padvec(p["g1"], C4p), b1=padvec(p["b1"], C4p),
                g2=padvec(p["g2"], C4p), b2=padvec(p["b2"], C4p),
                g3=padvec(p["g3"], Cp), b3=padvec(p["b3"], Cp))


# --------------------------------------------------------------------------
# forward pass (NHWC native)
# --------------------------------------------------------------------------
def identity_bottleneck_nhwc(x, params, *, tile_rows=256):
    N, H, W, C = x.shape
    C4 = C // 4
    Cp = _round_up(C, LANE)
    C4p = _round_up(C4, LANE)
    M = N * H * W
    TM = _pick_tile(M, tile_rows)
    T = M // TM
    count = float(M)

    p = _prepare_params(params, C, C4, Cp, C4p)

    xp = x if Cp == C else jnp.pad(x, ((0, 0), (0, 0), (0, 0), (0, Cp - C)))
    x_flat = xp.reshape(M, Cp).astype(jnp.float32)

    cparams = pltpu.CompilerParams(dimension_semantics=("parallel",),
                                   vmem_limit_bytes=VMEM_LIMIT_BYTES)

    # ---- stage 1: conv1 (1x1, C -> C/4) + partial BN1 stats -----------------
    h1_flat, ps1, pq1 = pl.pallas_call(
        _conv1x1_stats_kernel,
        grid=(T,),
        in_specs=[pl.BlockSpec((TM, Cp), lambda i: (i, 0)),
                  pl.BlockSpec((Cp, C4p), lambda i: (0, 0))],
        out_specs=[pl.BlockSpec((TM, C4p), lambda i: (i, 0)),
                   pl.BlockSpec((1, 8, C4p), lambda i: (i, 0, 0)),
                   pl.BlockSpec((1, 8, C4p), lambda i: (i, 0, 0))],
        out_shape=[jax.ShapeDtypeStruct((M, C4p), jnp.bfloat16),
                   jax.ShapeDtypeStruct((T, 8, C4p), jnp.float32),
                   jax.ShapeDtypeStruct((T, 8, C4p), jnp.float32)],
        compiler_params=cparams,
    )(x_flat, p["w1"])
    s1, t1 = _finish_bn(ps1, pq1, count, p["g1"], p["b1"])

    # ---- stage 2: bn1 + relu + conv2 (3x3, pad 1) + partial BN2 stats -------
    h1 = h1_flat.reshape(N, H, W, C4p)
    h2, ps2, pq2 = pl.pallas_call(
        _bn_relu_conv3x3_stats_kernel,
        grid=(N,),
        in_specs=[pl.BlockSpec((1, H, W, C4p), lambda n: (n, 0, 0, 0)),
                  pl.BlockSpec((1, C4p), lambda n: (0, 0)),
                  pl.BlockSpec((1, C4p), lambda n: (0, 0)),
                  pl.BlockSpec((3, 3 * C4p, C4p), lambda n: (0, 0, 0))],
        out_specs=[pl.BlockSpec((1, H, W, C4p), lambda n: (n, 0, 0, 0)),
                   pl.BlockSpec((1, 8, C4p), lambda n: (n, 0, 0)),
                   pl.BlockSpec((1, 8, C4p), lambda n: (n, 0, 0))],
        out_shape=[jax.ShapeDtypeStruct((N, H, W, C4p), jnp.bfloat16),
                   jax.ShapeDtypeStruct((N, 8, C4p), jnp.float32),
                   jax.ShapeDtypeStruct((N, 8, C4p), jnp.float32)],
        scratch_shapes=[pltpu.VMEM((H + 2, W + 2, C4p), jnp.bfloat16)],
        compiler_params=cparams,
    )(h1, s1, t1, p["w2"])
    s2, t2 = _finish_bn(ps2, pq2, count, p["g2"], p["b2"])

    # ---- stage 3: bn2 + relu + conv3 (1x1, C/4 -> C) + partial BN3 stats ----
    h2_flat = h2.reshape(M, C4p)
    h3_flat, ps3, pq3 = pl.pallas_call(
        _bn_relu_conv1x1_stats_kernel,
        grid=(T,),
        in_specs=[pl.BlockSpec((TM, C4p), lambda i: (i, 0)),
                  pl.BlockSpec((1, C4p), lambda i: (0, 0)),
                  pl.BlockSpec((1, C4p), lambda i: (0, 0)),
                  pl.BlockSpec((C4p, Cp), lambda i: (0, 0))],
        out_specs=[pl.BlockSpec((TM, Cp), lambda i: (i, 0)),
                   pl.BlockSpec((1, 8, Cp), lambda i: (i, 0, 0)),
                   pl.BlockSpec((1, 8, Cp), lambda i: (i, 0, 0))],
        out_shape=[jax.ShapeDtypeStruct((M, Cp), jnp.bfloat16),
                   jax.ShapeDtypeStruct((T, 8, Cp), jnp.float32),
                   jax.ShapeDtypeStruct((T, 8, Cp), jnp.float32)],
        compiler_params=cparams,
    )(h2_flat, s2, t2, p["w3"])
    s3, t3 = _finish_bn(ps3, pq3, count, p["g3"], p["b3"])

    # ---- stage 4: bn3 + residual add + relu ---------------------------------
    out_flat = pl.pallas_call(
        _bn_residual_relu_kernel,
        grid=(T,),
        in_specs=[pl.BlockSpec((TM, Cp), lambda i: (i, 0)),
                  pl.BlockSpec((TM, Cp), lambda i: (i, 0)),
                  pl.BlockSpec((1, Cp), lambda i: (0, 0)),
                  pl.BlockSpec((1, Cp), lambda i: (0, 0))],
        out_specs=pl.BlockSpec((TM, Cp), lambda i: (i, 0)),
        out_shape=jax.ShapeDtypeStruct((M, Cp), x.dtype),
        compiler_params=cparams,
    )(h3_flat, x_flat, s3, t3)

    out = out_flat.reshape(N, H, W, Cp)
    return out if Cp == C else out[..., :C]


def identity_bottleneck_nchw(x_nchw, params):
    # Compatibility shim for PyTorch-style NCHW tensors.  Production code should
    # keep the surrounding network in NHWC to avoid these two full-tensor
    # HBM transposes (per performance review).
    x = jnp.transpose(x_nchw, (0, 2, 3, 1))
    out = identity_bottleneck_nhwc(x, params)
    return jnp.transpose(out, (0, 3, 1, 2))


# --------------------------------------------------------------------------
# params / reference / test
# --------------------------------------------------------------------------
def init_params(key, C):
    C4 = C // 4
    k1, k2, k3 = jax.random.split(key, 3)
    # torch conv1.weight (C4, C, 1, 1)  -> w1: (C,  C4)
    # torch conv2.weight (C4, C4, 3, 3) -> w2: (3, 3, C4, C4)  [dy, dx, cin, cout]
    # torch conv3.weight (C,  C4, 1, 1) -> w3: (C4, C)
    w1 = jax.random.normal(k1, (C, C4), jnp.float32) * 0.1
    w2 = jax.random.normal(k2, (3, 3, C4, C4), jnp.float32) * 0.1
    w3 = jax.random.normal(k3, (C4, C), jnp.float32) * 0.1
    return dict(w1=w1, w2=w2, w3=w3,
                g1=jnp.ones((C4,), jnp.float32), b1=jnp.zeros((C4,), jnp.float32),
                g2=jnp.ones((C4,), jnp.float32), b2=jnp.zeros((C4,), jnp.float32),
                g3=jnp.ones((C,), jnp.float32), b3=jnp.zeros((C,), jnp.float32))


def reference_nhwc(x, p):
    """Pure-JAX reference mirroring the kernel's dtype flow (bf16 MXU, f32 BN)."""
    dn = ("NHWC", "HWIO", "NHWC")

    def conv(h, w):
        return jax.lax.conv_general_dilated(
            h.astype(jnp.bfloat16), w.astype(jnp.bfloat16), (1, 1), "SAME",
            dimension_numbers=dn, preferred_element_type=jnp.float32)

    def bn_scale_shift(h, g, b):
        m = h.reshape(-1, h.shape[-1])
        mean = jnp.mean(m, axis=0)
        var = jnp.maximum(jnp.mean(m * m, axis=0) - mean * mean, 0.0)
        scale = g * jax.lax.rsqrt(var + EPS)
        shift = b - mean * scale
        return scale, shift

    def bn_apply(h, scale, shift):
        return h.astype(jnp.bfloat16).astype(jnp.float32) * scale + shift

    h1 = conv(x, p["w1"].reshape(1, 1, *p["w1"].shape))
    s1, t1 = bn_scale_shift(h1, p["g1"], p["b1"])
    a1 = jnp.maximum(bn_apply(h1, s1, t1), 0.0)

    h2 = conv(a1, p["w2"])
    s2, t2 = bn_scale_shift(h2, p["g2"], p["b2"])
    a2 = jnp.maximum(bn_apply(h2, s2, t2), 0.0)

    h3 = conv(a2, p["w3"].reshape(1, 1, *p["w3"].shape))
    s3, t3 = bn_scale_shift(h3, p["g3"], p["b3"])
    return jnp.maximum(bn_apply(h3, s3, t3) + x, 0.0)


if __name__ == "__main__":
    key = jax.random.PRNGKey(0)
    kx, kp = jax.random.split(key)
    N, H, W, C = 2, 16, 16, 16            # NHWC; mid channels C/4 = 4
    x = jax.random.normal(kx, (N, H, W, C), jnp.float32)
    params = init_params(kp, C)

    fwd = jax.jit(identity_bottleneck_nhwc)
    out = fwd(x, params)
    jax.block_until_ready(out)

    ref = reference_nhwc(x, params)
    max_err = float(jnp.max(jnp.abs(out - ref)))
    assert max_err < 1e-2, f"mismatch vs reference, max abs err {max_err}"
    print("KERNEL_OK")
</pallas_src>

<mosaic_0001>
module attributes {stable_mosaic.version = 11 : i64} {
  func.func @_bn_relu_conv3x3_stats_kernel(%arg0: i32, %arg1: memref<1x16x16x128xbf16, #tpu.memory_space<vmem>>, %arg2: memref<1x128xf32, #tpu.memory_space<vmem>>, %arg3: memref<1x128xf32, #tpu.memory_space<vmem>>, %arg4: memref<3x384x128xbf16, #tpu.memory_space<vmem>>, %arg5: memref<1x16x16x128xbf16, #tpu.memory_space<vmem>>, %arg6: memref<1x8x128xf32, #tpu.memory_space<vmem>>, %arg7: memref<1x8x128xf32, #tpu.memory_space<vmem>>, %arg8: memref<18x18x128xbf16, #tpu.memory_space<vmem>>) attributes {dimension_semantics = [#tpu.dimension_semantics<parallel>], iteration_bounds = array<i64: 2>, scalar_prefetch = 0 : i64, scratch_operands = 1 : i64, tpu.core_type = #tpu.core_type<tc>, window_params = [{transform_indices = @transform_0, window_bounds = array<i64: 1, 16, 16, 128>}, {pipeline_mode = #tpu.pipeline_mode<synchronous>, transform_indices = @transform_1, window_bounds = array<i64: 1, 128>}, {pipeline_mode = #tpu.pipeline_mode<synchronous>, transform_indices = @transform_2, window_bounds = array<i64: 1, 128>}, {pipeline_mode = #tpu.pipeline_mode<synchronous>, transform_indices = @transform_3, window_bounds = array<i64: 3, 384, 128>}, {transform_indices = @transform_4, window_bounds = array<i64: 1, 16, 16, 128>}, {transform_indices = @transform_5, window_bounds = array<i64: 1, 8, 128>}, {transform_indices = @transform_6, window_bounds = array<i64: 1, 8, 128>}]} {
    %c0 = arith.constant 0 : index
    %c0_0 = arith.constant 0 : index
    %c0_1 = arith.constant 0 : index
    %c0_2 = arith.constant 0 : index
    %0 = vector.load %arg1[%c0, %c0_0, %c0_1, %c0_2] : memref<1x16x16x128xbf16, #tpu.memory_space<vmem>>, vector<1x16x16x128xbf16>
    %1 = vector.shape_cast %0 : vector<1x16x16x128xbf16> to vector<16x16x128xbf16>
    %2 = arith.extf %1 : vector<16x16x128xbf16> to vector<16x16x128xf32>
    %c0_3 = arith.constant 0 : index
    %c0_4 = arith.constant 0 : index
    %3 = vector.load %arg2[%c0_3, %c0_4] : memref<1x128xf32, #tpu.memory_space<vmem>>, vector<1x128xf32>
    %4 = vector.shape_cast %3 : vector<1x128xf32> to vector<1x1x128xf32>
    %5 = vector.broadcast %4 : vector<1x1x128xf32> to vector<16x16x128xf32>
    %6 = arith.mulf %2, %5 : vector<16x16x128xf32>
    %c0_5 = arith.constant 0 : index
    %c0_6 = arith.constant 0 : index
    %7 = vector.load %arg3[%c0_5, %c0_6] : memref<1x128xf32, #tpu.memory_space<vmem>>, vector<1x128xf32>
    %8 = vector.shape_cast %7 : vector<1x128xf32> to vector<1x1x128xf32>
    %9 = vector.broadcast %8 : vector<1x1x128xf32> to vector<16x16x128xf32>
    %10 = arith.addf %6, %9 : vector<16x16x128xf32>
    %cst = arith.constant 0.000000e+00 : f32
    %11 = vector.broadcast %cst : f32 to vector<16x16x128xf32>
    %12 = arith.maximumf %10, %11 : vector<16x16x128xf32>
    %13 = arith.truncf %12 : vector<16x16x128xf32> to vector<16x16x128xbf16>
    %cst_7 = arith.constant 0.000000e+00 : bf16
    %14 = vector.broadcast %cst_7 : bf16 to vector<1x18x128xbf16>
    %cst_8 = arith.constant 0.000000e+00 : bf16
    %15 = vector.broadcast %cst_8 : bf16 to vector<18x1x128xbf16>
    %c0_9 = arith.constant 0 : index
    %c0_10 = arith.constant 0 : index
    %c0_11 = arith.constant 0 : index
    %16 = vector.load %arg8[%c0_9, %c0_10, %c0_11] : memref<18x18x128xbf16, #tpu.memory_space<vmem>>, vector<1x18x128xbf16>
    tpu.vector_store %arg8[%c0_9, %c0_10, %c0_11], %14 {strides = array<i32>} : memref<18x18x128xbf16, #tpu.memory_space<vmem>>, vector<1x18x128xbf16>,
    %c17 = arith.constant 17 : index
    %c0_12 = arith.constant 0 : index
    %c0_13 = arith.constant 0 : index
    %17 = vector.load %arg8[%c17, %c0_12, %c0_13] : memref<18x18x128xbf16, #tpu.memory_space<vmem>>, vector<1x18x128xbf16>
    tpu.vector_store %arg8[%c17, %c0_12, %c0_13], %14 {strides = array<i32>} : memref<18x18x128xbf16, #tpu.memory_space<vmem>>, vector<1x18x128xbf16>,
    %c0_14 = arith.constant 0 : index
    %c0_15 = arith.constant 0 : index
    %c0_16 = arith.constant 0 : index
    %18 = vector.load %arg8[%c0_14, %c0_15, %c0_16] : memref<18x18x128xbf16, #tpu.memory_space<vmem>>, vector<18x1x128xbf16>
    tpu.vector_store %arg8[%c0_14, %c0_15, %c0_16], %15 {strides = array<i32>} : memref<18x18x128xbf16, #tpu.memory_space<vmem>>, vector<18x1x128xbf16>,
    %c0_17 = arith.constant 0 : index
    %c17_18 = arith.constant 17 : index
    %c0_19 = arith.constant 0 : index
    %19 = vector.load %arg8[%c0_17, %c17_18, %c0_19] : memref<18x18x128xbf16, #tpu.memory_space<vmem>>, vector<18x1x128xbf16>
    tpu.vector_store %arg8[%c0_17, %c17_18, %c0_19], %15 {strides = array<i32>} : memref<18x18x128xbf16, #tpu.memory_space<vmem>>, vector<18x1x128xbf16>,
    %c1 = arith.constant 1 : index
    %c1_20 = arith.constant 1 : index
    %c0_21 = arith.constant 0 : index
    %20 = vector.load %arg8[%c1, %c1_20, %c0_21] : memref<18x18x128xbf16, #tpu.memory_space<vmem>>, vector<16x16x128xbf16>
    tpu.vector_store %arg8[%c1, %c1_20, %c0_21], %13 {strides = array<i32>} : memref<18x18x128xbf16, #tpu.memory_space<vmem>>, vector<16x16x128xbf16>,
    %c0_22 = arith.constant 0 : index
    %c0_23 = arith.constant 0 : index
    %c0_24 = arith.constant 0 : index
    %21 = vector.load %arg8[%c0_22, %c0_23, %c0_24] : memref<18x18x128xbf16, #tpu.memory_space<vmem>>, vector<16x18x128xbf16>
    %22 = vector.extract_strided_slice %21 {offsets = [0, 0, 0], sizes = [16, 16, 128], strides = [1, 1, 1]} : vector<16x18x128xbf16> to vector<16x16x128xbf16>
    %23 = vector.extract_strided_slice %21 {offsets = [0, 1, 0], sizes = [16, 16, 128], strides = [1, 1, 1]} : vector<16x18x128xbf16> to vector<16x16x128xbf16>
    %24 = vector.extract_strided_slice %21 {offsets = [0, 2, 0], sizes = [16, 16, 128], strides = [1, 1, 1]} : vector<16x18x128xbf16> to vector<16x16x128xbf16>
    %25 = tpu.concatenate %22, %23, %24 in 2 : vector<16x16x128xbf16>, vector<16x16x128xbf16>, vector<16x16x128xbf16> -> vector<16x16x384xbf16>
    %26 = vector.shape_cast %25 : vector<16x16x384xbf16> to vector<256x384xbf16>
    %c0_25 = arith.constant 0 : index
    %c0_26 = arith.constant 0 : index
    %c0_27 = arith.constant 0 : index
    %27 = vector.load %arg4[%c0_25, %c0_26, %c0_27] : memref<3x384x128xbf16, #tpu.memory_space<vmem>>, vector<1x384x128xbf16>
    %28 = vector.shape_cast %27 : vector<1x384x128xbf16> to vector<384x128xbf16>
    %cst_28 = arith.constant dense<0.000000e+00> : vector<256x128xf32>
    %29 = tpu.matmul %26, %28, %cst_28 {dimension_numbers = #tpu.dot_dimension_numbers<[1], [0], [0], [1], [0, 0, 1, 1], [], []>} : vector<256x384xbf16>, vector<384x128xbf16>, vector<256x128xf32> -> vector<256x128xf32>
    %c1_29 = arith.constant 1 : index
    %c0_30 = arith.constant 0 : index
    %c0_31 = arith.constant 0 : index
    %30 = vector.load %arg8[%c1_29, %c0_30, %c0_31] : memref<18x18x128xbf16, #tpu.memory_space<vmem>>, vector<16x18x128xbf16>
    %31 = vector.extract_strided_slice %30 {offsets = [0, 0, 0], sizes = [16, 16, 128], strides = [1, 1, 1]} : vector<16x18x128xbf16> to vector<16x16x128xbf16>
    %32 = vector.extract_strided_slice %30 {offsets = [0, 1, 0], sizes = [16, 16, 128], strides = [1, 1, 1]} : vector<16x18x128xbf16> to vector<16x16x128xbf16>
    %33 = vector.extract_strided_slice %30 {offsets = [0, 2, 0], sizes = [16, 16, 128], strides = [1, 1, 1]} : vector<16x18x128xbf16> to vector<16x16x128xbf16>
    %34 = tpu.concatenate %31, %32, %33 in 2 : vector<16x16x128xbf16>, vector<16x16x128xbf16>, vector<16x16x128xbf16> -> vector<16x16x384xbf16>
    %35 = vector.shape_cast %34 : vector<16x16x384xbf16> to vector<256x384xbf16>
    %c1_32 = arith.constant 1 : index
    %c0_33 = arith.constant 0 : index
    %c0_34 = arith.constant 0 : index
    %36 = vector.load %arg4[%c1_32, %c0_33, %c0_34] : memref<3x384x128xbf16, #tpu.memory_space<vmem>>, vector<1x384x128xbf16>
    %37 = vector.shape_cast %36 : vector<1x384x128xbf16> to vector<384x128xbf16>
    %cst_35 = arith.constant dense<0.000000e+00> : vector<256x128xf32>
    %38 = tpu.matmul %35, %37, %cst_35 {dimension_numbers = #tpu.dot_dimension_numbers<[1], [0], [0], [1], [0, 0, 1, 1], [], []>} : vector<256x384xbf16>, vector<384x128xbf16>, vector<256x128xf32> -> vector<256x128xf32>
    %39 = arith.addf %29, %38 : vector<256x128xf32>
    %c2 = arith.constant 2 : index
    %c0_36 = arith.constant 0 : index
    %c0_37 = arith.constant 0 : index
    %40 = vector.load %arg8[%c2, %c0_36, %c0_37] : memref<18x18x128xbf16, #tpu.memory_space<vmem>>, vector<16x18x128xbf16>
    %41 = vector.extract_strided_slice %40 {offsets = [0, 0, 0], sizes = [16, 16, 128], strides = [1, 1, 1]} : vector<16x18x128xbf16> to vector<16x16x128xbf16>
    %42 = vector.extract_strided_slice %40 {offsets = [0, 1, 0], sizes = [16, 16, 128], strides = [1, 1, 1]} : vector<16x18x128xbf16> to vector<16x16x128xbf16>
    %43 = vector.extract_strided_slice %40 {offsets = [0, 2, 0], sizes = [16, 16, 128], strides = [1, 1, 1]} : vector<16x18x128xbf16> to vector<16x16x128xbf16>
    %44 = tpu.concatenate %41, %42, %43 in 2 : vector<16x16x128xbf16>, vector<16x16x128xbf16>, vector<16x16x128xbf16> -> vector<16x16x384xbf16>
    %45 = vector.shape_cast %44 : vector<16x16x384xbf16> to vector<256x384xbf16>
    %c2_38 = arith.constant 2 : index
    %c0_39 = arith.constant 0 : index
    %c0_40 = arith.constant 0 : index
    %46 = vector.load %arg4[%c2_38, %c0_39, %c0_40] : memref<3x384x128xbf16, #tpu.memory_space<vmem>>, vector<1x384x128xbf16>
    %47 = vector.shape_cast %46 : vector<1x384x128xbf16> to vector<384x128xbf16>
    %cst_41 = arith.constant dense<0.000000e+00> : vector<256x128xf32>
    %48 = tpu.matmul %45, %47, %cst_41 {dimension_numbers = #tpu.dot_dimension_numbers<[1], [0], [0], [1], [0, 0, 1, 1], [], []>} : vector<256x384xbf16>, vector<384x128xbf16>, vector<256x128xf32> -> vector<256x128xf32>
    %49 = arith.addf %39, %48 : vector<256x128xf32>
    %cst_42 = arith.constant dense<0.000000e+00> : vector<128xf32>
    %50 = vector.multi_reduction <add>, %49, %cst_42 [0] : vector<256x128xf32> to vector<128xf32>
    %51 = vector.shape_cast %50 : vector<128xf32> to vector<1x128xf32>
    %52 = arith.mulf %49, %49 : vector<256x128xf32>
    %cst_43 = arith.constant dense<0.000000e+00> : vector<128xf32>
    %53 = vector.multi_reduction <add>, %52, %cst_43 [0] : vector<256x128xf32> to vector<128xf32>
    %54 = vector.shape_cast %53 : vector<128xf32> to vector<1x128xf32>
    %55 = vector.shape_cast %51 : vector<1x128xf32> to vector<1x1x128xf32>
    %56 = vector.shape_cast %55 : vector<1x1x128xf32> to vector<1x1x128xf32>
    %57 = vector.broadcast %56 : vector<1x1x128xf32> to vector<1x8x128xf32>
    %c0_44 = arith.constant 0 : index
    %c0_45 = arith.constant 0 : index
    %c0_46 = arith.constant 0 : index
    %58 = vector.load %arg6[%c0_44, %c0_45, %c0_46] : memref<1x8x128xf32, #tpu.memory_space<vmem>>, vector<1x8x128xf32>
    tpu.vector_store %arg6[%c0_44, %c0_45, %c0_46], %57 {strides = array<i32>} : memref<1x8x128xf32, #tpu.memory_space<vmem>>, vector<1x8x128xf32>,
    %59 = vector.shape_cast %54 : vector<1x128xf32> to vector<1x1x128xf32>
    %60 = vector.shape_cast %59 : vector<1x1x128xf32> to vector<1x1x128xf32>
    %61 = vector.broadcast %60 : vector<1x1x128xf32> to vector<1x8x128xf32>
    %c0_47 = arith.constant 0 : index
    %c0_48 = arith.constant 0 : index
    %c0_49 = arith.constant 0 : index
    %62 = vector.load %arg7[%c0_47, %c0_48, %c0_49] : memref<1x8x128xf32, #tpu.memory_space<vmem>>, vector<1x8x128xf32>
    tpu.vector_store %arg7[%c0_47, %c0_48, %c0_49], %61 {strides = array<i32>} : memref<1x8x128xf32, #tpu.memory_space<vmem>>, vector<1x8x128xf32>,
    %63 = vector.shape_cast %49 : vector<256x128xf32> to vector<1x16x16x128xf32>
    %64 = arith.truncf %63 : vector<1x16x16x128xf32> to vector<1x16x16x128xbf16>
    %c0_50 = arith.constant 0 : index
    %c0_51 = arith.constant 0 : index
    %c0_52 = arith.constant 0 : index
    %c0_53 = arith.constant 0 : index
    %65 = vector.load %arg5[%c0_50, %c0_51, %c0_52, %c0_53] : memref<1x16x16x128xbf16, #tpu.memory_space<vmem>>, vector<1x16x16x128xbf16>
    tpu.vector_store %arg5[%c0_50, %c0_51, %c0_52, %c0_53], %64 {strides = array<i32>} : memref<1x16x16x128xbf16, #tpu.memory_space<vmem>>, vector<1x16x16x128xbf16>,
    return
  }
  func.func @transform_0(%arg0: i32) -> (i32, i32, i32, i32) {
    %c0_i32 = arith.constant 0 : i32
    %c0_i32_0 = arith.constant 0 : i32
    %c0_i32_1 = arith.constant 0 : i32
    %c0_i32_2 = arith.constant 0 : i32
    return %arg0, %c0_i32, %c0_i32_0, %c0_i32_1 : i32, i32, i32, i32
  }
  func.func @transform_1(%arg0: i32) -> (i32, i32) {
    %c0_i32 = arith.constant 0 : i32
    %c0_i32_0 = arith.constant 0 : i32
    %c0_i32_1 = arith.constant 0 : i32
    return %c0_i32, %c0_i32_0 : i32, i32
  }
  func.func @transform_2(%arg0: i32) -> (i32, i32) {
    %c0_i32 = arith.constant 0 : i32
    %c0_i32_0 = arith.constant 0 : i32
    %c0_i32_1 = arith.constant 0 : i32
    return %c0_i32, %c0_i32_0 : i32, i32
  }
  func.func @transform_3(%arg0: i32) -> (i32, i32, i32) {
    %c0_i32 = arith.constant 0 : i32
    %c0_i32_0 = arith.constant 0 : i32
    %c0_i32_1 = arith.constant 0 : i32
    %c0_i32_2 = arith.constant 0 : i32
    return %c0_i32, %c0_i32_0, %c0_i32_1 : i32, i32, i32
  }
  func.func @transform_4(%arg0: i32) -> (i32, i32, i32, i32) {
    %c0_i32 = arith.constant 0 : i32
    %c0_i32_0 = arith.constant 0 : i32
    %c0_i32_1 = arith.constant 0 : i32
    %c0_i32_2 = arith.constant 0 : i32
    return %arg0, %c0_i32, %c0_i32_0, %c0_i32_1 : i32, i32, i32, i32
  }
  func.func @transform_5(%arg0: i32) -> (i32, i32, i32) {
    %c0_i32 = arith.constant 0 : i32
    %c0_i32_0 = arith.constant 0 : i32
    %c0_i32_1 = arith.constant 0 : i32
    return %arg0, %c0_i32, %c0_i32_0 : i32, i32, i32
  }
  func.func @transform_6(%arg0: i32) -> (i32, i32, i32) {
    %c0_i32 = arith.constant 0 : i32
    %c0_i32_0 = arith.constant 0 : i32
    %c0_i32_1 = arith.constant 0 : i32
    return %arg0, %c0_i32, %c0_i32_0 : i32, i32, i32
  }
}

module attributes {stable_mosaic.version = 11 : i64} {
  func.func @_conv1x1_stats_kernel(%arg0: i32, %arg1: memref<256x128xf32, #tpu.memory_space<vmem>>, %arg2: memref<128x128xbf16, #tpu.memory_space<vmem>>, %arg3: memref<256x128xbf16, #tpu.memory_space<vmem>>, %arg4: memref<1x8x128xf32, #tpu.memory_space<vmem>>, %arg5: memref<1x8x128xf32, #tpu.memory_space<vmem>>) attributes {dimension_semantics = [#tpu.dimension_semantics<parallel>], iteration_bounds = array<i64: 2>, scalar_prefetch = 0 : i64, scratch_operands = 0 : i64, tpu.core_type = #tpu.core_type<tc>, window_params = [{transform_indices = @transform_0, window_bounds = array<i64: 256, 128>}, {pipeline_mode = #tpu.pipeline_mode<synchronous>, transform_indices = @transform_1, window_bounds = array<i64: 128, 128>}, {transform_indices = @transform_2, window_bounds = array<i64: 256, 128>}, {transform_indices = @transform_3, window_bounds = array<i64: 1, 8, 128>}, {transform_indices = @transform_4, window_bounds = array<i64: 1, 8, 128>}]} {
    %c0 = arith.constant 0 : index
    %c0_0 = arith.constant 0 : index
    %0 = vector.load %arg1[%c0, %c0_0] : memref<256x128xf32, #tpu.memory_space<vmem>>, vector<256x128xf32>
    %1 = arith.truncf %0 : vector<256x128xf32> to vector<256x128xbf16>
    %c0_1 = arith.constant 0 : index
    %c0_2 = arith.constant 0 : index
    %2 = vector.load %arg2[%c0_1, %c0_2] : memref<128x128xbf16, #tpu.memory_space<vmem>>, vector<128x128xbf16>
    %cst = arith.constant dense<0.000000e+00> : vector<256x128xf32>
    %3 = tpu.matmul %1, %2, %cst {dimension_numbers = #tpu.dot_dimension_numbers<[1], [0], [0], [1], [0, 0, 1, 1], [], []>} : vector<256x128xbf16>, vector<128x128xbf16>, vector<256x128xf32> -> vector<256x128xf32>
    %cst_3 = arith.constant dense<0.000000e+00> : vector<128xf32>
    %4 = vector.multi_reduction <add>, %3, %cst_3 [0] : vector<256x128xf32> to vector<128xf32>
    %5 = vector.shape_cast %4 : vector<128xf32> to vector<1x128xf32>
    %6 = arith.mulf %3, %3 : vector<256x128xf32>
    %cst_4 = arith.constant dense<0.000000e+00> : vector<128xf32>
    %7 = vector.multi_reduction <add>, %6, %cst_4 [0] : vector<256x128xf32> to vector<128xf32>
    %8 = vector.shape_cast %7 : vector<128xf32> to vector<1x128xf32>
    %9 = vector.shape_cast %5 : vector<1x128xf32> to vector<1x1x128xf32>
    %10 = vector.shape_cast %9 : vector<1x1x128xf32> to vector<1x1x128xf32>
    %11 = vector.broadcast %10 : vector<1x1x128xf32> to vector<1x8x128xf32>
    %c0_5 = arith.constant 0 : index
    %c0_6 = arith.constant 0 : index
    %c0_7 = arith.constant 0 : index
    %12 = vector.load %arg4[%c0_5, %c0_6, %c0_7] : memref<1x8x128xf32, #tpu.memory_space<vmem>>, vector<1x8x128xf32>
    tpu.vector_store %arg4[%c0_5, %c0_6, %c0_7], %11 {strides = array<i32>} : memref<1x8x128xf32, #tpu.memory_space<vmem>>, vector<1x8x128xf32>,
    %13 = vector.shape_cast %8 : vector<1x128xf32> to vector<1x1x128xf32>
    %14 = vector.shape_cast %13 : vector<1x1x128xf32> to vector<1x1x128xf32>
    %15 = vector.broadcast %14 : vector<1x1x128xf32> to vector<1x8x128xf32>
    %c0_8 = arith.constant 0 : index
    %c0_9 = arith.constant 0 : index
    %c0_10 = arith.constant 0 : index
    %16 = vector.load %arg5[%c0_8, %c0_9, %c0_10] : memref<1x8x128xf32, #tpu.memory_space<vmem>>, vector<1x8x128xf32>
    tpu.vector_store %arg5[%c0_8, %c0_9, %c0_10], %15 {strides = array<i32>} : memref<1x8x128xf32, #tpu.memory_space<vmem>>, vector<1x8x128xf32>,
    %17 = arith.truncf %3 : vector<256x128xf32> to vector<256x128xbf16>
    %c0_11 = arith.constant 0 : index
    %c0_12 = arith.constant 0 : index
    %18 = vector.load %arg3[%c0_11, %c0_12] : memref<256x128xbf16, #tpu.memory_space<vmem>>, vector<256x128xbf16>
    tpu.vector_store %arg3[%c0_11, %c0_12], %17 {strides = array<i32>} : memref<256x128xbf16, #tpu.memory_space<vmem>>, vector<256x128xbf16>,
    return
  }
  func.func @transform_0(%arg0: i32) -> (i32, i32) {
    %c0_i32 = arith.constant 0 : i32
    %c0_i32_0 = arith.constant 0 : i32
    return %arg0, %c0_i32 : i32, i32
  }
  func.func @transform_1(%arg0: i32) -> (i32, i32) {
    %c0_i32 = arith.constant 0 : i32
    %c0_i32_0 = arith.constant 0 : i32
    %c0_i32_1 = arith.constant 0 : i32
    return %c0_i32, %c0_i32_0 : i32, i32
  }
  func.func @transform_2(%arg0: i32) -> (i32, i32) {
    %c0_i32 = arith.constant 0 : i32
    %c0_i32_0 = arith.constant 0 : i32
    return %arg0, %c0_i32 : i32, i32
  }
  func.func @transform_3(%arg0: i32) -> (i32, i32, i32) {
    %c0_i32 = arith.constant 0 : i32
    %c0_i32_0 = arith.constant 0 : i32
    %c0_i32_1 = arith.constant 0 : i32
    return %arg0, %c0_i32, %c0_i32_0 : i32, i32, i32
  }
  func.func @transform_4(%arg0: i32) -> (i32, i32, i32) {
    %c0_i32 = arith.constant 0 : i32
    %c0_i32_0 = arith.constant 0 : i32
    %c0_i32_1 = arith.constant 0 : i32
    return %arg0, %c0_i32, %c0_i32_0 : i32, i32, i32
  }
}

module attributes {stable_mosaic.version = 11 : i64} {
  func.func @_bn_relu_conv1x1_stats_kernel(%arg0: i32, %arg1: memref<256x128xbf16, #tpu.memory_space<vmem>>, %arg2: memref<1x128xf32, #tpu.memory_space<vmem>>, %arg3: memref<1x128xf32, #tpu.memory_space<vmem>>, %arg4: memref<128x128xbf16, #tpu.memory_space<vmem>>, %arg5: memref<256x128xbf16, #tpu.memory_space<vmem>>, %arg6: memref<1x8x128xf32, #tpu.memory_space<vmem>>, %arg7: memref<1x8x128xf32, #tpu.memory_space<vmem>>) attributes {dimension_semantics = [#tpu.dimension_semantics<parallel>], iteration_bounds = array<i64: 2>, scalar_prefetch = 0 : i64, scratch_operands = 0 : i64, tpu.core_type = #tpu.core_type<tc>, window_params = [{transform_indices = @transform_0, window_bounds = array<i64: 256, 128>}, {pipeline_mode = #tpu.pipeline_mode<synchronous>, transform_indices = @transform_1, window_bounds = array<i64: 1, 128>}, {pipeline_mode = #tpu.pipeline_mode<synchronous>, transform_indices = @transform_2, window_bounds = array<i64: 1, 128>}, {pipeline_mode = #tpu.pipeline_mode<synchronous>, transform_indices = @transform_3, window_bounds = array<i64: 128, 128>}, {transform_indices = @transform_4, window_bounds = array<i64: 256, 128>}, {transform_indices = @transform_5, window_bounds = array<i64: 1, 8, 128>}, {transform_indices = @transform_6, window_bounds = array<i64: 1, 8, 128>}]} {
    %c0 = arith.constant 0 : index
    %c0_0 = arith.constant 0 : index
    %0 = vector.load %arg1[%c0, %c0_0] : memref<256x128xbf16, #tpu.memory_space<vmem>>, vector<256x128xbf16>
    %1 = arith.extf %0 : vector<256x128xbf16> to vector<256x128xf32>
    %c0_1 = arith.constant 0 : index
    %c0_2 = arith.constant 0 : index
    %2 = vector.load %arg2[%c0_1, %c0_2] : memref<1x128xf32, #tpu.memory_space<vmem>>, vector<1x128xf32>
    %3 = vector.broadcast %2 : vector<1x128xf32> to vector<256x128xf32>
    %4 = arith.mulf %1, %3 : vector<256x128xf32>
    %c0_3 = arith.constant 0 : index
    %c0_4 = arith.constant 0 : index
    %5 = vector.load %arg3[%c0_3, %c0_4] : memref<1x128xf32, #tpu.memory_space<vmem>>, vector<1x128xf32>
    %6 = vector.broadcast %5 : vector<1x128xf32> to vector<256x128xf32>
    %7 = arith.addf %4, %6 : vector<256x128xf32>
    %cst = arith.constant 0.000000e+00 : f32
    %8 = vector.broadcast %cst : f32 to vector<256x128xf32>
    %9 = arith.maximumf %7, %8 : vector<256x128xf32>
    %10 = arith.truncf %9 : vector<256x128xf32> to vector<256x128xbf16>
    %c0_5 = arith.constant 0 : index
    %c0_6 = arith.constant 0 : index
    %11 = vector.load %arg4[%c0_5, %c0_6] : memref<128x128xbf16, #tpu.memory_space<vmem>>, vector<128x128xbf16>
    %cst_7 = arith.constant dense<0.000000e+00> : vector<256x128xf32>
    %12 = tpu.matmul %10, %11, %cst_7 {dimension_numbers = #tpu.dot_dimension_numbers<[1], [0], [0], [1], [0, 0, 1, 1], [], []>} : vector<256x128xbf16>, vector<128x128xbf16>, vector<256x128xf32> -> vector<256x128xf32>
    %cst_8 = arith.constant dense<0.000000e+00> : vector<128xf32>
    %13 = vector.multi_reduction <add>, %12, %cst_8 [0] : vector<256x128xf32> to vector<128xf32>
    %14 = vector.shape_cast %13 : vector<128xf32> to vector<1x128xf32>
    %15 = arith.mulf %12, %12 : vector<256x128xf32>
    %cst_9 = arith.constant dense<0.000000e+00> : vector<128xf32>
    %16 = vector.multi_reduction <add>, %15, %cst_9 [0] : vector<256x128xf32> to vector<128xf32>
    %17 = vector.shape_cast %16 : vector<128xf32> to vector<1x128xf32>
    %18 = vector.shape_cast %14 : vector<1x128xf32> to vector<1x1x128xf32>
    %19 = vector.shape_cast %18 : vector<1x1x128xf32> to vector<1x1x128xf32>
    %20 = vector.broadcast %19 : vector<1x1x128xf32> to vector<1x8x128xf32>
    %c0_10 = arith.constant 0 : index
    %c0_11 = arith.constant 0 : index
    %c0_12 = arith.constant 0 : index
    %21 = vector.load %arg6[%c0_10, %c0_11, %c0_12] : memref<1x8x128xf32, #tpu.memory_space<vmem>>, vector<1x8x128xf32>
    tpu.vector_store %arg6[%c0_10, %c0_11, %c0_12], %20 {strides = array<i32>} : memref<1x8x128xf32, #tpu.memory_space<vmem>>, vector<1x8x128xf32>,
    %22 = vector.shape_cast %17 : vector<1x128xf32> to vector<1x1x128xf32>
    %23 = vector.shape_cast %22 : vector<1x1x128xf32> to vector<1x1x128xf32>
    %24 = vector.broadcast %23 : vector<1x1x128xf32> to vector<1x8x128xf32>
    %c0_13 = arith.constant 0 : index
    %c0_14 = arith.constant 0 : index
    %c0_15 = arith.constant 0 : index
    %25 = vector.load %arg7[%c0_13, %c0_14, %c0_15] : memref<1x8x128xf32, #tpu.memory_space<vmem>>, vector<1x8x128xf32>
    tpu.vector_store %arg7[%c0_13, %c0_14, %c0_15], %24 {strides = array<i32>} : memref<1x8x128xf32, #tpu.memory_space<vmem>>, vector<1x8x128xf32>,
    %26 = arith.truncf %12 : vector<256x128xf32> to vector<256x128xbf16>
    %c0_16 = arith.constant 0 : index
    %c0_17 = arith.constant 0 : index
    %27 = vector.load %arg5[%c0_16, %c0_17] : memref<256x128xbf16, #tpu.memory_space<vmem>>, vector<256x128xbf16>
    tpu.vector_store %arg5[%c0_16, %c0_17], %26 {strides = array<i32>} : memref<256x128xbf16, #tpu.memory_space<vmem>>, vector<256x128xbf16>,
    return
  }
  func.func @transform_0(%arg0: i32) -> (i32, i32) {
    %c0_i32 = arith.constant 0 : i32
    %c0_i32_0 = arith.constant 0 : i32
    return %arg0, %c0_i32 : i32, i32
  }
  func.func @transform_1(%arg0: i32) -> (i32, i32) {
    %c0_i32 = arith.constant 0 : i32
    %c0_i32_0 = arith.constant 0 : i32
    %c0_i32_1 = arith.constant 0 : i32
    return %c0_i32, %c0_i32_0 : i32, i32
  }
  func.func @transform_2(%arg0: i32) -> (i32, i32) {
    %c0_i32 = arith.constant 0 : i32
    %c0_i32_0 = arith.constant 0 : i32
    %c0_i32_1 = arith.constant 0 : i32
    return %c0_i32, %c0_i32_0 : i32, i32
  }
  func.func @transform_3(%arg0: i32) -> (i32, i32) {
    %c0_i32 = arith.constant 0 : i32
    %c0_i32_0 = arith.constant 0 : i32
    %c0_i32_1 = arith.constant 0 : i32
    return %c0_i32, %c0_i32_0 : i32, i32
  }
  func.func @transform_4(%arg0: i32) -> (i32, i32) {
    %c0_i32 = arith.constant 0 : i32
    %c0_i32_0 = arith.constant 0 : i32
    return %arg0, %c0_i32 : i32, i32
  }
  func.func @transform_5(%arg0: i32) -> (i32, i32, i32) {
    %c0_i32 = arith.constant 0 : i32
    %c0_i32_0 = arith.constant 0 : i32
    %c0_i32_1 = arith.constant 0 : i32
    return %arg0, %c0_i32, %c0_i32_0 : i32, i32, i32
  }
  func.func @transform_6(%arg0: i32) -> (i32, i32, i32) {
    %c0_i32 = arith.constant 0 : i32
    %c0_i32_0 = arith.constant 0 : i32
    %c0_i32_1 = arith.constant 0 : i32
    return %arg0, %c0_i32, %c0_i32_0 : i32, i32, i32
  }
}

module attributes {stable_mosaic.version = 11 : i64} {
  func.func @_bn_residual_relu_kernel(%arg0: i32, %arg1: memref<256x128xbf16, #tpu.memory_space<vmem>>, %arg2: memref<256x128xf32, #tpu.memory_space<vmem>>, %arg3: memref<1x128xf32, #tpu.memory_space<vmem>>, %arg4: memref<1x128xf32, #tpu.memory_space<vmem>>, %arg5: memref<256x128xf32, #tpu.memory_space<vmem>>) attributes {dimension_semantics = [#tpu.dimension_semantics<parallel>], iteration_bounds = array<i64: 2>, scalar_prefetch = 0 : i64, scratch_operands = 0 : i64, tpu.core_type = #tpu.core_type<tc>, window_params = [{transform_indices = @transform_0, window_bounds = array<i64: 256, 128>}, {transform_indices = @transform_1, window_bounds = array<i64: 256, 128>}, {pipeline_mode = #tpu.pipeline_mode<synchronous>, transform_indices = @transform_2, window_bounds = array<i64: 1, 128>}, {pipeline_mode = #tpu.pipeline_mode<synchronous>, transform_indices = @transform_3, window_bounds = array<i64: 1, 128>}, {transform_indices = @transform_4, window_bounds = array<i64: 256, 128>}]} {
    %c0 = arith.constant 0 : index
    %c0_0 = arith.constant 0 : index
    %0 = vector.load %arg1[%c0, %c0_0] : memref<256x128xbf16, #tpu.memory_space<vmem>>, vector<256x128xbf16>
    %1 = arith.extf %0 : vector<256x128xbf16> to vector<256x128xf32>
    %c0_1 = arith.constant 0 : index
    %c0_2 = arith.constant 0 : index
    %2 = vector.load %arg2[%c0_1, %c0_2] : memref<256x128xf32, #tpu.memory_space<vmem>>, vector<256x128xf32>
    %c0_3 = arith.constant 0 : index
    %c0_4 = arith.constant 0 : index
    %3 = vector.load %arg3[%c0_3, %c0_4] : memref<1x128xf32, #tpu.memory_space<vmem>>, vector<1x128xf32>
    %4 = vector.broadcast %3 : vector<1x128xf32> to vector<256x128xf32>
    %5 = arith.mulf %1, %4 : vector<256x128xf32>
    %c0_5 = arith.constant 0 : index
    %c0_6 = arith.constant 0 : index
    %6 = vector.load %arg4[%c0_5, %c0_6] : memref<1x128xf32, #tpu.memory_space<vmem>>, vector<1x128xf32>
    %7 = vector.broadcast %6 : vector<1x128xf32> to vector<256x128xf32>
    %8 = arith.addf %5, %7 : vector<256x128xf32>
    %9 = arith.addf %8, %2 : vector<256x128xf32>
    %cst = arith.constant 0.000000e+00 : f32
    %10 = vector.broadcast %cst : f32 to vector<256x128xf32>
    %11 = arith.maximumf %9, %10 : vector<256x128xf32>
    %c0_7 = arith.constant 0 : index
    %c0_8 = arith.constant 0 : index
    %12 = vector.load %arg5[%c0_7, %c0_8] : memref<256x128xf32, #tpu.memory_space<vmem>>, vector<256x128xf32>
    tpu.vector_store %arg5[%c0_7, %c0_8], %11 {strides = array<i32>} : memref<256x128xf32, #tpu.memory_space<vmem>>, vector<256x128xf32>,
    return
  }
  func.func @transform_0(%arg0: i32) -> (i32, i32) {
    %c0_i32 = arith.constant 0 : i32
    %c0_i32_0 = arith.constant 0 : i32
    return %arg0, %c0_i32 : i32, i32
  }
  func.func @transform_1(%arg0: i32) -> (i32, i32) {
    %c0_i32 = arith.constant 0 : i32
    %c0_i32_0 = arith.constant 0 : i32
    return %arg0, %c0_i32 : i32, i32
  }
  func.func @transform_2(%arg0: i32) -> (i32, i32) {
    %c0_i32 = arith.constant 0 : i32
    %c0_i32_0 = arith.constant 0 : i32
    %c0_i32_1 = arith.constant 0 : i32
    return %c0_i32, %c0_i32_0 : i32, i32
  }
  func.func @transform_3(%arg0: i32) -> (i32, i32) {
    %c0_i32 = arith.constant 0 : i32
    %c0_i32_0 = arith.constant 0 : i32
    %c0_i32_1 = arith.constant 0 : i32
    return %c0_i32, %c0_i32_0 : i32, i32
  }
  func.func @transform_4(%arg0: i32) -> (i32, i32) {
    %c0_i32 = arith.constant 0 : i32
    %c0_i32_0 = arith.constant 0 : i32
    return %arg0, %c0_i32 : i32, i32
  }
}

</mosaic_0001>

<bundles_post_ra>
// kernel: identity_bottleneck_nhwc.4
= control target key start
LH: loop header
LB: loop body
LE: loop exit
PB: predicated region body
PF: predicated region fallthrough
CT: control target
= control target key end

     0   :  { %s1199_s15 = smov 0   ;;  %s1391_s0 = inlined_call_operand.vmem [shape: f32[512,128], index: 0, kind: input, shape index: {}]   ;;  %s1392_s1 = inlined_call_operand.vmem [shape: bf16[128,128], index: 1, kind: input, shape index: {}]   ;;  %s1393_s2 = inlined_call_operand.vmem [shape: bf16[512,128], index: 2, kind: output, shape index: {0}]   ;;  %s1394_s3 = inlined_call_operand.vmem [shape: f32[2,8,128], index: 3, kind: output, shape index: {1}]   ;;  %s1395_s4 = inlined_call_operand.vmem [shape: f32[2,8,128], index: 4, kind: output, shape index: {2}]  }
   0x1 LB: > { %s1205_s16 = sadd.s32 4294967295, %s1172_s15   ;;  %p886_p0 = scmp.ge.s32.totalorder %s1172_s15, 1  ;;  %s1172_s15 = sphi %s1199_s15, %s15_s15  }
   0x2   : > { %p168_p1 = scmp.lt.s32.totalorder %s1172_s15, 3 }
   0x4   : > { %p169_p2 = pnand %p886_p0, %p168_p1 }
   0x5   : > { %v1158_v0 = vld [vmem:[%s1392_s1] sm:$0xff] (!%p169_p2)   ;;  %s887_s19 = sshll.u32 (!%p169_p2), %s1205_s16, 5  ;;  %v1159_v1 = vld [vmem:[%s1392_s1 + $0x8] sm:$0xff] (!%p169_p2)   ;;  %v1160_v2 = vld [vmem:[%s1392_s1 + $0x10] sm:$0xff] (!%p169_p2)   ;;  %p214_p4 = scmp.lt.s32.totalorder (!%p169_p2), %s1205_s16, 1 }
   0x6   : > { %172 = sbr.rel (%p169_p2) target bundleno = 330 (0x14a), region = 28  ;;  %p203_p3 = scmp.lt.s32.totalorder (!%p169_p2), %s887_s19, 63  ;;  %1086 = vmatprep.subr.bf16.mxu0 (!%p169_p2), %v1158_v0  ;;  %1134 = vmatprep.subr.bf16.mxu1 (!%p169_p2), %v1158_v0  ;;  %v1161_v3 = vld [vmem:[%s1392_s1 + $0x18] sm:$0xff] (!%p169_p2)   ;;  %v1162_v7 = vld [vmem:[%s1392_s1 + $0x20] sm:$0xff] (!%p169_p2)   ;;  %v1163_v11 = vld [vmem:[%s1392_s1 + $0x28] sm:$0xff] (!%p169_p2)  }
   0x7   : > { %1087 = vmatpush3.bf16.msra.mxu0 (!%p169_p2), %v1158_v0  ;;  %1142 = vmatpush3.bf16.msra.mxu1 (!%p169_p2), %v1158_v0  ;;  %v1164_v12 = vld [vmem:[%s1392_s1 + $0x30] sm:$0xff] (!%p169_p2)   ;;  %v1165_v13 = vld [vmem:[%s1392_s1 + $0x38] sm:$0xff] (!%p169_p2)  }
   0x8   : > { %1088 = vmatprep.subr.bf16.mxu0 (!%p169_p2), %v1159_v1  ;;  %1135 = vmatprep.subr.bf16.mxu1 (!%p169_p2), %v1159_v1 }
   0xb   : > { %1089 = vmatpush3.bf16.msra.mxu0 (!%p169_p2), %v1159_v1  ;;  %1143 = vmatpush3.bf16.msra.mxu1 (!%p169_p2), %v1159_v1 }
   0xc   : > { %1090 = vmatprep.subr.bf16.mxu0 (!%p169_p2), %v1160_v2  ;;  %1136 = vmatprep.subr.bf16.mxu1 (!%p169_p2), %v1160_v2 }
   0xd   : > { %s1397_s19 = smov (!%p203_p3, %s887_s19), 63  ;;  %s1399_s16 = smov (!%p214_p4, %s1205_s16), 1 }
   0xe   : > { %s888_s24 = sshll.u32 %s1397_s19, 3  ;;  %s890_s12 = sshll.u32 %s1397_s19, 2 }
   0xf   : > { %s1225_s27 = scalar_lea.vmem %s1391_s0, %s888_s24  ;;  %1091 = vmatpush3.bf16.msra.mxu0 %v1160_v2  ;;  %1144 = vmatpush3.bf16.msra.mxu1 %v1160_v2  ;;  %s1280_s17 = scalar_lea.vmem %s1393_s2, %s890_s12 }
  0x10   : > { %v223_v4 = vld [vmem:[%s1225_s27] sm:$0xff]  ;;  %v224_v5 = vld [vmem:[%s1225_s27 + $0x8] sm:$0xff]  ;;  %1092 = vmatprep.subr.bf16.mxu0 %v1161_v3  ;;  %1137 = vmatprep.subr.bf16.mxu1 %v1161_v3  ;;  %v225_v14 = vld [vmem:[%s1225_s27 + $0x10] sm:$0xff]  ;;  %s891_s18 = sshll.u32 %s1399_s16, 3 }
  0x11   : > { %v255_v6 = vpack.c.bf16 %v224_v5, %v223_v4  ;;  %v239_v8 = vld [vmem:[%s1225_s27 + $0x80] sm:$0xff]  ;;  %v240_v9 = vld [vmem:[%s1225_s27 + $0x88] sm:$0xff]  ;;  %v226_v15 = vld [vmem:[%s1225_s27 + $0x18] sm:$0xff]  ;;  %s217_s21 = scalar_lea.vmem %s1394_s3, %s891_s18  ;;  %s221_s24 = scalar_lea.vmem %s1395_s4, %s891_s18 }
  0x12   : > { %v263_v10 = vpack.c.bf16 %v240_v9, %v239_v8  ;;  %v227_v16 = vld [vmem:[%s1225_s27 + $0x20] sm:$0xff]  ;;  %v228_v17 = vld [vmem:[%s1225_s27 + $0x28] sm:$0xff]  ;;  %v241_v18 = vld [vmem:[%s1225_s27 + $0x90] sm:$0xff]  ;;  %v256_v22 = vpack.c.bf16 %v226_v15, %v225_v14 }
  0x13   : > { %1102 = vmatprep.mubr.bf16.mxu0 %v255_v6  ;;  %1093 = vmatpush3.bf16.msra.mxu0 %v1161_v3  ;;  %v242_v19 = vld [vmem:[%s1225_s27 + $0x98] sm:$0xff]  ;;  %v243_v20 = vld [vmem:[%s1225_s27 + $0xa0] sm:$0xff]  ;;  %v244_v21 = vld [vmem:[%s1225_s27 + $0xa8] sm:$0xff]  ;;  %v257_v23 = vpack.c.bf16 %v228_v17, %v227_v16 }
  0x14   : > { %1094 = vmatprep.subr.bf16.mxu0 %v1162_v7  ;;  %1145 = vmatpush3.bf16.msra.mxu1 %v1161_v3  ;;  %v264_v24 = vpack.c.bf16 %v242_v19, %v241_v18  ;;  %v265_v25 = vpack.c.bf16 %v244_v21, %v243_v20  ;;  %v229_v26 = vld [vmem:[%s1225_s27 + $0x30] sm:$0xff]  ;;  %v230_v27 = vld [vmem:[%s1225_s27 + $0x38] sm:$0xff]  ;;  %v231_v28 = vld [vmem:[%s1225_s27 + $0x40] sm:$0xff] }
  0x15   : > { %1138 = vmatprep.subr.bf16.mxu1 %v1162_v7  ;;  %1118 = vmatprep.mubr.bf16.mxu1 %v263_v10  ;;  %v232_v29 = vld [vmem:[%s1225_s27 + $0x48] sm:$0xff]  ;;  %v245_v30 = vld [vmem:[%s1225_s27 + $0xb0] sm:$0xff]  ;;  %v246_v31 = vld [vmem:[%s1225_s27 + $0xb8] sm:$0xff]  ;;  %v258_v34 = vpack.c.bf16 %v230_v27, %v229_v26 }
  0x16   : > { %v247_v32 = vld [vmem:[%s1225_s27 + $0xc0] sm:$0xff]  ;;  %v248_v33 = vld [vmem:[%s1225_s27 + $0xc8] sm:$0xff]  ;;  %v259_v35 = vpack.c.bf16 %v232_v29, %v231_v28  ;;  %v266_v36 = vpack.c.bf16 %v246_v31, %v245_v30  ;;  %v233_v38 = vld [vmem:[%s1225_s27 + $0x50] sm:$0xff] }
  0x17   : > { %1095 = vmatpush3.bf16.msra.mxu0 %v1162_v7  ;;  %v267_v37 = vpack.c.bf16 %v248_v33, %v247_v32  ;;  %v234_v39 = vld [vmem:[%s1225_s27 + $0x58] sm:$0xff]  ;;  %v235_v40 = vld [vmem:[%s1225_s27 + $0x60] sm:$0xff]  ;;  %v236_v41 = vld [vmem:[%s1225_s27 + $0x68] sm:$0xff] }
  0x18   : > { %1096 = vmatprep.subr.bf16.mxu0 %v1163_v11  ;;  %1146 = vmatpush3.bf16.msra.mxu1 %v1162_v7  ;;  %v249_v42 = vld [vmem:[%s1225_s27 + $0xd0] sm:$0xff]  ;;  %v250_v43 = vld [vmem:[%s1225_s27 + $0xd8] sm:$0xff]  ;;  %v251_v44 = vld [vmem:[%s1225_s27 + $0xe0] sm:$0xff]  ;;  %v260_v46 = vpack.c.bf16 %v234_v39, %v233_v38  ;;  %v261_v47 = vpack.c.bf16 %v236_v41, %v235_v40 }
  0x19   : > { %1139 = vmatprep.subr.bf16.mxu1 %v1163_v11  ;;  %v252_v45 = vld [vmem:[%s1225_s27 + $0xe8] sm:$0xff]  ;;  %v268_v48 = vpack.c.bf16 %v250_v43, %v249_v42  ;;  %v237_v50 = vld [vmem:[%s1225_s27 + $0x70] sm:$0xff]  ;;  %v238_v51 = vld [vmem:[%s1225_s27 + $0x78] sm:$0xff] }
  0x1a   : > { %v269_v49 = vpack.c.bf16 %v252_v45, %v251_v44  ;;  %v253_v52 = vld [vmem:[%s1225_s27 + $0xf0] sm:$0xff]  ;;  %v254_v53 = vld [vmem:[%s1225_s27 + $0xf8] sm:$0xff]  ;;  %v262_v54 = vpack.c.bf16 %v238_v51, %v237_v50 }
  0x1b   : > { %1097 = vmatpush3.bf16.msra.mxu0 %v1163_v11  ;;  %v270_v55 = vpack.c.bf16 %v254_v53, %v253_v52 }
  0x1c   : > { %1098 = vmatprep.subr.bf16.mxu0 %v1164_v12  ;;  %1147 = vmatpush3.bf16.msra.mxu1 %v1163_v11 }
  0x1d   : > { %1140 = vmatprep.subr.bf16.mxu1 %v1164_v12 }
  0x1f   : > { %1099 = vmatpush3.bf16.msra.mxu0 %v1164_v12 }
  0x20   : > { %1100 = vmatprep.subr.bf16.mxu0 %v1165_v13  ;;  %1148 = vmatpush3.bf16.msra.mxu1 %v1164_v12 }
  0x21   : > { %1141 = vmatprep.subr.bf16.mxu1 %v1165_v13 }
  0x23   : > { %1101 = vmatpush3.bf16.msra.mxu0 %v1165_v13 }
  0x24   : > { %1149 = vmatpush3.bf16.msra.mxu1 %v1165_v13 }
  0x26   : > { %1103 = vmatmul.mubr.bf16.vlgmr.msra.gmra.mrb[0].mxu0 %v256_v22 }
  0x27   : > { %1106 = vmatprep.mubr.bf16.mxu0 %v257_v23  ;;  %1119 = vmatmul.mubr.bf16.vlgmr.msra.gmra.mrb[0].mxu1 %v264_v24 }
  0x28   : > { %1122 = vmatprep.mubr.bf16.mxu1 %v265_v25 }
  0x2e   : > { %1107 = vmatmul.mubr.bf16.gmra.mrb[4].mxu0 %v258_v34 }
  0x2f   : > { %1110 = vmatprep.mubr.bf16.mxu0 %v259_v35  ;;  %1123 = vmatmul.mubr.bf16.gmra.mrb[4].mxu1 %v266_v36 }
  0x30   : > { %1126 = vmatprep.mubr.bf16.mxu1 %v267_v37 }
  0x36   : > { %1111 = vmatmul.mubr.bf16.gmra.mrb[8].mxu0 %v260_v46 }
  0x37   : > { %1114 = vmatprep.mubr.bf16.mxu0 %v261_v47  ;;  %1127 = vmatmul.mubr.bf16.gmra.mrb[8].mxu1 %v268_v48 }
  0x38   : > { %1130 = vmatprep.mubr.bf16.mxu1 %v269_v49 }
  0x3e   : > { %1115 = vmatmul.mubr.bf16.gmra.mrb[12].mxu0 %v262_v54 }
  0x3f   : > { %1131 = vmatmul.mubr.bf16.gmra.mrb[12].mxu1 %v270_v55 }
  0xf9   : > { %v1104_v56 = vpop.f32.mrb[0].mxu0 }
  0xfa   : > { %v369_v57 = vpop.f32.mrb[1].mxu0  ;;  %v1275_v58 = vpop.f32.mrb[0].mxu1  ;;  %v535_v7 = vmul.f32 %v1104_v56, %v1104_v56 }
  0xfb   : > { %v1105_v59 = vpop.f32.mrb[2].mxu0  ;;  %v1282_v60 = vpop.f32.mrb[1].mxu1  ;;  %v533_v0 = vmul.f32 %v369_v57, %v369_v57 }
  0xfc   : > { %v975_v61 = vpack.c.bf16 %v1105_v59, %v1104_v56  ;;  %v372_v62 = vpop.f32.mrb[3].mxu0  ;;  %v1284_v63 = vpop.f32.mrb[2].mxu1  ;;  %v536_v10 = vmul.f32 %v1105_v59, %v1105_v59 }
  0xfd   : > { %v496_v1 = vadd.f32 %v372_v62, %v369_v57  ;;  %v534_v2 = vmul.f32 %v372_v62, %v372_v62  ;;  %v970_v3 = vpack.c.bf16 %v372_v62, %v369_v57  ;;  %v1286_v4 = vpop.f32.mrb[3].mxu1  ;;  %v1015_v5 = vpack.c.bf16 %v1284_v63, %v1275_v58 }
  0xfe   : > { %1047 = vst [vmem:[%s1280_s17 + $0x8] sm:$0xff] %v975_v61   ;;  %v1010_v6 = vpack.c.bf16 %v1286_v4, %v1282_v60 }
  0xff   : > { %v497_v8 = vadd.f32 %v1104_v56, %v496_v1  ;;  %v565_v9 = vadd.f32 %v534_v2, %v533_v0  ;;  %971 = vst [vmem:[%s1280_s17] sm:$0xff] %v970_v3   ;;  %1055 = vst [vmem:[%s1280_s17 + $0x48] sm:$0xff] %v1015_v5  }
 0x100   : > { %1054 = vst [vmem:[%s1280_s17 + $0x40] sm:$0xff] %v1010_v6  }
 0x101   : > { %v566_v11 = vadd.f32 %v565_v9, %v535_v7  ;;  %v1108_v12 = vpop.f32.mrb[4].mxu0  ;;  %v498_v13 = vadd.f32 %v1105_v59, %v497_v8 }
 0x102   : > { %v385_v14 = vpop.f32.mrb[5].mxu0  ;;  %v1296_v15 = vpop.f32.mrb[4].mxu1  ;;  %v539_v31 = vmul.f32 %v1108_v12, %v1108_v12 }
 0x103   : > { %v499_v16 = vadd.f32 %v498_v13, %v385_v14  ;;  %v537_v17 = vmul.f32 %v385_v14, %v385_v14  ;;  %v567_v18 = vadd.f32 %v566_v11, %v536_v10  ;;  %v1109_v19 = vpop.f32.mrb[6].mxu0  ;;  %v1298_v20 = vpop.f32.mrb[5].mxu1 }
 0x104   : > { %v985_v21 = vpack.c.bf16 %v1109_v19, %v1108_v12  ;;  %v388_v22 = vpop.f32.mrb[7].mxu0  ;;  %v1300_v23 = vpop.f32.mrb[6].mxu1  ;;  %v540_v34 = vmul.f32 %v1109_v19, %v1109_v19 }
 0x105   : > { %v568_v24 = vadd.f32 %v567_v18, %v537_v17  ;;  %v500_v25 = vadd.f32 %v499_v16, %v388_v22  ;;  %v538_v26 = vmul.f32 %v388_v22, %v388_v22  ;;  %v980_v27 = vpack.c.bf16 %v388_v22, %v385_v14  ;;  %v1302_v28 = vpop.f32.mrb[7].mxu1 }
 0x106   : > { %1049 = vst [vmem:[%s1280_s17 + $0x18] sm:$0xff] %v985_v21   ;;  %v1025_v29 = vpack.c.bf16 %v1300_v23, %v1296_v15  ;;  %v1020_v30 = vpack.c.bf16 %v1302_v28, %v1298_v20 }
 0x107   : > { %v501_v32 = vadd.f32 %v1108_v12, %v500_v25  ;;  %v569_v33 = vadd.f32 %v568_v24, %v538_v26  ;;  %1048 = vst [vmem:[%s1280_s17 + $0x10] sm:$0xff] %v980_v27  }
 0x108   : > { %1057 = vst [vmem:[%s1280_s17 + $0x58] sm:$0xff] %v1025_v29   ;;  %1056 = vst [vmem:[%s1280_s17 + $0x50] sm:$0xff] %v1020_v30   ;;  %v549_v29 = vmul.f32 %v1282_v60, %v1282_v60 }
 0x109   : > { %v570_v35 = vadd.f32 %v569_v33, %v539_v31  ;;  %v1112_v36 = vpop.f32.mrb[8].mxu0  ;;  %v502_v37 = vadd.f32 %v1109_v19, %v501_v32 }
 0x10a   : > { %v401_v38 = vpop.f32.mrb[9].mxu0  ;;  %v1312_v39 = vpop.f32.mrb[8].mxu1  ;;  %v543_v55 = vmul.f32 %v1112_v36, %v1112_v36 }
 0x10b   : > { %v503_v40 = vadd.f32 %v502_v37, %v401_v38  ;;  %v541_v41 = vmul.f32 %v401_v38, %v401_v38  ;;  %v571_v42 = vadd.f32 %v570_v35, %v540_v34  ;;  %v1113_v43 = vpop.f32.mrb[10].mxu0  ;;  %v1314_v44 = vpop.f32.mrb[9].mxu1  ;;  %v550_v34 = vmul.f32 %v1286_v4, %v1286_v4 }
 0x10c   : > { %v995_v45 = vpack.c.bf16 %v1113_v43, %v1112_v36  ;;  %v404_v46 = vpop.f32.mrb[11].mxu0  ;;  %v1316_v47 = vpop.f32.mrb[10].mxu1  ;;  %v544_v59 = vmul.f32 %v1113_v43, %v1113_v43  ;;  %v551_v35 = vmul.f32 %v1275_v58, %v1275_v58 }
 0x10d   : > { %v572_v48 = vadd.f32 %v571_v42, %v541_v41  ;;  %v504_v49 = vadd.f32 %v503_v40, %v404_v46  ;;  %v542_v50 = vmul.f32 %v404_v46, %v404_v46  ;;  %v990_v51 = vpack.c.bf16 %v404_v46, %v401_v38  ;;  %v1318_v52 = vpop.f32.mrb[11].mxu1 }
 0x10e   : > { %1051 = vst [vmem:[%s1280_s17 + $0x28] sm:$0xff] %v995_v45   ;;  %v1035_v53 = vpack.c.bf16 %v1316_v47, %v1312_v39  ;;  %v1030_v54 = vpack.c.bf16 %v1318_v52, %v1314_v44  ;;  %v552_v38 = vmul.f32 %v1284_v63, %v1284_v63  ;;  %v554_v46 = vmul.f32 %v1302_v28, %v1302_v28 }
 0x10f   : > { %v505_v56 = vadd.f32 %v1112_v36, %v504_v49  ;;  %v573_v57 = vadd.f32 %v572_v48, %v542_v50  ;;  %1050 = vst [vmem:[%s1280_s17 + $0x20] sm:$0xff] %v990_v51  }
 0x110   : > { %1059 = vst [vmem:[%s1280_s17 + $0x68] sm:$0xff] %v1035_v53   ;;  %1058 = vst [vmem:[%s1280_s17 + $0x60] sm:$0xff] %v1030_v54  }
 0x111   : > { %v574_v61 = vadd.f32 %v573_v57, %v543_v55  ;;  %v1116_v62 = vpop.f32.mrb[12].mxu0  ;;  %v506_v0 = vadd.f32 %v1113_v43, %v505_v56  ;;  %v558_v56 = vmul.f32 %v1318_v52, %v1318_v52 }
 0x112   : > { %v417_v1 = vpop.f32.mrb[13].mxu0  ;;  %v1328_v2 = vpop.f32.mrb[12].mxu1  ;;  %v547_v21 = vmul.f32 %v1116_v62, %v1116_v62 }
 0x113   : > { %v507_v3 = vadd.f32 %v506_v0, %v417_v1  ;;  %v545_v5 = vmul.f32 %v417_v1, %v417_v1  ;;  %v575_v6 = vadd.f32 %v574_v61, %v544_v59  ;;  %v1117_v7 = vpop.f32.mrb[14].mxu0  ;;  %v481_v8 = vpop.f32.mrb[13].mxu1 }
 0x114   : > { %v1005_v9 = vpack.c.bf16 %v1117_v7, %v1116_v62  ;;  %v420_v10 = vpop.f32.mrb[15].mxu0  ;;  %v1330_v11 = vpop.f32.mrb[14].mxu1  ;;  %v548_v25 = vmul.f32 %v1117_v7, %v1117_v7 }
 0x115   : > { %v576_v12 = vadd.f32 %v575_v6, %v545_v5  ;;  %v508_v13 = vadd.f32 %v507_v3, %v420_v10  ;;  %v546_v14 = vmul.f32 %v420_v10, %v420_v10  ;;  %v1000_v16 = vpack.c.bf16 %v420_v10, %v417_v1  ;;  %v484_v17 = vpop.f32.mrb[15].mxu1 }
 0x116   : > { %1053 = vst [vmem:[%s1280_s17 + $0x38] sm:$0xff] %v1005_v9   ;;  %v1045_v18 = vpack.c.bf16 %v1330_v11, %v1328_v2  ;;  %v1040_v19 = vpack.c.bf16 %v484_v17, %v481_v8  ;;  %v563_v6 = vmul.f32 %v1328_v2, %v1328_v2  ;;  %v564_v9 = vmul.f32 %v1330_v11, %v1330_v11 }
 0x117   : > { %v509_v22 = vadd.f32 %v1116_v62, %v508_v13  ;;  %v577_v24 = vadd.f32 %v576_v12, %v546_v14  ;;  %1052 = vst [vmem:[%s1280_s17 + $0x30] sm:$0xff] %v1000_v16   ;;  %v561_v62 = vmul.f32 %v481_v8, %v481_v8 }
 0x118   : > { %1061 = vst [vmem:[%s1280_s17 + $0x78] sm:$0xff] %v1045_v18   ;;  %1060 = vst [vmem:[%s1280_s17 + $0x70] sm:$0xff] %v1040_v19  }
 0x119   : > { %v578_v26 = vadd.f32 %v577_v24, %v547_v21  ;;  %v510_v27 = vadd.f32 %v1117_v7, %v509_v22 }
 0x11b   : > { %v511_v30 = vadd.f32 %v510_v27, %v1282_v60  ;;  %v579_v31 = vadd.f32 %v578_v26, %v548_v25  ;;  %v553_v60 = vmul.f32 %v1298_v20, %v1298_v20 }
 0x11d   : > { %v580_v32 = vadd.f32 %v579_v31, %v549_v29  ;;  %v512_v33 = vadd.f32 %v511_v30, %v1286_v4 }
 0x11f   : > { %v513_v36 = vadd.f32 %v1275_v58, %v512_v33  ;;  %v581_v37 = vadd.f32 %v580_v32, %v550_v34  ;;  %v555_v58 = vmul.f32 %v1296_v15, %v1296_v15 }
 0x121   : > { %v582_v40 = vadd.f32 %v581_v37, %v551_v35  ;;  %v514_v41 = vadd.f32 %v1284_v63, %v513_v36  ;;  %v556_v63 = vmul.f32 %v1300_v23, %v1300_v23 }
 0x123   : > { %v515_v42 = vadd.f32 %v514_v41, %v1298_v20  ;;  %v583_v43 = vadd.f32 %v582_v40, %v552_v38  ;;  %v557_v20 = vmul.f32 %v1314_v44, %v1314_v44 }
 0x125   : > { %v584_v45 = vadd.f32 %v583_v43, %v553_v60  ;;  %v516_v4 = vadd.f32 %v515_v42, %v1302_v28 }
 0x127   : > { %v517_v48 = vadd.f32 %v1296_v15, %v516_v4  ;;  %v585_v49 = vadd.f32 %v584_v45, %v554_v46  ;;  %v559_v15 = vmul.f32 %v1312_v39, %v1312_v39 }
 0x129   : > { %v586_v50 = vadd.f32 %v585_v49, %v555_v58  ;;  %v518_v51 = vadd.f32 %v1300_v23, %v517_v48  ;;  %v560_v23 = vmul.f32 %v1316_v47, %v1316_v47 }
 0x12b   : > { %v519_v53 = vadd.f32 %v518_v51, %v1314_v44  ;;  %v587_v54 = vadd.f32 %v586_v50, %v556_v63 }
 0x12d   : > { %v588_v55 = vadd.f32 %v587_v54, %v557_v20  ;;  %v520_v28 = vadd.f32 %v519_v53, %v1318_v52  ;;  %v562_v52 = vmul.f32 %v484_v17, %v484_v17 }
 0x12f   : > { %v521_v57 = vadd.f32 %v1312_v39, %v520_v28  ;;  %v589_v59 = vadd.f32 %v588_v55, %v558_v56 }
 0x131   : > { %v590_v61 = vadd.f32 %v589_v59, %v559_v15  ;;  %v522_v44 = vadd.f32 %v1316_v47, %v521_v57 }
 0x133   : > { %v523_v0 = vadd.f32 %v522_v44, %v481_v8  ;;  %v591_v1 = vadd.f32 %v590_v61, %v560_v23 }
 0x135   : > { %v592_v3 = vadd.f32 %v591_v1, %v561_v62  ;;  %v524_v5 = vadd.f32 %v523_v0, %v484_v17 }
 0x137   : > { %v525_v7 = vadd.f32 %v1328_v2, %v524_v5  ;;  %v593_v39 = vadd.f32 %v592_v3, %v562_v52 }
 0x139   : > { %v526_v10 = vadd.f32 %v1330_v11, %v525_v7  ;;  %v594_v47 = vadd.f32 %v593_v39, %v563_v6 }
 0x13b   : > { %v527_v12 = vrot.slane %v526_v10, 4  ;;  %v595_v13 = vadd.f32 %v594_v47, %v564_v9 }
 0x13d   : > { %v528_v8 = vadd.f32 %v527_v12, %v526_v10  ;;  %v596_v14 = vrot.slane %v595_v13, 4 }
 0x13f   : > { %v529_v16 = vrot.slane %v528_v8, 2  ;;  %v597_v17 = vadd.f32 %v596_v14, %v595_v13 }
 0x141   : > { %v530_v18 = vadd.f32 %v529_v16, %v528_v8  ;;  %v598_v19 = vrot.slane %v597_v17, 2 }
 0x143   : > { %v531_v21 = vrot.slane %v530_v18, 1  ;;  %v599_v2 = vadd.f32 %v598_v19, %v597_v17 }
 0x145   : > { %v532_v22 = vadd.f32 %v531_v21, %v530_v18  ;;  %v600_v24 = vrot.slane %v599_v2, 1 }
 0x147   : > { %v601_v11 = vadd.f32 %v600_v24, %v599_v2  ;;  %602 = vst [vmem:[%s217_s21] sm:$0xff] %v532_v22 }
 0x149   : > { %603 = vst [vmem:[%s221_s24] sm:$0xff] %v601_v11 }
 0x14a PF: > { %s15_s15 = sadd.s32 1, %s1172_s15  }
 0x14b   : > { %p12_p5 = scmp.ge.s32.totalorder %s15_s15, 4  }
 0x14d   :  { %14 = sbr.rel (!%p12_p5) target bundleno = 1 (0x1), region = 82 }

// kernel: identity_bottleneck_nhwc.7
= control target key start
LH: loop header
LB: loop body
LE: loop exit
PB: predicated region body
PF: predicated region fallthrough
CT: control target
= control target key end

     0   :  { %9 = vsyncpa [#allocation3], 0  ;;  %s1081_s0 = inlined_call_operand.vmem [shape: bf16[512,128], index: 0, kind: input, shape index: {}]   ;;  %s1082_s1 = inlined_call_operand.vmem [shape: f32[512,128], index: 1, kind: input, shape index: {}]   ;;  %s1083_s2 = inlined_call_operand.vmem [shape: f32[1,128], index: 2, kind: input, shape index: {}]   ;;  %s1084_s3 = inlined_call_operand.vmem [shape: f32[1,128], index: 3, kind: input, shape index: {}]   ;;  %s1085_s4 = inlined_call_operand.hbm [shape: f32[512,128], index: 4, kind: output, shape index: {}]  }
   0x1   :  { %11 = vsyncpa [#allocation3 + $0x1], 0  ;;  %s808_s15 = smov 0   ;;  %s810_s16 = smov 0  }
   0x2   :  { %s812_s17 = smov 0   ;;  %s814_s18 = smov 0  }
   0x3 LB: > { %s829_s19 = sadd.s32 4294967295, %s778_s18   ;;  %s579_s20 = sadd.s32 4294967294, %s778_s18   ;;  %s778_s18 = sphi %s814_s18, %s1091_s18   ;;  %s774_s17 = sphi %s812_s17, %s1090_s17   ;;  %s770_s16 = sphi %s810_s16, %s1089_s16   ;;  %s766_s15 = sphi %s808_s15, %s1088_s15  }
   0x4   : > { %s833_s21 = sadd.s32 1, %s778_s18   ;;  %s118_s22 = sadd.s32 1, %s774_s17 }
   0x5   : > { %s115_s23 = ssub.s32 %s778_s18, %s833_s21  ;;  %p128_p0 = scmp.ne.s32.totalorder %s774_s17, %s770_s16 }
   0x6   : > { %p116_p1 = scmp.eq.s32.totalorder %s115_s23, 0  ;;  %p129_p2 = scmp.eq.s32.totalorder %s829_s19, 1 }
   0x7   : > { %p134_p3 = scmp.ne.s32.totalorder %s770_s16, %s766_s15  ;;  %p135_p4 = scmp.eq.s32.totalorder %s579_s20, 1 }
   0x8   : > { %s844_s24 = scalar_select %p116_p1, %s774_s17, %s118_s22  }
   0x9   : > { %p846_p5 = por %p129_p2, %p128_p0  ;;  %p850_p6 = por %p135_p4, %p134_p3 }
   0xa   : > { %p582_p7 = scmp.ge.s32.totalorder %s778_s18, 1  ;;  %p177_p8 = scmp.lt.s32.totalorder %s778_s18, 3 }
   0xc   : > { %p178_p9 = pnand %p582_p7, %p177_p8 }
   0xd   : > { %s584_s27 = sshll.u32 (!%p178_p9), %s829_s19, 5  ;;  %v866_v1 = vld [vmem:[%s1083_s2] ss:$0 sm:$0xff] (!%p178_p9)  ;;  %s205_s12 = sand.u32 (!%p178_p9), 1, %s770_s16  }
   0xe   : > { %181 = sbr.rel (%p178_p9) target bundleno = 82 (0x52), region = 36  ;;  %p209_p10 = scmp.lt.s32.totalorder (!%p178_p9), %s584_s27, 63  ;;  %v878_v5 = vld [vmem:[%s1084_s3] ss:$0 sm:$0xff] (!%p178_p9) }
   0xf   : > { %s890_s20 = sshll.u32 (!%p178_p9), %s205_s12, 8  ;;  %s595_s23 = sshll.u32 (!%p178_p9), %s829_s19, 12 }
  0x10   : > { %s914_s22 = scalar_lea.vmem (!%p178_p9), [#allocation2], %s890_s20  ;;  %s1040_s30 = scalar_lea.sflag (!%p178_p9), [#allocation3], %s205_s12 }
  0x15   : > { %s1093_s27 = smov (!%p209_p10, %s584_s27), 63 }
  0x16   : > { %s585_s28 = sshll.u32 %s1093_s27, 2  ;;  %s587_s29 = sshll.u32 %s1093_s27, 3 }
  0x17   : > { %s860_s6 = scalar_lea.vmem %s1081_s0, %s585_s28  ;;  %s871_s11 = scalar_lea.vmem %s1082_s1, %s587_s29 }
  0x18   : > { %v597_v0 = vld [vmem:[%s860_s6] sm:$0xff]   ;;  %v660_v4 = vld [vmem:[%s860_s6 + $0x8] sm:$0xff]   ;;  %v661_v8 = vld [vmem:[%s860_s6 + $0x10] sm:$0xff]   ;;  %s505_s27 = sshll.u32 %s914_s22, 4  ;;  %s1028_s29 = scalar_lea.hbm %s1085_s4, %s595_s23  ;;  %s1030_s27 = int_to_ptr.vmem [resolvable:$true] %s505_s27 }
  0x19   : > { %v598_v2 = vunpack.c.l.bf16 %v597_v0  ;;  %v599_v3 = vunpack.c.h.bf16 %v597_v0  ;;  %v602_v6 = vunpack.c.l.bf16 %v660_v4  ;;  %v603_v7 = vunpack.c.h.bf16 %v660_v4  ;;  %v662_v13 = vld [vmem:[%s860_s6 + $0x18] sm:$0xff]   ;;  %v285_v14 = vld [vmem:[%s871_s11] sm:$0xff]  ;;  %v286_v15 = vld [vmem:[%s871_s11 + $0x8] sm:$0xff]  ;;  %s716_s5 = scalar_lea.vmem %s1030_s27, 4096 }
  0x1a   : > { %v606_v11 = vunpack.c.l.bf16 %v661_v8  ;;  %v607_v12 = vunpack.c.h.bf16 %v661_v8  ;;  %v610_v18 = vunpack.c.l.bf16 %v662_v13  ;;  %v611_v19 = vunpack.c.h.bf16 %v662_v13  ;;  %v287_v22 = vld [vmem:[%s871_s11 + $0x10] sm:$0xff]  ;;  %v288_v23 = vld [vmem:[%s871_s11 + $0x18] sm:$0xff]  ;;  %v289_v28 = vld [vmem:[%s871_s11 + $0x20] sm:$0xff]  ;;  %p717_p11 = scmp.ne.s32.totalorder %s1030_s27, %s716_s5 }
  0x1b   : > { %v324_v9 = vmul.f32 %v598_v2, %v866_v1  ;;  %v325_v10 = vmul.f32 %v599_v3, %v866_v1  ;;  %v326_v16 = vmul.f32 %v602_v6, %v866_v1  ;;  %v327_v17 = vmul.f32 %v603_v7, %v866_v1  ;;  %v290_v29 = vld [vmem:[%s871_s11 + $0x28] sm:$0xff]  ;;  %v291_v36 = vld [vmem:[%s871_s11 + $0x30] sm:$0xff]  ;;  %v292_v37 = vld [vmem:[%s871_s11 + $0x38] sm:$0xff] }
  0x1c   : > { %v328_v24 = vmul.f32 %v606_v11, %v866_v1  ;;  %v329_v25 = vmul.f32 %v607_v12, %v866_v1  ;;  %v330_v30 = vmul.f32 %v610_v18, %v866_v1  ;;  %v331_v31 = vmul.f32 %v611_v19, %v866_v1  ;;  %v663_v42 = vld [vmem:[%s860_s6 + $0x20] sm:$0xff]   ;;  %v664_v47 = vld [vmem:[%s860_s6 + $0x28] sm:$0xff]   ;;  %v665_v52 = vld [vmem:[%s860_s6 + $0x30] sm:$0xff]   ;;  %p718_p12 = pnand %p717_p11, %p846_p5 }
  0x1d   : > { %v363_v20 = vadd.f32 %v878_v5, %v324_v9  ;;  %v364_v21 = vadd.f32 %v878_v5, %v325_v10  ;;  %v365_v26 = vadd.f32 %v878_v5, %v326_v16  ;;  %v366_v27 = vadd.f32 %v878_v5, %v327_v17  ;;  %v666_v57 = vld [vmem:[%s860_s6 + $0x38] sm:$0xff]   ;;  %v293_v3 = vld [vmem:[%s871_s11 + $0x40] sm:$0xff]  ;;  %v294_v4 = vld [vmem:[%s871_s11 + $0x48] sm:$0xff] }
  0x1e   : > { %v367_v34 = vadd.f32 %v878_v5, %v328_v24  ;;  %v368_v35 = vadd.f32 %v878_v5, %v329_v25  ;;  %v369_v40 = vadd.f32 %v878_v5, %v330_v30  ;;  %v370_v41 = vadd.f32 %v878_v5, %v331_v31  ;;  %v295_v12 = vld [vmem:[%s871_s11 + $0x50] sm:$0xff]  ;;  %v296_v13 = vld [vmem:[%s871_s11 + $0x58] sm:$0xff]  ;;  %v297_v18 = vld [vmem:[%s871_s11 + $0x60] sm:$0xff]  ;;  %p719_p13 = pneg %p718_p12 }
  0x1f   : > { %v395_v32 = vadd.f32 %v363_v20, %v285_v14  ;;  %v396_v33 = vadd.f32 %v364_v21, %v286_v15  ;;  %v397_v38 = vadd.f32 %v365_v26, %v287_v22  ;;  %v398_v39 = vadd.f32 %v366_v27, %v288_v23  ;;  %v298_v19 = vld [vmem:[%s871_s11 + $0x68] sm:$0xff]  ;;  %v299_v26 = vld [vmem:[%s871_s11 + $0x70] sm:$0xff]  ;;  %v300_v27 = vld [vmem:[%s871_s11 + $0x78] sm:$0xff] }
  0x20   : > { %v399_v45 = vadd.f32 %v367_v34, %v289_v28  ;;  %v400_v46 = vadd.f32 %v368_v35, %v290_v29  ;;  %v401_v50 = vadd.f32 %v369_v40, %v291_v36  ;;  %v402_v51 = vadd.f32 %v370_v41, %v292_v37  ;;  %v668_v37 = vld [vmem:[%s860_s6 + $0x48] sm:$0xff]  }
  0x21   : > { %v427_v43 = vmax.f32 %v395_v32, 0.0  ;;  %v428_v44 = vmax.f32 %v396_v33, 0.0  ;;  %v429_v48 = vmax.f32 %v397_v38, 0.0  ;;  %v430_v49 = vmax.f32 %v398_v39, 0.0  ;;  %v667_v32 = vld [vmem:[%s860_s6 + $0x40] sm:$0xff]  }
  0x22   : > { %v431_v53 = vmax.f32 %v399_v45, 0.0  ;;  %v432_v54 = vmax.f32 %v400_v46, 0.0  ;;  %v614_v55 = vunpack.c.l.bf16 %v663_v42  ;;  %v615_v56 = vunpack.c.h.bf16 %v663_v42  ;;  %v669_v42 = vld [vmem:[%s860_s6 + $0x50] sm:$0xff]  }
  0x23   : > { %459 = vst [vmem:[%s914_s22] sm:$0xff] %v427_v43  ;;  %460 = vst [vmem:[%s914_s22 + $0x8] sm:$0xff] %v428_v44  ;;  %v433_v58 = vmax.f32 %v401_v50, 0.0  ;;  %v434_v59 = vmax.f32 %v402_v51, 0.0  ;;  %v618_v60 = vunpack.c.l.bf16 %v664_v47  ;;  %v619_v61 = vunpack.c.h.bf16 %v664_v47  ;;  %v670_v47 = vld [vmem:[%s860_s6 + $0x58] sm:$0xff]  }
  0x24   : > { %461 = vst [vmem:[%s914_s22 + $0x10] sm:$0xff] %v429_v48  ;;  %462 = vst [vmem:[%s914_s22 + $0x18] sm:$0xff] %v430_v49  ;;  %v332_v62 = vmul.f32 %v614_v55, %v866_v1  ;;  %v333_v63 = vmul.f32 %v615_v56, %v866_v1  ;;  %v622_v0 = vunpack.c.l.bf16 %v665_v52  ;;  %v623_v2 = vunpack.c.h.bf16 %v665_v52  ;;  %v301_v56 = vld [vmem:[%s871_s11 + $0x80] sm:$0xff] }
  0x25   : > { %463 = vst [vmem:[%s914_s22 + $0x20] sm:$0xff] %v431_v53  ;;  %464 = vst [vmem:[%s914_s22 + $0x28] sm:$0xff] %v432_v54  ;;  %v334_v6 = vmul.f32 %v618_v60, %v866_v1  ;;  %v335_v7 = vmul.f32 %v619_v61, %v866_v1  ;;  %v626_v8 = vunpack.c.l.bf16 %v666_v57  ;;  %v627_v9 = vunpack.c.h.bf16 %v666_v57  ;;  %v302_v57 = vld [vmem:[%s871_s11 + $0x88] sm:$0xff] }
  0x26   : > { %465 = vst [vmem:[%s914_s22 + $0x30] sm:$0xff] %v433_v58  ;;  %466 = vst [vmem:[%s914_s22 + $0x38] sm:$0xff] %v434_v59  ;;  %v371_v10 = vadd.f32 %v878_v5, %v332_v62  ;;  %v372_v11 = vadd.f32 %v878_v5, %v333_v63  ;;  %v336_v14 = vmul.f32 %v622_v0, %v866_v1  ;;  %v630_v45 = vunpack.c.l.bf16 %v667_v32  ;;  %v303_v0 = vld [vmem:[%s871_s11 + $0x90] sm:$0xff] }
  0x27   : > { %v337_v15 = vmul.f32 %v623_v2, %v866_v1  ;;  %v373_v16 = vadd.f32 %v878_v5, %v334_v6  ;;  %v374_v17 = vadd.f32 %v878_v5, %v335_v7  ;;  %v338_v20 = vmul.f32 %v626_v8, %v866_v1  ;;  %v304_v2 = vld [vmem:[%s871_s11 + $0x98] sm:$0xff]  ;;  %v305_v8 = vld [vmem:[%s871_s11 + $0xa0] sm:$0xff] }
  0x28   : > { %v339_v21 = vmul.f32 %v627_v9, %v866_v1  ;;  %v403_v22 = vadd.f32 %v371_v10, %v293_v3  ;;  %v404_v23 = vadd.f32 %v372_v11, %v294_v4  ;;  %v375_v24 = vadd.f32 %v878_v5, %v336_v14  ;;  %v306_v9 = vld [vmem:[%s871_s11 + $0xa8] sm:$0xff] }
  0x29   : > { %v376_v25 = vadd.f32 %v878_v5, %v337_v15  ;;  %v405_v28 = vadd.f32 %v373_v16, %v295_v12  ;;  %v406_v29 = vadd.f32 %v374_v17, %v296_v13  ;;  %v377_v30 = vadd.f32 %v878_v5, %v338_v20  ;;  %v307_v16 = vld [vmem:[%s871_s11 + $0xb0] sm:$0xff]  ;;  %v308_v17 = vld [vmem:[%s871_s11 + $0xb8] sm:$0xff] }
  0x2a   : > { %v378_v31 = vadd.f32 %v878_v5, %v339_v21  ;;  %v435_v33 = vmax.f32 %v403_v22, 0.0  ;;  %v436_v34 = vmax.f32 %v404_v23, 0.0  ;;  %v407_v35 = vadd.f32 %v375_v24, %v297_v18  ;;  %v671_v22 = vld [vmem:[%s860_s6 + $0x60] sm:$0xff]  }
  0x2b   : > { %v408_v36 = vadd.f32 %v376_v25, %v298_v19  ;;  %v437_v38 = vmax.f32 %v405_v28, 0.0  ;;  %v438_v39 = vmax.f32 %v406_v29, 0.0  ;;  %v409_v40 = vadd.f32 %v377_v30, %v299_v26 }
  0x2c   : > { %v410_v41 = vadd.f32 %v378_v31, %v300_v27  ;;  %467 = vst [vmem:[%s914_s22 + $0x40] sm:$0xff] %v435_v33  ;;  %468 = vst [vmem:[%s914_s22 + $0x48] sm:$0xff] %v436_v34  ;;  %v439_v43 = vmax.f32 %v407_v35, 0.0  ;;  %v631_v46 = vunpack.c.h.bf16 %v667_v32  ;;  %v634_v50 = vunpack.c.l.bf16 %v668_v37  ;;  %v672_v27 = vld [vmem:[%s860_s6 + $0x68] sm:$0xff]   ;;  %v673_v32 = vld [vmem:[%s860_s6 + $0x70] sm:$0xff]  }
  0x2d   : > { %v440_v44 = vmax.f32 %v408_v36, 0.0  ;;  %469 = vst [vmem:[%s914_s22 + $0x50] sm:$0xff] %v437_v38  ;;  %470 = vst [vmem:[%s914_s22 + $0x58] sm:$0xff] %v438_v39  ;;  %v441_v48 = vmax.f32 %v409_v40, 0.0  ;;  %v635_v51 = vunpack.c.h.bf16 %v668_v37  ;;  %v340_v52 = vmul.f32 %v630_v45, %v866_v1  ;;  %v674_v37 = vld [vmem:[%s860_s6 + $0x78] sm:$0xff]   ;;  %s780_s6 = smov [#allocation2]  }
  0x2e   : > { %v442_v49 = vmax.f32 %v410_v41, 0.0  ;;  %471 = vst [vmem:[%s914_s22 + $0x60] sm:$0xff] %v439_v43  ;;  %v341_v53 = vmul.f32 %v631_v46, %v866_v1  ;;  %v638_v54 = vunpack.c.l.bf16 %v669_v42  ;;  %v639_v55 = vunpack.c.h.bf16 %v669_v42  ;;  %v309_v46 = vld [vmem:[%s871_s11 + $0xc0] sm:$0xff]  ;;  %s720_s7 = sshll.u32 %s780_s6, 4  ;;  %s721_s7 = int_to_ptr.vmem [resolvable:$false] %s720_s7 }
  0x2f   : > { %472 = vst [vmem:[%s914_s22 + $0x68] sm:$0xff] %v440_v44  ;;  %473 = vst [vmem:[%s914_s22 + $0x70] sm:$0xff] %v441_v48  ;;  %v342_v58 = vmul.f32 %v634_v50, %v866_v1  ;;  %v343_v59 = vmul.f32 %v635_v51, %v866_v1  ;;  %v642_v60 = vunpack.c.l.bf16 %v670_v47  ;;  %v643_v61 = vunpack.c.h.bf16 %v670_v47  ;;  %v310_v47 = vld [vmem:[%s871_s11 + $0xc8] sm:$0xff]  ;;  %s722_s8 = scalar_lea.vmem %s721_s7, 8192  ;;  %p723_p0 = scmp.lt.s32.totalorder %s1030_s27, %s721_s7 }
  0x30   : > { %474 = vst [vmem:[%s914_s22 + $0x78] sm:$0xff] %v442_v49  ;;  %v379_v62 = vadd.f32 %v878_v5, %v340_v52  ;;  %v380_v63 = vadd.f32 %v878_v5, %v341_v53  ;;  %v344_v3 = vmul.f32 %v638_v54, %v866_v1  ;;  %v345_v4 = vmul.f32 %v639_v55, %v866_v1  ;;  %v311_v54 = vld [vmem:[%s871_s11 + $0xd0] sm:$0xff]  ;;  %v312_v55 = vld [vmem:[%s871_s11 + $0xd8] sm:$0xff]  ;;  %p724_p1 = scmp.lt.s32.totalorder %s722_s8, %s716_s5 }
  0x31   : > { %v381_v6 = vadd.f32 %v878_v5, %v342_v58  ;;  %v382_v7 = vadd.f32 %v878_v5, %v343_v59  ;;  %v346_v10 = vmul.f32 %v642_v60, %v866_v1  ;;  %v347_v11 = vmul.f32 %v643_v61, %v866_v1  ;;  %v313_v60 = vld [vmem:[%s871_s11 + $0xe0] sm:$0xff]  ;;  %v314_v61 = vld [vmem:[%s871_s11 + $0xe8] sm:$0xff] }
  0x32   : > { %v411_v12 = vadd.f32 %v379_v62, %v301_v56  ;;  %v412_v13 = vadd.f32 %v380_v63, %v302_v57  ;;  %v383_v14 = vadd.f32 %v878_v5, %v344_v3  ;;  %v384_v15 = vadd.f32 %v878_v5, %v345_v4  ;;  %p725_p2 = por %p724_p1, %p723_p0 }
  0x33   : > { %v413_v18 = vadd.f32 %v381_v6, %v303_v0  ;;  %v414_v19 = vadd.f32 %v382_v7, %v304_v2  ;;  %v385_v20 = vadd.f32 %v878_v5, %v346_v10  ;;  %v386_v21 = vadd.f32 %v878_v5, %v347_v11  ;;  %v315_v6 = vld [vmem:[%s871_s11 + $0xf0] sm:$0xff]  ;;  %v316_v7 = vld [vmem:[%s871_s11 + $0xf8] sm:$0xff] }
  0x34   : > { %v443_v23 = vmax.f32 %v411_v12, 0.0  ;;  %v444_v24 = vmax.f32 %v412_v13, 0.0  ;;  %v415_v25 = vadd.f32 %v383_v14, %v305_v8  ;;  %v416_v26 = vadd.f32 %v384_v15, %v306_v9  ;;  %p726_p3 = pnand %p725_p2, %p719_p13 }
  0x35   : > { %v445_v28 = vmax.f32 %v413_v18, 0.0  ;;  %v446_v29 = vmax.f32 %v414_v19, 0.0  ;;  %v417_v30 = vadd.f32 %v385_v20, %v307_v16  ;;  %v418_v31 = vadd.f32 %v386_v21, %v308_v17 }
  0x36   : > { %475 = vst [vmem:[%s914_s22 + $0x80] sm:$0xff] %v443_v23  ;;  %476 = vst [vmem:[%s914_s22 + $0x88] sm:$0xff] %v444_v24  ;;  %v447_v33 = vmax.f32 %v415_v25, 0.0  ;;  %v448_v34 = vmax.f32 %v416_v26, 0.0  ;;  %v646_v35 = vunpack.c.l.bf16 %v671_v22  ;;  %v647_v36 = vunpack.c.h.bf16 %v671_v22 }
  0x37   : > { %477 = vst [vmem:[%s914_s22 + $0x90] sm:$0xff] %v445_v28  ;;  %478 = vst [vmem:[%s914_s22 + $0x98] sm:$0xff] %v446_v29  ;;  %v449_v38 = vmax.f32 %v417_v30, 0.0  ;;  %v450_v39 = vmax.f32 %v418_v31, 0.0  ;;  %v650_v40 = vunpack.c.l.bf16 %v672_v27  ;;  %v651_v41 = vunpack.c.h.bf16 %v672_v27 }
  0x38   : > { %479 = vst [vmem:[%s914_s22 + $0xa0] sm:$0xff] %v447_v33  ;;  %480 = vst [vmem:[%s914_s22 + $0xa8] sm:$0xff] %v448_v34  ;;  %v348_v42 = vmul.f32 %v646_v35, %v866_v1  ;;  %v349_v43 = vmul.f32 %v647_v36, %v866_v1  ;;  %v654_v44 = vunpack.c.l.bf16 %v673_v32  ;;  %v655_v45 = vunpack.c.h.bf16 %v673_v32 }
  0x39   : > { %481 = vst [vmem:[%s914_s22 + $0xb0] sm:$0xff] %v449_v38  ;;  %482 = vst [vmem:[%s914_s22 + $0xb8] sm:$0xff] %v450_v39  ;;  %v350_v48 = vmul.f32 %v650_v40, %v866_v1  ;;  %v351_v49 = vmul.f32 %v651_v41, %v866_v1  ;;  %v658_v50 = vunpack.c.l.bf16 %v674_v37  ;;  %v659_v51 = vunpack.c.h.bf16 %v674_v37 }
  0x3a   : > { %v387_v52 = vadd.f32 %v878_v5, %v348_v42  ;;  %v388_v53 = vadd.f32 %v878_v5, %v349_v43  ;;  %v352_v56 = vmul.f32 %v654_v44, %v866_v1  ;;  %v353_v57 = vmul.f32 %v655_v45, %v866_v1 }
  0x3b   : > { %v389_v58 = vadd.f32 %v878_v5, %v350_v48  ;;  %v390_v59 = vadd.f32 %v878_v5, %v351_v49  ;;  %v354_v62 = vmul.f32 %v658_v50, %v866_v1  ;;  %v355_v63 = vmul.f32 %v659_v51, %v866_v1 }
  0x3c   : > { %v419_v0 = vadd.f32 %v387_v52, %v309_v46  ;;  %v420_v2 = vadd.f32 %v388_v53, %v310_v47  ;;  %v391_v3 = vadd.f32 %v878_v5, %v352_v56  ;;  %v392_v4 = vadd.f32 %v878_v5, %v353_v57 }
  0x3d   : > { %v421_v8 = vadd.f32 %v389_v58, %v311_v54  ;;  %v422_v9 = vadd.f32 %v390_v59, %v312_v55  ;;  %v393_v10 = vadd.f32 %v878_v5, %v354_v62  ;;  %v394_v11 = vadd.f32 %v878_v5, %v355_v63 }
  0x3e   : > { %v451_v1 = vmax.f32 %v419_v0, 0.0  ;;  %v452_v12 = vmax.f32 %v420_v2, 0.0  ;;  %v423_v13 = vadd.f32 %v391_v3, %v313_v60  ;;  %v424_v14 = vadd.f32 %v392_v4, %v314_v61 }
  0x3f   : > { %v453_v15 = vmax.f32 %v421_v8, 0.0  ;;  %v454_v16 = vmax.f32 %v422_v9, 0.0  ;;  %v425_v17 = vadd.f32 %v393_v10, %v315_v6  ;;  %v426_v18 = vadd.f32 %v394_v11, %v316_v7 }
  0x40   : > { %483 = vst [vmem:[%s914_s22 + $0xc0] sm:$0xff] %v451_v1  ;;  %484 = vst [vmem:[%s914_s22 + $0xc8] sm:$0xff] %v452_v12  ;;  %v455_v5 = vmax.f32 %v423_v13, 0.0  ;;  %v456_v19 = vmax.f32 %v424_v14, 0.0 }
  0x41   : > { %485 = vst [vmem:[%s914_s22 + $0xd0] sm:$0xff] %v453_v15  ;;  %486 = vst [vmem:[%s914_s22 + $0xd8] sm:$0xff] %v454_v16  ;;  %v457_v20 = vmax.f32 %v425_v17, 0.0  ;;  %v458_v21 = vmax.f32 %v426_v18, 0.0 }
  0x42   : > { %487 = vst [vmem:[%s914_s22 + $0xe0] sm:$0xff] %v455_v5  ;;  %488 = vst [vmem:[%s914_s22 + $0xe8] sm:$0xff] %v456_v19 }
  0x43   : > { %489 = vst [vmem:[%s914_s22 + $0xf0] sm:$0xff] %v457_v20  ;;  %490 = vst [vmem:[%s914_s22 + $0xf8] sm:$0xff] %v458_v21 }
  0x44   : > { %729 = shalt.err (!%p726_p3)
}
  0x45   : > { %s730_s9 = scalar_lea.hbm %s1028_s29, 4096  ;;  %s734_s12 = scalar_lea.hbm %s1085_s4, 8192 }
  0x46   : > { %p731_p4 = scmp.ne.s32.totalorder %s1028_s29, %s730_s9  ;;  %p735_p9 = scmp.lt.u32.totalorder %s1028_s29, %s1085_s4 }
  0x47   : > { %p736_p10 = scmp.lt.u32.totalorder %s734_s12, %s730_s9  ;;  %p738_p12 = scmp.lt.u32.totalorder %s730_s9, %s1028_s29 }
  0x48   : > { %p732_p7 = pnand %p731_p4, %p846_p5 }
  0x49   : > { %p737_p11 = por %p736_p10, %p735_p9 }
  0x4a   : > { %p733_p8 = pneg %p732_p7 }
  0x4b   : > { %p739_p13 = por %p738_p12, %p737_p11 }
  0x4d   : > { %p740_p0 = pnand %p739_p13, %p733_p8 }
  0x4f   : > { %743 = shalt.err (!%p740_p0)
}
  0x50   : > { %s781_s20 = smov 128   ;;  %s782_s22 = smov 8  }
  0x51   : > { %675 = dma.vmem_to_hbm [thread:$0]  (%p846_p5), %s1030_s27, 4096, %s1028_s29, %s1040_s30, %s781_s20, %s781_s20, %s782_s22  }
  0x52 PF: > { %p681_p1 = scmp.ge.s32.totalorder %s778_s18, 2  ;;  %s520_s23 = sand.u32 1, %s766_s15  }
  0x53   : > { %s521_s19 = scalar_lea.sflag [#allocation3], %s520_s23 }
  0x54   : > { %p678_p2 = pnand %p681_p1, %p850_p6 }
  0x56   : > { %761 = dma.done.wait (!%p678_p2), %s521_s19, 4096  }
  0x57   : > { %763 = vsyncadd (!%p678_p2), %s521_s19, 4294963200  ;;  %p14_p3 = scmp.ge.s32.totalorder %s833_s21, 4   ;;  %s1088_s15 = smov %s770_s16 }
  0x58   : > { %s1089_s16 = smov %s774_s17  ;;  %s1090_s17 = smov %s844_s24 }
  0x59   : > { %s1091_s18 = smov %s833_s21  ;;  %16 = sbr.rel (!%p14_p3) target bundleno = 3 (0x3), region = 74 }
  0x60   :  { %526 = vsyncpa [#allocation3], 1 }
  0x61   :  { %528 = vsyncpa [#allocation3 + $0x1], 1 }

// kernel: identity_bottleneck_nhwc.6
= control target key start
LH: loop header
LB: loop body
LE: loop exit
PB: predicated region body
PF: predicated region fallthrough
CT: control target
= control target key end

     0   :  { %s1486_s21 = smov 0   ;;  %s1757_s0 = inlined_call_operand.vmem [shape: bf16[512,128], index: 0, kind: input, shape index: {}]   ;;  %s1758_s1 = inlined_call_operand.vmem [shape: f32[1,128], index: 1, kind: input, shape index: {}]   ;;  %s1759_s2 = inlined_call_operand.vmem [shape: f32[1,128], index: 2, kind: input, shape index: {}]   ;;  %s1760_s3 = inlined_call_operand.vmem [shape: bf16[128,128], index: 3, kind: input, shape index: {}]   ;;  %s1761_s4 = inlined_call_operand.vmem [shape: bf16[512,128], index: 4, kind: output, shape index: {0}]   ;;  %s1762_s5 = inlined_call_operand.vmem [shape: f32[2,8,128], index: 5, kind: output, shape index: {1}]   ;;  %s1763_s6 = inlined_call_operand.vmem [shape: f32[2,8,128], index: 6, kind: output, shape index: {2}]  }
   0x1 LB: > { %s1492_s22 = sadd.s32 4294967295, %s1449_s21   ;;  %p1082_p0 = scmp.ge.s32.totalorder %s1449_s21, 1  ;;  %s1449_s21 = sphi %s1486_s21, %s17_s21  }
   0x2   : > { %p218_p1 = scmp.lt.s32.totalorder %s1449_s21, 3 }
   0x4   : > { %p219_p2 = pnand %p1082_p0, %p218_p1 }
   0x5   : > { %v1435_v0 = vld [vmem:[%s1760_s3] sm:$0xff] (!%p219_p2)   ;;  %s1083_s25 = sshll.u32 (!%p219_p2), %s1492_s22, 5  ;;  %v1436_v1 = vld [vmem:[%s1760_s3 + $0x8] sm:$0xff] (!%p219_p2)   ;;  %v1437_v2 = vld [vmem:[%s1760_s3 + $0x10] sm:$0xff] (!%p219_p2)   ;;  %p268_p4 = scmp.lt.s32.totalorder (!%p219_p2), %s1492_s22, 1 }
   0x6   : > { %222 = sbr.rel (%p219_p2) target bundleno = 330 (0x14a), region = 36  ;;  %p257_p3 = scmp.lt.s32.totalorder (!%p219_p2), %s1083_s25, 63  ;;  %1363 = vmatprep.subr.bf16.mxu0 (!%p219_p2), %v1435_v0  ;;  %1411 = vmatprep.subr.bf16.mxu1 (!%p219_p2), %v1435_v0  ;;  %v1438_v3 = vld [vmem:[%s1760_s3 + $0x18] sm:$0xff] (!%p219_p2)   ;;  %v1523_v5 = vld [vmem:[%s1758_s1] ss:$0 sm:$0xff] (!%p219_p2)  ;;  %v1440_v34 = vld [vmem:[%s1760_s3 + $0x28] sm:$0xff] (!%p219_p2)  }
   0x7   : > { %1364 = vmatpush3.bf16.msra.mxu0 (!%p219_p2), %v1435_v0  ;;  %1419 = vmatpush3.bf16.msra.mxu1 (!%p219_p2), %v1435_v0  ;;  %v1531_v11 = vld [vmem:[%s1759_s2] ss:$0 sm:$0xff] (!%p219_p2)  ;;  %v1441_v49 = vld [vmem:[%s1760_s3 + $0x30] sm:$0xff] (!%p219_p2)   ;;  %v1442_v63 = vld [vmem:[%s1760_s3 + $0x38] sm:$0xff] (!%p219_p2)  }
   0x8   : > { %1365 = vmatprep.subr.bf16.mxu0 (!%p219_p2), %v1436_v1  ;;  %1412 = vmatprep.subr.bf16.mxu1 (!%p219_p2), %v1436_v1  ;;  %v1439_v20 = vld [vmem:[%s1760_s3 + $0x20] sm:$0xff] (!%p219_p2)  }
   0xb   : > { %1366 = vmatpush3.bf16.msra.mxu0 (!%p219_p2), %v1436_v1  ;;  %1420 = vmatpush3.bf16.msra.mxu1 (!%p219_p2), %v1436_v1 }
   0xc   : > { %1367 = vmatprep.subr.bf16.mxu0 (!%p219_p2), %v1437_v2  ;;  %1413 = vmatprep.subr.bf16.mxu1 (!%p219_p2), %v1437_v2 }
   0xd   : > { %s1765_s25 = smov (!%p257_p3, %s1083_s25), 63  ;;  %s1767_s22 = smov (!%p268_p4, %s1492_s22), 1 }
   0xe   : > { %s1084_s30 = sshll.u32 %s1765_s25, 2  ;;  %s1087_s25 = sshll.u32 %s1767_s22, 3 }
   0xf   : > { %s1514_s9 = scalar_lea.vmem %s1757_s0, %s1084_s30  ;;  %1368 = vmatpush3.bf16.msra.mxu0 %v1437_v2  ;;  %1421 = vmatpush3.bf16.msra.mxu1 %v1437_v2  ;;  %s1656_s29 = scalar_lea.vmem %s1761_s4, %s1084_s30 }
  0x10   : > { %v1166_v4 = vld [vmem:[%s1514_s9] sm:$0xff]   ;;  %v1309_v8 = vld [vmem:[%s1514_s9 + $0x8] sm:$0xff]   ;;  %v1310_v9 = vld [vmem:[%s1514_s9 + $0x10] sm:$0xff]   ;;  %1369 = vmatprep.subr.bf16.mxu0 %v1438_v3  ;;  %1414 = vmatprep.subr.bf16.mxu1 %v1438_v3  ;;  %s271_s8 = scalar_lea.vmem %s1762_s5, %s1087_s25  ;;  %s275_s11 = scalar_lea.vmem %s1763_s6, %s1087_s25 }
  0x11   : > { %v1167_v6 = vunpack.c.l.bf16 %v1166_v4  ;;  %v1168_v7 = vunpack.c.h.bf16 %v1166_v4  ;;  %v1311_v10 = vld [vmem:[%s1514_s9 + $0x18] sm:$0xff]   ;;  %v1171_v12 = vunpack.c.l.bf16 %v1309_v8  ;;  %v1172_v13 = vunpack.c.h.bf16 %v1309_v8  ;;  %v1312_v29 = vld [vmem:[%s1514_s9 + $0x20] sm:$0xff]   ;;  %v1313_v33 = vld [vmem:[%s1514_s9 + $0x28] sm:$0xff]  }
  0x12   : > { %v1175_v14 = vunpack.c.l.bf16 %v1310_v9  ;;  %v1176_v15 = vunpack.c.h.bf16 %v1310_v9  ;;  %v1179_v18 = vunpack.c.l.bf16 %v1311_v10  ;;  %v1180_v19 = vunpack.c.h.bf16 %v1311_v10  ;;  %v1314_v42 = vld [vmem:[%s1514_s9 + $0x30] sm:$0xff]   ;;  %v1560_v48 = vld [vmem:[%s1514_s9 + $0x38] sm:$0xff]   ;;  %v1316_v60 = vld [vmem:[%s1514_s9 + $0x40] sm:$0xff]  }
  0x13   : > { %v348_v16 = vmul.f32 %v1167_v6, %v1523_v5  ;;  %v349_v17 = vmul.f32 %v1168_v7, %v1523_v5  ;;  %v350_v21 = vmul.f32 %v1171_v12, %v1523_v5  ;;  %v351_v22 = vmul.f32 %v1172_v13, %v1523_v5  ;;  %1370 = vmatpush3.bf16.msra.mxu0 %v1438_v3  ;;  %v1318_v9 = vld [vmem:[%s1514_s9 + $0x50] sm:$0xff]  }
  0x14   : > { %v352_v23 = vmul.f32 %v1175_v14, %v1523_v5  ;;  %v353_v24 = vmul.f32 %v1176_v15, %v1523_v5  ;;  %v354_v27 = vmul.f32 %v1179_v18, %v1523_v5  ;;  %v355_v28 = vmul.f32 %v1180_v19, %v1523_v5  ;;  %1422 = vmatpush3.bf16.msra.mxu1 %v1438_v3  ;;  %v1317_v3 = vld [vmem:[%s1514_s9 + $0x48] sm:$0xff]   ;;  %v1319_v19 = vld [vmem:[%s1514_s9 + $0x58] sm:$0xff]  }
  0x15   : > { %v387_v25 = vadd.f32 %v1531_v11, %v348_v16  ;;  %v388_v26 = vadd.f32 %v1531_v11, %v349_v17  ;;  %v389_v32 = vadd.f32 %v1531_v11, %v350_v21  ;;  %1371 = vmatprep.subr.bf16.mxu0 %v1439_v20  ;;  %v390_v35 = vadd.f32 %v1531_v11, %v351_v22 }
  0x16   : > { %v391_v36 = vadd.f32 %v1531_v11, %v352_v23  ;;  %v392_v37 = vadd.f32 %v1531_v11, %v353_v24  ;;  %1415 = vmatprep.subr.bf16.mxu1 %v1439_v20  ;;  %v393_v39 = vadd.f32 %v1531_v11, %v354_v27  ;;  %v394_v40 = vadd.f32 %v1531_v11, %v355_v28 }
  0x17   : > { %v419_v30 = vmax.f32 %v387_v25, 0.0  ;;  %v420_v31 = vmax.f32 %v388_v26, 0.0  ;;  %v1183_v41 = vunpack.c.l.bf16 %v1312_v29  ;;  %v1184_v43 = vunpack.c.h.bf16 %v1312_v29  ;;  %1372 = vmatpush3.bf16.msra.mxu0 %v1439_v20 }
  0x18   : > { %v1187_v44 = vunpack.c.l.bf16 %v1313_v33  ;;  %v421_v45 = vmax.f32 %v389_v32, 0.0  ;;  %v1188_v47 = vunpack.c.h.bf16 %v1313_v33  ;;  %1373 = vmatprep.subr.bf16.mxu0 %v1440_v34  ;;  %v422_v50 = vmax.f32 %v390_v35, 0.0  ;;  %1423 = vmatpush3.bf16.msra.mxu1 %v1439_v20  ;;  %v1320_v32 = vld [vmem:[%s1514_s9 + $0x60] sm:$0xff]  }
  0x19   : > { %v451_v38 = vpack.c.bf16 %v420_v31, %v419_v30  ;;  %v356_v46 = vmul.f32 %v1183_v41, %v1523_v5  ;;  %v423_v51 = vmax.f32 %v391_v36, 0.0  ;;  %v424_v52 = vmax.f32 %v392_v37, 0.0  ;;  %1416 = vmatprep.subr.bf16.mxu1 %v1440_v34 }
  0x1a   : > { %v1191_v53 = vunpack.c.l.bf16 %v1314_v42  ;;  %v425_v54 = vmax.f32 %v393_v39, 0.0  ;;  %v426_v55 = vmax.f32 %v394_v40, 0.0  ;;  %v357_v56 = vmul.f32 %v1184_v43, %v1523_v5 }
  0x1b   : > { %1379 = vmatprep.mubr.bf16.mxu0 %v451_v38  ;;  %v358_v57 = vmul.f32 %v1187_v44, %v1523_v5  ;;  %v1192_v58 = vunpack.c.h.bf16 %v1314_v42  ;;  %v1195_v59 = vunpack.c.l.bf16 %v1560_v48  ;;  %1374 = vmatpush3.bf16.msra.mxu0 %v1440_v34  ;;  %v1570_v61 = vadd.f32 %v1531_v11, %v356_v46 }
  0x1c   : > { %v359_v62 = vmul.f32 %v1188_v47, %v1523_v5  ;;  %1375 = vmatprep.subr.bf16.mxu0 %v1441_v49  ;;  %v452_v0 = vpack.c.bf16 %v422_v50, %v421_v45  ;;  %v453_v1 = vpack.c.bf16 %v424_v52, %v423_v51  ;;  %1424 = vmatpush3.bf16.msra.mxu1 %v1440_v34  ;;  %v1196_v7 = vunpack.c.h.bf16 %v1560_v48  ;;  %v1321_v45 = vld [vmem:[%s1514_s9 + $0x68] sm:$0xff]  }
  0x1d   : > { %v360_v2 = vmul.f32 %v1191_v53, %v1523_v5  ;;  %v1578_v4 = vpack.c.bf16 %v426_v55, %v425_v54  ;;  %v1581_v6 = vadd.f32 %v1531_v11, %v357_v56  ;;  %1417 = vmatprep.subr.bf16.mxu1 %v1441_v49  ;;  %v1199_v8 = vunpack.c.l.bf16 %v1316_v60  ;;  %v1322_v55 = vld [vmem:[%s1514_s9 + $0x70] sm:$0xff]  }
  0x1e   : > { %v1586_v10 = vadd.f32 %v1531_v11, %v358_v57  ;;  %v1589_v12 = vmul.f32 %v1192_v58, %v1523_v5  ;;  %v1592_v13 = vmul.f32 %v1195_v59, %v1523_v5  ;;  %v1200_v14 = vunpack.c.h.bf16 %v1316_v60 }
  0x1f   : > { %1376 = vmatpush3.bf16.msra.mxu0 %v1441_v49  ;;  %v427_v15 = vmax.f32 %v1570_v61, 0.0  ;;  %v1596_v16 = vadd.f32 %v1531_v11, %v359_v62  ;;  %v364_v17 = vmul.f32 %v1199_v8, %v1523_v5  ;;  %v1203_v18 = vunpack.c.l.bf16 %v1317_v3 }
  0x20   : > { %1377 = vmatprep.subr.bf16.mxu0 %v1442_v63  ;;  %1425 = vmatpush3.bf16.msra.mxu1 %v1441_v49  ;;  %v1601_v20 = vadd.f32 %v1531_v11, %v360_v2  ;;  %v365_v21 = vmul.f32 %v1200_v14, %v1523_v5  ;;  %v1204_v22 = vunpack.c.h.bf16 %v1317_v3  ;;  %v1207_v23 = vunpack.c.l.bf16 %v1318_v9 }
  0x21   : > { %v428_v24 = vmax.f32 %v1581_v6, 0.0  ;;  %1418 = vmatprep.subr.bf16.mxu1 %v1442_v63  ;;  %v403_v25 = vadd.f32 %v1531_v11, %v364_v17  ;;  %v366_v26 = vmul.f32 %v1203_v18, %v1523_v5  ;;  %v1208_v27 = vunpack.c.h.bf16 %v1318_v9  ;;  %v1323_v17 = vld [vmem:[%s1514_s9 + $0x78] sm:$0xff]  }
  0x22   : > { %v404_v28 = vadd.f32 %v1531_v11, %v365_v21  ;;  %v367_v29 = vmul.f32 %v1204_v22, %v1523_v5  ;;  %v368_v30 = vmul.f32 %v1207_v23, %v1523_v5  ;;  %v1211_v31 = vunpack.c.l.bf16 %v1319_v19 }
  0x23   : > { %1378 = vmatpush3.bf16.msra.mxu0 %v1442_v63  ;;  %v435_v33 = vmax.f32 %v403_v25, 0.0  ;;  %v405_v34 = vadd.f32 %v1531_v11, %v366_v26  ;;  %v369_v35 = vmul.f32 %v1208_v27, %v1523_v5  ;;  %v1212_v36 = vunpack.c.h.bf16 %v1319_v19 }
  0x24   : > { %1426 = vmatpush3.bf16.msra.mxu1 %v1442_v63  ;;  %v436_v37 = vmax.f32 %v404_v28, 0.0  ;;  %v406_v38 = vadd.f32 %v1531_v11, %v367_v29  ;;  %v407_v39 = vadd.f32 %v1531_v11, %v368_v30  ;;  %v370_v40 = vmul.f32 %v1211_v31, %v1523_v5 }
  0x25   : > { %v437_v41 = vmax.f32 %v405_v34, 0.0  ;;  %v408_v42 = vadd.f32 %v1531_v11, %v369_v35  ;;  %v371_v43 = vmul.f32 %v1212_v36, %v1523_v5  ;;  %v1215_v44 = vunpack.c.l.bf16 %v1320_v32 }
  0x26   : > { %1380 = vmatmul.mubr.bf16.vlgmr.msra.gmra.mrb[0].mxu0 %v452_v0  ;;  %v459_v46 = vpack.c.bf16 %v436_v37, %v435_v33  ;;  %v438_v47 = vmax.f32 %v406_v38, 0.0  ;;  %v439_v49 = vmax.f32 %v407_v39, 0.0  ;;  %v409_v50 = vadd.f32 %v1531_v11, %v370_v40 }
  0x27   : > { %1383 = vmatprep.mubr.bf16.mxu0 %v453_v1  ;;  %v440_v51 = vmax.f32 %v408_v42, 0.0  ;;  %v410_v52 = vadd.f32 %v1531_v11, %v371_v43  ;;  %v1216_v53 = vunpack.c.h.bf16 %v1320_v32  ;;  %v372_v54 = vmul.f32 %v1215_v44, %v1523_v5 }
  0x28   : > { %1395 = vmatprep.mubr.bf16.mxu1 %v459_v46  ;;  %v460_v56 = vpack.c.bf16 %v438_v47, %v437_v41  ;;  %v441_v57 = vmax.f32 %v409_v50, 0.0  ;;  %v1219_v58 = vunpack.c.l.bf16 %v1321_v45  ;;  %v1220_v59 = vunpack.c.h.bf16 %v1321_v45 }
  0x29   : > { %v461_v60 = vpack.c.bf16 %v440_v51, %v439_v49  ;;  %v442_v61 = vmax.f32 %v410_v52, 0.0  ;;  %v373_v62 = vmul.f32 %v1216_v53, %v1523_v5  ;;  %v411_v63 = vadd.f32 %v1531_v11, %v372_v54 }
  0x2a   : > { %1396 = vmatmul.mubr.bf16.vlgmr.msra.gmra.mrb[0].mxu1 %v460_v56  ;;  %v374_v0 = vmul.f32 %v1219_v58, %v1523_v5  ;;  %v375_v1 = vmul.f32 %v1220_v59, %v1523_v5  ;;  %v1223_v2 = vunpack.c.l.bf16 %v1322_v55  ;;  %v1224_v3 = vunpack.c.h.bf16 %v1322_v55 }
  0x2b   : > { %v455_v6 = vpack.c.bf16 %v428_v24, %v427_v15  ;;  %v400_v8 = vadd.f32 %v1531_v11, %v1589_v12  ;;  %1399 = vmatprep.mubr.bf16.mxu1 %v461_v60  ;;  %v412_v9 = vadd.f32 %v1531_v11, %v373_v62  ;;  %v443_v14 = vmax.f32 %v411_v63, 0.0 }
  0x2c   : > { %v429_v18 = vmax.f32 %v1586_v10, 0.0  ;;  %v363_v19 = vmul.f32 %v1196_v7, %v1523_v5  ;;  %v376_v21 = vmul.f32 %v1223_v2, %v1523_v5  ;;  %v377_v22 = vmul.f32 %v1224_v3, %v1523_v5 }
  0x2d   : > { %v430_v15 = vmax.f32 %v1596_v16, 0.0  ;;  %v431_v23 = vmax.f32 %v1601_v20, 0.0  ;;  %v462_v12 = vpack.c.bf16 %v442_v61, %v441_v57  ;;  %v444_v24 = vmax.f32 %v412_v9, 0.0 }
  0x2e   : > { %1384 = vmatmul.mubr.bf16.gmra.mrb[4].mxu0 %v1578_v4  ;;  %v413_v25 = vadd.f32 %v1531_v11, %v374_v0  ;;  %v414_v10 = vadd.f32 %v1531_v11, %v375_v1  ;;  %v1227_v26 = vunpack.c.l.bf16 %v1323_v17  ;;  %v1228_v27 = vunpack.c.h.bf16 %v1323_v17 }
  0x2f   : > { %1387 = vmatprep.mubr.bf16.mxu0 %v455_v6  ;;  %v432_v48 = vmax.f32 %v400_v8, 0.0  ;;  %v463_v7 = vpack.c.bf16 %v444_v24, %v443_v14  ;;  %v415_v28 = vadd.f32 %v1531_v11, %v376_v21  ;;  %v416_v29 = vadd.f32 %v1531_v11, %v377_v22 }
  0x30   : > { %v456_v16 = vpack.c.bf16 %v430_v15, %v429_v18  ;;  %v401_v20 = vadd.f32 %v1531_v11, %v1592_v13  ;;  %v402_v30 = vadd.f32 %v1531_v11, %v363_v19  ;;  %v445_v4 = vmax.f32 %v413_v25, 0.0 }
  0x31   : > { %v446_v31 = vmax.f32 %v414_v10, 0.0  ;;  %v378_v32 = vmul.f32 %v1227_v26, %v1523_v5  ;;  %v379_v33 = vmul.f32 %v1228_v27, %v1523_v5  ;;  %v457_v34 = vpack.c.bf16 %v432_v48, %v431_v23 }
  0x32   : > { %1400 = vmatmul.mubr.bf16.gmra.mrb[4].mxu1 %v462_v12  ;;  %v447_v35 = vmax.f32 %v415_v28, 0.0  ;;  %v448_v36 = vmax.f32 %v416_v29, 0.0  ;;  %v433_v37 = vmax.f32 %v401_v20, 0.0  ;;  %v434_v38 = vmax.f32 %v402_v30, 0.0 }
  0x33   : > { %1403 = vmatprep.mubr.bf16.mxu1 %v463_v7  ;;  %v464_v39 = vpack.c.bf16 %v446_v31, %v445_v4  ;;  %v417_v13 = vadd.f32 %v1531_v11, %v378_v32  ;;  %v418_v40 = vadd.f32 %v1531_v11, %v379_v33 }
  0x34   : > { %v465_v41 = vpack.c.bf16 %v448_v36, %v447_v35  ;;  %v458_v42 = vpack.c.bf16 %v434_v38, %v433_v37 }
  0x35   : > { %v449_v43 = vmax.f32 %v417_v13, 0.0  ;;  %v450_v44 = vmax.f32 %v418_v40, 0.0 }
  0x36   : > { %1388 = vmatmul.mubr.bf16.gmra.mrb[8].mxu0 %v456_v16 }
  0x37   : > { %1391 = vmatprep.mubr.bf16.mxu0 %v457_v34  ;;  %v466_v5 = vpack.c.bf16 %v450_v44, %v449_v43 }
  0x3a   : > { %1404 = vmatmul.mubr.bf16.gmra.mrb[8].mxu1 %v464_v39 }
  0x3b   : > { %1407 = vmatprep.mubr.bf16.mxu1 %v465_v41 }
  0x3e   : > { %1392 = vmatmul.mubr.bf16.gmra.mrb[12].mxu0 %v458_v42 }
  0x42   : > { %1408 = vmatmul.mubr.bf16.gmra.mrb[12].mxu1 %v466_v5 }
  0xf9   : > { %v1381_v45 = vpop.f32.mrb[0].mxu0 }
  0xfa   : > { %v565_v46 = vpop.f32.mrb[1].mxu0  ;;  %v731_v56 = vmul.f32 %v1381_v45, %v1381_v45 }
  0xfb   : > { %v1382_v11 = vpop.f32.mrb[2].mxu0  ;;  %v729_v50 = vmul.f32 %v565_v46, %v565_v46 }
  0xfc   : > { %v1237_v47 = vpack.c.bf16 %v1382_v11, %v1381_v45  ;;  %v568_v49 = vpop.f32.mrb[3].mxu0  ;;  %v732_v62 = vmul.f32 %v1382_v11, %v1382_v11 }
  0xfd   : > { %v692_v51 = vadd.f32 %v568_v49, %v565_v46  ;;  %v730_v52 = vmul.f32 %v568_v49, %v568_v49  ;;  %v1232_v53 = vpack.c.bf16 %v568_v49, %v565_v46  ;;  %v1658_v54 = vpop.f32.mrb[0].mxu1 }
  0xfe   : > { %1324 = vst [vmem:[%s1656_s29 + $0x8] sm:$0xff] %v1237_v47   ;;  %v1661_v55 = vpop.f32.mrb[1].mxu1 }
  0xff   : > { %v693_v57 = vadd.f32 %v1381_v45, %v692_v51  ;;  %v761_v58 = vadd.f32 %v730_v52, %v729_v50  ;;  %1233 = vst [vmem:[%s1656_s29] sm:$0xff] %v1232_v53   ;;  %v1664_v59 = vpop.f32.mrb[2].mxu1 }
 0x100   : > { %v1277_v60 = vpack.c.bf16 %v1664_v59, %v1658_v54  ;;  %v1668_v61 = vpop.f32.mrb[3].mxu1 }
 0x101   : > { %v762_v63 = vadd.f32 %v761_v58, %v731_v56  ;;  %v1385_v0 = vpop.f32.mrb[4].mxu0  ;;  %v694_v1 = vadd.f32 %v1382_v11, %v693_v57  ;;  %v1272_v2 = vpack.c.bf16 %v1668_v61, %v1661_v55 }
 0x102   : > { %v581_v3 = vpop.f32.mrb[5].mxu0  ;;  %1332 = vst [vmem:[%s1656_s29 + $0x48] sm:$0xff] %v1277_v60   ;;  %v735_v24 = vmul.f32 %v1385_v0, %v1385_v0 }
 0x103   : > { %v695_v6 = vadd.f32 %v694_v1, %v581_v3  ;;  %v733_v8 = vmul.f32 %v581_v3, %v581_v3  ;;  %v763_v9 = vadd.f32 %v762_v63, %v732_v62  ;;  %v1386_v14 = vpop.f32.mrb[6].mxu0  ;;  %1331 = vst [vmem:[%s1656_s29 + $0x40] sm:$0xff] %v1272_v2  }
 0x104   : > { %v1247_v17 = vpack.c.bf16 %v1386_v14, %v1385_v0  ;;  %v584_v18 = vpop.f32.mrb[7].mxu0  ;;  %v736_v7 = vmul.f32 %v1386_v14, %v1386_v14 }
 0x105   : > { %v764_v19 = vadd.f32 %v763_v9, %v733_v8  ;;  %v696_v21 = vadd.f32 %v695_v6, %v584_v18  ;;  %v734_v22 = vmul.f32 %v584_v18, %v584_v18  ;;  %v1242_v15 = vpack.c.bf16 %v584_v18, %v581_v3  ;;  %v1674_v23 = vpop.f32.mrb[4].mxu1 }
 0x106   : > { %1326 = vst [vmem:[%s1656_s29 + $0x18] sm:$0xff] %v1247_v17   ;;  %v1677_v12 = vpop.f32.mrb[5].mxu1  ;;  %v745_v17 = vmul.f32 %v1661_v55, %v1661_v55 }
 0x107   : > { %v697_v25 = vadd.f32 %v1385_v0, %v696_v21  ;;  %v765_v10 = vadd.f32 %v764_v19, %v734_v22  ;;  %1325 = vst [vmem:[%s1656_s29 + $0x10] sm:$0xff] %v1242_v15   ;;  %v1680_v26 = vpop.f32.mrb[6].mxu1 }
 0x108   : > { %v1287_v27 = vpack.c.bf16 %v1680_v26, %v1674_v23  ;;  %v1684_v48 = vpop.f32.mrb[7].mxu1 }
 0x109   : > { %v766_v28 = vadd.f32 %v765_v10, %v735_v24  ;;  %v1389_v29 = vpop.f32.mrb[8].mxu0  ;;  %v698_v16 = vadd.f32 %v1386_v14, %v697_v25  ;;  %v1282_v20 = vpack.c.bf16 %v1684_v48, %v1677_v12 }
 0x10a   : > { %v597_v30 = vpop.f32.mrb[9].mxu0  ;;  %1334 = vst [vmem:[%s1656_s29 + $0x58] sm:$0xff] %v1287_v27   ;;  %v739_v41 = vmul.f32 %v1389_v29, %v1389_v29 }
 0x10b   : > { %v699_v4 = vadd.f32 %v698_v16, %v597_v30  ;;  %v737_v31 = vmul.f32 %v597_v30, %v597_v30  ;;  %v767_v32 = vadd.f32 %v766_v28, %v736_v7  ;;  %v1390_v33 = vpop.f32.mrb[10].mxu0  ;;  %1333 = vst [vmem:[%s1656_s29 + $0x50] sm:$0xff] %v1282_v20   ;;  %v746_v28 = vmul.f32 %v1668_v61, %v1668_v61 }
 0x10c   : > { %v1257_v34 = vpack.c.bf16 %v1390_v33, %v1389_v29  ;;  %v600_v35 = vpop.f32.mrb[11].mxu0  ;;  %v740_v46 = vmul.f32 %v1390_v33, %v1390_v33 }
 0x10d   : > { %v768_v36 = vadd.f32 %v767_v32, %v737_v31  ;;  %v700_v37 = vadd.f32 %v699_v4, %v600_v35  ;;  %v738_v38 = vmul.f32 %v600_v35, %v600_v35  ;;  %v1252_v39 = vpack.c.bf16 %v600_v35, %v597_v30  ;;  %v1690_v13 = vpop.f32.mrb[8].mxu1 }
 0x10e   : > { %1328 = vst [vmem:[%s1656_s29 + $0x28] sm:$0xff] %v1257_v34   ;;  %v1693_v40 = vpop.f32.mrb[9].mxu1  ;;  %v748_v30 = vmul.f32 %v1664_v59, %v1664_v59  ;;  %v749_v31 = vmul.f32 %v1677_v12, %v1677_v12  ;;  %v750_v35 = vmul.f32 %v1684_v48, %v1684_v48 }
 0x10f   : > { %v701_v42 = vadd.f32 %v1389_v29, %v700_v37  ;;  %v769_v43 = vadd.f32 %v768_v36, %v738_v38  ;;  %1327 = vst [vmem:[%s1656_s29 + $0x20] sm:$0xff] %v1252_v39   ;;  %v1696_v44 = vpop.f32.mrb[10].mxu1  ;;  %v747_v29 = vmul.f32 %v1658_v54, %v1658_v54 }
 0x110   : > { %v1297_v5 = vpack.c.bf16 %v1696_v44, %v1690_v13  ;;  %v1700_v45 = vpop.f32.mrb[11].mxu1 }
 0x111   : > { %v770_v11 = vadd.f32 %v769_v43, %v739_v41  ;;  %v1393_v47 = vpop.f32.mrb[12].mxu0  ;;  %v702_v49 = vadd.f32 %v1390_v33, %v701_v42  ;;  %v1292_v50 = vpack.c.bf16 %v1700_v45, %v1693_v40 }
 0x112   : > { %v613_v51 = vpop.f32.mrb[13].mxu0  ;;  %1336 = vst [vmem:[%s1656_s29 + $0x68] sm:$0xff] %v1297_v5   ;;  %v743_v6 = vmul.f32 %v1393_v47, %v1393_v47  ;;  %v754_v5 = vmul.f32 %v1700_v45, %v1700_v45 }
 0x113   : > { %v703_v52 = vadd.f32 %v702_v49, %v613_v51  ;;  %v741_v53 = vmul.f32 %v613_v51, %v613_v51  ;;  %v771_v56 = vadd.f32 %v770_v11, %v740_v46  ;;  %v1394_v57 = vpop.f32.mrb[14].mxu0  ;;  %1335 = vst [vmem:[%s1656_s29 + $0x60] sm:$0xff] %v1292_v50  }
 0x114   : > { %v1267_v58 = vpack.c.bf16 %v1394_v57, %v1393_v47  ;;  %v616_v60 = vpop.f32.mrb[15].mxu0  ;;  %v744_v21 = vmul.f32 %v1394_v57, %v1394_v57 }
 0x115   : > { %v772_v62 = vadd.f32 %v771_v56, %v741_v53  ;;  %v704_v63 = vadd.f32 %v703_v52, %v616_v60  ;;  %v742_v0 = vmul.f32 %v616_v60, %v616_v60  ;;  %v1262_v1 = vpack.c.bf16 %v616_v60, %v613_v51  ;;  %v1409_v2 = vpop.f32.mrb[12].mxu1 }
 0x116   : > { %1330 = vst [vmem:[%s1656_s29 + $0x38] sm:$0xff] %v1267_v58   ;;  %v677_v3 = vpop.f32.mrb[13].mxu1  ;;  %v759_v56 = vmul.f32 %v1409_v2, %v1409_v2 }
 0x117   : > { %v705_v8 = vadd.f32 %v1393_v47, %v704_v63  ;;  %v773_v9 = vadd.f32 %v772_v62, %v742_v0  ;;  %1329 = vst [vmem:[%s1656_s29 + $0x30] sm:$0xff] %v1262_v1   ;;  %v1410_v14 = vpop.f32.mrb[14].mxu1  ;;  %v757_v49 = vmul.f32 %v677_v3, %v677_v3 }
 0x118   : > { %v1307_v18 = vpack.c.bf16 %v1410_v14, %v1409_v2  ;;  %v680_v19 = vpop.f32.mrb[15].mxu1  ;;  %v760_v60 = vmul.f32 %v1410_v14, %v1410_v14 }
 0x119   : > { %v774_v22 = vadd.f32 %v773_v9, %v743_v6  ;;  %v706_v15 = vadd.f32 %v1394_v57, %v705_v8  ;;  %v1302_v24 = vpack.c.bf16 %v680_v19, %v677_v3 }
 0x11a   : > { %1338 = vst [vmem:[%s1656_s29 + $0x78] sm:$0xff] %v1307_v18  }
 0x11b   : > { %v707_v25 = vadd.f32 %v706_v15, %v1661_v55  ;;  %v775_v10 = vadd.f32 %v774_v22, %v744_v21  ;;  %1337 = vst [vmem:[%s1656_s29 + $0x70] sm:$0xff] %v1302_v24  }
 0x11d   : > { %v776_v27 = vadd.f32 %v775_v10, %v745_v17  ;;  %v708_v7 = vadd.f32 %v707_v25, %v1668_v61 }
 0x11f   : > { %v709_v16 = vadd.f32 %v1658_v54, %v708_v7  ;;  %v777_v20 = vadd.f32 %v776_v27, %v746_v28  ;;  %v751_v54 = vmul.f32 %v1674_v23, %v1674_v23 }
 0x121   : > { %v778_v4 = vadd.f32 %v777_v20, %v747_v29  ;;  %v710_v55 = vadd.f32 %v1664_v59, %v709_v16  ;;  %v752_v59 = vmul.f32 %v1680_v26, %v1680_v26 }
 0x123   : > { %v711_v32 = vadd.f32 %v710_v55, %v1677_v12  ;;  %v779_v33 = vadd.f32 %v778_v4, %v748_v30  ;;  %v753_v12 = vmul.f32 %v1693_v40, %v1693_v40 }
 0x125   : > { %v780_v34 = vadd.f32 %v779_v33, %v749_v31  ;;  %v712_v61 = vadd.f32 %v711_v32, %v1684_v48 }
 0x127   : > { %v713_v36 = vadd.f32 %v1674_v23, %v712_v61  ;;  %v781_v37 = vadd.f32 %v780_v34, %v750_v35  ;;  %v755_v23 = vmul.f32 %v1690_v13, %v1690_v13 }
 0x129   : > { %v782_v38 = vadd.f32 %v781_v37, %v751_v54  ;;  %v714_v39 = vadd.f32 %v1680_v26, %v713_v36  ;;  %v756_v26 = vmul.f32 %v1696_v44, %v1696_v44 }
 0x12b   : > { %v715_v41 = vadd.f32 %v714_v39, %v1693_v40  ;;  %v783_v42 = vadd.f32 %v782_v38, %v752_v59 }
 0x12d   : > { %v784_v43 = vadd.f32 %v783_v42, %v753_v12  ;;  %v716_v48 = vadd.f32 %v715_v41, %v1700_v45  ;;  %v758_v45 = vmul.f32 %v680_v19, %v680_v19 }
 0x12f   : > { %v717_v46 = vadd.f32 %v1690_v13, %v716_v48  ;;  %v785_v11 = vadd.f32 %v784_v43, %v754_v5 }
 0x131   : > { %v786_v47 = vadd.f32 %v785_v11, %v755_v23  ;;  %v718_v40 = vadd.f32 %v1696_v44, %v717_v46 }
 0x133   : > { %v719_v50 = vadd.f32 %v718_v40, %v677_v3  ;;  %v787_v51 = vadd.f32 %v786_v47, %v756_v26 }
 0x135   : > { %v788_v52 = vadd.f32 %v787_v51, %v757_v49  ;;  %v720_v53 = vadd.f32 %v719_v50, %v680_v19 }
 0x137   : > { %v721_v57 = vadd.f32 %v1409_v2, %v720_v53  ;;  %v789_v58 = vadd.f32 %v788_v52, %v758_v45 }
 0x139   : > { %v722_v13 = vadd.f32 %v1410_v14, %v721_v57  ;;  %v790_v62 = vadd.f32 %v789_v58, %v759_v56 }
 0x13b   : > { %v723_v63 = vrot.slane %v722_v13, 4  ;;  %v791_v0 = vadd.f32 %v790_v62, %v760_v60 }
 0x13d   : > { %v724_v1 = vadd.f32 %v723_v63, %v722_v13  ;;  %v792_v6 = vrot.slane %v791_v0, 4 }
 0x13f   : > { %v725_v44 = vrot.slane %v724_v1, 2  ;;  %v793_v8 = vadd.f32 %v792_v6, %v791_v0 }
 0x141   : > { %v726_v3 = vadd.f32 %v725_v44, %v724_v1  ;;  %v794_v9 = vrot.slane %v793_v8, 2 }
 0x143   : > { %v727_v17 = vrot.slane %v726_v3, 1  ;;  %v795_v18 = vadd.f32 %v794_v9, %v793_v8 }
 0x145   : > { %v728_v2 = vadd.f32 %v727_v17, %v726_v3  ;;  %v796_v19 = vrot.slane %v795_v18, 1 }
 0x147   : > { %v797_v14 = vadd.f32 %v796_v19, %v795_v18  ;;  %798 = vst [vmem:[%s271_s8] sm:$0xff] %v728_v2 }
 0x149   : > { %799 = vst [vmem:[%s275_s11] sm:$0xff] %v797_v14 }
 0x14a PF: > { %s17_s21 = sadd.s32 1, %s1449_s21  }
 0x14b   : > { %p14_p5 = scmp.ge.s32.totalorder %s17_s21, 4  }
 0x14d   :  { %16 = sbr.rel (!%p14_p5) target bundleno = 1 (0x1), region = 90 }

// kernel: identity_bottleneck_nhwc.5
= control target key start
LH: loop header
LB: loop body
LE: loop exit
PB: predicated region body
PF: predicated region fallthrough
CT: control target
= control target key end

     0   :  { %s6025_s21 = smov 0   ;;  %s7362_s0 = inlined_call_operand.vmem [shape: bf16[2,16,16,128], index: 0, kind: input, shape index: {}]   ;;  %s7363_s1 = inlined_call_operand.vmem [shape: f32[1,128], index: 1, kind: input, shape index: {}]   ;;  %s7364_s2 = inlined_call_operand.vmem [shape: f32[1,128], index: 2, kind: input, shape index: {}]   ;;  %s7365_s3 = inlined_call_operand.vmem [shape: bf16[3,384,128], index: 3, kind: input, shape index: {}]   ;;  %s7366_s4 = inlined_call_operand.vmem [shape: bf16[2,16,16,128], index: 4, kind: output, shape index: {0}]   ;;  %s7367_s5 = inlined_call_operand.vmem [shape: f32[2,8,128], index: 5, kind: output, shape index: {1}]   ;;  %s7368_s6 = inlined_call_operand.vmem [shape: f32[2,8,128], index: 6, kind: output, shape index: {2}]  }
   0x1 LB: > { %s4457_s22 = sadd.s32 4294967295, %s5987_s21   ;;  %p4461_p0 = scmp.ge.s32.totalorder %s5987_s21, 1  ;;  %s5987_s21 = sphi %s6025_s21, %s17_s21  }
   0x2   : > { %p217_p1 = scmp.lt.s32.totalorder %s5987_s21, 3 }
   0x4   : > { %p218_p2 = pnand %p4461_p0, %p217_p1 }
   0x6   : > { %221 = sbr.rel (%p218_p2) target bundleno = 638 (0x27e), region = 36 }
   0xd   : > { %v6036_v0 = vld [vmem:[%s7365_s3 + $0x140] sm:$0xff]   ;;  %v6049_v3 = vld [vmem:[%s7365_s3 + $0x148] sm:$0xff]   ;;  %v6061_v6 = vld [vmem:[%s7365_s3 + $0x150] sm:$0xff]   ;;  %v5989_v8 = vmov 0   ;;  %p255_p3 = scmp.lt.s32.totalorder %s4457_s22, 1  ;;  %vm471_vm0 = vcmask 1040384  }
   0xe   : > { %v5778_v1 = vld [vmem:[%s7365_s3 + $0x100] sm:$0xff]   ;;  %5592 = vmatprep.subr.bf16.mxu1 %v6036_v0  ;;  %v5781_v4 = vld [vmem:[%s7365_s3 + $0x108] sm:$0xff]   ;;  %v5784_v7 = vld [vmem:[%s7365_s3 + $0x110] sm:$0xff]   ;;  %464 = vst [vmem:[#allocation2] sm:$0xf] %v5989_v8  ;;  %vm987_vm6 = vcmask 1043456  }
   0xf   : > { %v5779_v2 = vld [vmem:[%s7365_s3 + $0xc0] sm:$0xff]   ;;  %5600 = vmatpush3.bf16.msra.mxu1 %v6036_v0  ;;  %5040 = vmatprep.subr.bf16.mxu0 %v5778_v1  ;;  %v5782_v5 = vld [vmem:[%s7365_s3 + $0xc8] sm:$0xff]   ;;  %465 = vst [vmem:[#allocation2 + $0x4] sm:$0xf] %v5989_v8  ;;  %466 = vst [vmem:[#allocation2 + $0x8] sm:$0x1] %v5989_v8 }
  0x10   : > { %5041 = vmatpush3.bf16.msra.mxu0 %v5779_v2  ;;  %5593 = vmatprep.subr.bf16.mxu1 %v6049_v3  ;;  %468 = vst [vmem:[#allocation2 + $0xcc] sm:$0xf] %v5989_v8  ;;  %469 = vst [vmem:[#allocation2 + $0xd0] sm:$0xf] %v5989_v8  ;;  %v5785_v9 = vld [vmem:[%s7365_s3 + $0xd0] sm:$0xff]   ;;  %v6074_v10 = vld [vmem:[%s7365_s3 + $0x158] sm:$0xff]  }
  0x11   : > { %5042 = vmatprep.subr.bf16.mxu0 %v5781_v4  ;;  %470 = vst [vmem:[#allocation2 + $0xd4] sm:$0x1] %v5989_v8  ;;  %v5787_v11 = vld [vmem:[%s7365_s3 + $0x118] sm:$0xff]   ;;  %v6089_v13 = vld [vmem:[%s7365_s3 + $0x160] sm:$0xff]   ;;  %s7382_s22 = smov (!%p255_p3, %s4457_s22), 1  ;;  %v5792_v16 = vld [vmem:[%s7365_s3 + $0x168] sm:$0xff]  }
  0x12   : > { %v5788_v12 = vld [vmem:[%s7365_s3 + $0xd8] sm:$0xff]   ;;  %v5790_v14 = vld [vmem:[%s7365_s3 + $0x120] sm:$0xff]   ;;  %v5793_v17 = vld [vmem:[%s7365_s3 + $0x128] sm:$0xff]   ;;  %s4800_s11 = sshll.u32 %s7382_s22, 7  ;;  %vm472_vm1 = vsmask.f32 256 }
  0x13   : > { %5601 = vmatpush3.bf16.msra.mxu1 %v6049_v3  ;;  %v5791_v15 = vld [vmem:[%s7365_s3 + $0xe0] sm:$0xff]   ;;  %v5794_v18 = vld [vmem:[%s7365_s3 + $0xe8] sm:$0xff]   ;;  %v5795_v19 = vld [vmem:[%s7365_s3 + $0x170] sm:$0xff]   ;;  %s6122_s18 = scalar_lea.vmem %s7362_s0, %s4800_s11  ;;  %vm528_vm2 = vsmask.f32 7938  ;;  %vm1502_vm9 = vcmask 1046528   ;;  %s7304_s20 = scalar_lea.vmem %s7366_s4, %s4800_s11 }
  0x14   : > { %5043 = vmatpush3.bf16.msra.mxu0 %v5782_v5  ;;  %5594 = vmatprep.subr.bf16.mxu1 %v6061_v6  ;;  %v5796_v20 = vld [vmem:[%s7365_s3 + $0x130] sm:$0xff]   ;;  %v5798_v22 = vld [vmem:[%s7365_s3 + $0x178] sm:$0xff]   ;;  %v5017_v24 = vld [vmem:[%s6122_s18 + $0x40] sm:$0xff]   ;;  %vm664_vm5 = vsmask.f32 4368  ;;  %s4466_s11 = sshll.u32 %s7382_s22, 3 }
  0x15   : > { %5044 = vmatprep.subr.bf16.mxu0 %v5784_v7  ;;  %v5797_v21 = vld [vmem:[%s7365_s3 + $0xf0] sm:$0xff]   ;;  %v5799_v23 = vld [vmem:[%s7365_s3 + $0x138] sm:$0xff]   ;;  %v6140_v25 = vld [vmem:[%s7363_s1] ss:$0 sm:$0xff]  ;;  %v4900_v27 = vunpack.c.l.bf16 %v5017_v24  ;;  %v4901_v28 = vunpack.c.h.bf16 %v5017_v24  ;;  %vm1293_vm10 = vsmask.f32 7424  ;;  %s268_s25 = scalar_lea.vmem %s7367_s5, %s4466_s11  ;;  %s272_s27 = scalar_lea.vmem %s7368_s6, %s4466_s11 }
  0x16   : > { %v6145_v26 = vld [vmem:[%s7364_s2] ss:$0 sm:$0xff]  ;;  %v501_v29 = vld [vmem:[#allocation2 + $0x6c] sm:$0x1]  ;;  %vm6149_vm3 = vmand %vm471_vm0, %vm472_vm1 }
  0x17   : > { %5602 = vmatpush3.bf16.msra.mxu1 %v6061_v6  ;;  %v557_v31 = vld [vmem:[#allocation2 + $0x74] sm:$0x1]  ;;  %v361_v32 = vmul.f32 %v4900_v27, %v6140_v25  ;;  %v362_v33 = vmul.f32 %v4901_v28, %v6140_v25  ;;  %v502_v34 = vsel %vm6149_vm3, 0, %v501_v29  ;;  %vm6159_vm4 = vmand %vm471_vm0, %vm528_vm2  ;;  %v5018_v37 = vld [vmem:[%s6122_s18 + $0x48] sm:$0xff]  }
  0x18   : > { %5045 = vmatpush3.bf16.msra.mxu0 %v5785_v9  ;;  %5595 = vmatprep.subr.bf16.mxu1 %v6074_v10  ;;  %503 = vst [vmem:[#allocation2 + $0x6c] sm:$0x1] %v502_v34  ;;  %v558_v36 = vsel %vm6159_vm4, 0, %v557_v31  ;;  %v504_v38 = vld [vmem:[#allocation2 + $0x78] sm:$0x1]  ;;  %v4904_v42 = vunpack.c.l.bf16 %v5018_v37  ;;  %v4905_v43 = vunpack.c.h.bf16 %v5018_v37  ;;  %v5805_v47 = vld [vmem:[%s7365_s3 + $0x40] sm:$0xff]   ;;  %vm6193_vm7 = vmor %vm472_vm1, %vm664_vm5 }
  0x19   : > { %5046 = vmatprep.subr.bf16.mxu0 %v5787_v11  ;;  %v400_v39 = vadd.f32 %v6145_v26, %v361_v32  ;;  %v401_v40 = vadd.f32 %v6145_v26, %v362_v33  ;;  %559 = vst [vmem:[#allocation2 + $0x74] sm:$0x1] %v558_v36  ;;  %v5802_v41 = vld [vmem:[%s7365_s3 + $0xf8] sm:$0xff]   ;;  %v560_v44 = vld [vmem:[#allocation2 + $0x80] sm:$0x1]  ;;  %v505_v45 = vsel %vm6149_vm3, 0, %v504_v38  ;;  %vm6199_vm8 = vmand %vm987_vm6, %vm528_vm2 }
  0x1a   : > { %v561_v46 = vsel %vm6159_vm4, 0, %v560_v44  ;;  %v363_v50 = vmul.f32 %v4904_v42, %v6140_v25  ;;  %v364_v51 = vmul.f32 %v4905_v43, %v6140_v25  ;;  %506 = vst [vmem:[#allocation2 + $0x78] sm:$0x1] %v505_v45  ;;  %v4867_v52 = vld [vmem:[%s6122_s18] sm:$0xff]   ;;  %v477_v53 = vld [vmem:[#allocation2 + $0xc] sm:$0x1] }
  0x1b   : > { %5603 = vmatpush3.bf16.msra.mxu1 %v6074_v10  ;;  %v432_v48 = vmax.f32 %v400_v39, 0.0  ;;  %v433_v49 = vmax.f32 %v401_v40, 0.0  ;;  %562 = vst [vmem:[#allocation2 + $0x80] sm:$0x1] %v561_v46  ;;  %v533_v54 = vld [vmem:[#allocation2 + $0x14] sm:$0x1]  ;;  %v4868_v59 = vunpack.c.l.bf16 %v4867_v52  ;;  %v4869_v60 = vunpack.c.h.bf16 %v4867_v52 }
  0x1c   : > { %5047 = vmatpush3.bf16.msra.mxu0 %v5788_v12  ;;  %5596 = vmatprep.subr.bf16.mxu1 %v6089_v13  ;;  %v402_v57 = vadd.f32 %v6145_v26, %v363_v50  ;;  %v403_v58 = vadd.f32 %v6145_v26, %v364_v51  ;;  %v478_v61 = vsel %vm6149_vm3, 0, %v477_v53  ;;  %v534_v62 = vsel %vm6159_vm4, 0, %v533_v54  ;;  %v5019_v11 = vld [vmem:[%s6122_s18 + $0x50] sm:$0xff]   ;;  %v507_v32 = vld [vmem:[#allocation2 + $0x84] sm:$0x1]  ;;  %v5899_v30 = vld [vmem:[%s7365_s3 + $0x1e8] sm:$0xff]  }
  0x1d   : > { %5048 = vmatprep.subr.bf16.mxu0 %v5790_v14  ;;  %v4818_v55 = vpack.c.bf16 %v432_v48, %v432_v48  ;;  %v4819_v56 = vpack.c.bf16 %v433_v49, %v433_v49  ;;  %479 = vst [vmem:[#allocation2 + $0xc] sm:$0x1] %v478_v61  ;;  %535 = vst [vmem:[#allocation2 + $0x14] sm:$0x1] %v534_v62  ;;  %v345_v8 = vmul.f32 %v4868_v59, %v6140_v25  ;;  %v563_v33 = vld [vmem:[#allocation2 + $0x8c] sm:$0x1] }
  0x1e   : > { %v434_v5 = vmax.f32 %v402_v57, 0.0  ;;  %v435_v7 = vmax.f32 %v403_v58, 0.0  ;;  %v346_v9 = vmul.f32 %v4869_v60, %v6140_v25  ;;  %v508_v51 = vsel %vm6149_vm3, 0, %v507_v32  ;;  %v510_v57 = vld [vmem:[#allocation2 + $0x90] sm:$0x1]  ;;  %v5020_v62 = vld [vmem:[%s6122_s18 + $0x58] sm:$0xff]  }
  0x1f   : > { %5604 = vmatpush3.bf16.msra.mxu1 %v6089_v13  ;;  %v803_v63 = vshrl.u32 %v4818_v55, 16  ;;  %v806_v1 = vshll.u32 %v4818_v55, 16  ;;  %v811_v2 = vshrl.u32 %v4819_v56, 16  ;;  %v814_v4 = vshll.u32 %v4819_v56, 16  ;;  %509 = vst [vmem:[#allocation2 + $0x84] sm:$0x1] %v508_v51 }
  0x20   : > { %5049 = vmatpush3.bf16.msra.mxu0 %v5791_v15  ;;  %5597 = vmatprep.subr.bf16.mxu1 %v5792_v16  ;;  %v385_v24 = vadd.f32 %v6145_v26, %v346_v9  ;;  %v564_v52 = vsel %vm6159_vm4, 0, %v563_v33 }
  0x21   : > { %5050 = vmatprep.subr.bf16.mxu0 %v5793_v17  ;;  %v805_v14 = vrot.slane %v803_v63, 7  ;;  %v813_v15 = vrot.slane %v811_v2, 7  ;;  %v4909_v17 = vunpack.c.h.bf16 %v5019_v11  ;;  %v1052_v45 = vld [vmem:[#allocation2 + $0x78] sm:$0xf]  ;;  %565 = vst [vmem:[#allocation2 + $0x8c] sm:$0x1] %v564_v52 }
  0x22   : > { %v417_v46 = vmax.f32 %v385_v24, 0.0  ;;  %v1056_v48 = vld [vmem:[#allocation2 + $0x80] sm:$0x1]  ;;  %v6220_v63 = vld [vmem:[%s6122_s18 + $0x8] sm:$0xff]  }
  0x23   : > { %5605 = vmatpush3.bf16.msra.mxu1 %v5792_v16  ;;  %v4908_v16 = vunpack.c.l.bf16 %v5019_v11  ;;  %v808_v27 = vor.u32 %v806_v1, %v805_v14  ;;  %v809_v28 = vrot.slane %v805_v14, 4  ;;  %v816_v29 = vor.u32 %v814_v4, %v813_v15 }
  0x24   : > { %5051 = vmatpush3.bf16.msra.mxu0 %v5794_v18  ;;  %5598 = vmatprep.subr.bf16.mxu1 %v5795_v19  ;;  %v818_v31 = vrot.slane %v813_v15, 4  ;;  %v366_v50 = vmul.f32 %v4909_v17, %v6140_v25  ;;  %v4803_v58 = vpack.c.bf16 %v417_v46, %v417_v46  ;;  %v989_v14 = vld [vmem:[#allocation2 + $0xc] sm:$0xf]  ;;  %v4913_v17 = vunpack.c.h.bf16 %v5020_v62 }
  0x25   : > { %5052 = vmatprep.subr.bf16.mxu0 %v5796_v20  ;;  %v1049_v20 = vld [vmem:[#allocation2 + $0x74] sm:$0x1]  ;;  %v817_v39 = vsel %vm6193_vm7, %v809_v28, %v816_v29 }
  0x26   : > { %1048 = vst [vmem:[#allocation2 + $0x70] sm:$0xf] %v817_v39  ;;  %v678_v9 = vshll.u32 %v4803_v58, 16 }
  0x27   : > { %5606 = vmatpush3.bf16.msra.mxu1 %v5795_v19  ;;  %v1045_v19 = vld [vmem:[#allocation2 + $0x6c] sm:$0xf] }
  0x28   : > { %5053 = vmatpush3.bf16.msra.mxu0 %v5797_v21  ;;  %5599 = vmatprep.subr.bf16.mxu1 %v5798_v22  ;;  %v4820_v21 = vpack.c.bf16 %v434_v5, %v434_v5  ;;  %v1046_v40 = vsel %vm6199_vm8, %v808_v27, %v1045_v19  ;;  %v405_v5 = vadd.f32 %v6145_v26, %v366_v50  ;;  %v511_v19 = vsel %vm6149_vm3, 0, %v510_v57 }
  0x29   : > { %5054 = vmatprep.subr.bf16.mxu0 %v5799_v23  ;;  %v384_v23 = vadd.f32 %v6145_v26, %v345_v8  ;;  %1047 = vst [vmem:[#allocation2 + $0x6c] sm:$0xf] %v1046_v40  ;;  %v675_v8 = vshrl.u32 %v4803_v58, 16  ;;  %512 = vst [vmem:[#allocation2 + $0x90] sm:$0x1] %v511_v19 }
  0x2a   : > { %v820_v34 = vshrl.u32 %v4820_v21, 16  ;;  %v823_v36 = vshll.u32 %v4820_v21, 16  ;;  %v437_v15 = vmax.f32 %v405_v5, 0.0  ;;  %v536_v5 = vld [vmem:[#allocation2 + $0x20] sm:$0x1] }
  0x2b   : > { %5607 = vmatpush3.bf16.msra.mxu1 %v5798_v22  ;;  %v4821_v22 = vpack.c.bf16 %v435_v7, %v435_v7  ;;  %v416_v42 = vmax.f32 %v384_v23, 0.0  ;;  %v4873_v23 = vunpack.c.h.bf16 %v6220_v63  ;;  %v677_v29 = vrot.slane %v675_v8, 7 }
  0x2c   : > { %5055 = vmatpush3.bf16.msra.mxu0 %v5802_v41  ;;  %5176 = vmatprep.subr.bf16.mxu1 %v5805_v47  ;;  %v1050_v41 = vsel %vm6149_vm3, %v818_v31, %v1049_v20  ;;  %v822_v43 = vrot.slane %v820_v34, 7  ;;  %v365_v47 = vmul.f32 %v4908_v16, %v6140_v25  ;;  %v4912_v16 = vunpack.c.l.bf16 %v5020_v62  ;;  %v993_v34 = vld [vmem:[#allocation2 + $0x14] sm:$0x1] }
  0x2d   : > { %5448 = vmatprep.subr.bf16.mxu0 %v6036_v0  ;;  %v828_v37 = vshrl.u32 %v4821_v22, 16  ;;  %v831_v38 = vshll.u32 %v4821_v22, 16  ;;  %1051 = vst [vmem:[#allocation2 + $0x74] sm:$0x1] %v1050_v41  ;;  %v4802_v49 = vpack.c.bf16 %v416_v42, %v416_v42  ;;  %v4872_v22 = vunpack.c.l.bf16 %v6220_v63 }
  0x2e   : > { %v825_v53 = vor.u32 %v823_v36, %v822_v43  ;;  %v826_v54 = vrot.slane %v822_v43, 4  ;;  %v404_v61 = vadd.f32 %v6145_v26, %v365_v47  ;;  %v4823_v31 = vpack.c.bf16 %v437_v15, %v437_v15  ;;  %v566_v43 = vld [vmem:[#allocation2 + $0x98] sm:$0x1]  ;;  %v1059_v47 = vld [vmem:[#allocation2 + $0x84] sm:$0xf] }
  0x2f   : > { %v830_v44 = vrot.slane %v828_v37, 7  ;;  %v667_v59 = vshrl.u32 %v4802_v49, 16  ;;  %v670_v60 = vshll.u32 %v4802_v49, 16  ;;  %v367_v32 = vmul.f32 %v4912_v16, %v6140_v25 }
  0x30   : > { %v1053_v2 = vsel %vm6199_vm8, %v825_v53, %v1052_v45  ;;  %v436_v11 = vmax.f32 %v404_v61, 0.0  ;;  %v5800_v24 = vld [vmem:[#allocation2 + $0x6c] sm:$0xff]   ;;  %v680_v41 = vor.u32 %v678_v9, %v677_v29  ;;  %v682_v42 = vrot.slane %v677_v29, 4 }
  0x31   : > { %v833_v55 = vor.u32 %v831_v38, %v830_v44  ;;  %v835_v56 = vrot.slane %v830_v44, 4  ;;  %1054 = vst [vmem:[#allocation2 + $0x78] sm:$0xf] %v1053_v2  ;;  %v669_v7 = vrot.slane %v667_v59, 7  ;;  %v368_v38 = vmul.f32 %v4913_v17, %v6140_v25  ;;  %v1063_v61 = vld [vmem:[#allocation2 + $0x8c] sm:$0x1] }
  0x32   : > { %v4822_v21 = vpack.c.bf16 %v436_v11, %v436_v11  ;;  %v2039_v39 = vrot.slane %v5800_v24, 1  ;;  %v845_v45 = vshrl.u32 %v4823_v31, 16  ;;  %v848_v46 = vshll.u32 %v4823_v31, 16 }
  0x33   : > { %v834_v1 = vsel %vm6193_vm7, %v826_v54, %v833_v55  ;;  %v1057_v4 = vsel %vm6149_vm3, %v835_v56, %v1056_v48  ;;  %v672_v20 = vor.u32 %v670_v60, %v669_v7  ;;  %v673_v28 = vrot.slane %v669_v7, 4  ;;  %v5806_v55 = vld [vmem:[%s7365_s3] sm:$0xff]   ;;  %v5809_v60 = vld [vmem:[%s7365_s3 + $0x48] sm:$0xff]  }
  0x34   : > { %1055 = vst [vmem:[#allocation2 + $0x7c] sm:$0xf] %v834_v1  ;;  %1058 = vst [vmem:[#allocation2 + $0x80] sm:$0x1] %v1057_v4  ;;  %v837_v36 = vshrl.u32 %v4822_v21, 16  ;;  %v840_v37 = vshll.u32 %v4822_v21, 16  ;;  %v406_v48 = vadd.f32 %v6145_v26, %v367_v32  ;;  %v994_v51 = vsel %vm6149_vm3, %v682_v42, %v993_v34 }
  0x35   : > { %v5801_v27 = vld [vmem:[#allocation2 + $0x74] ss:$0 sps:$4 sm:$0x11]   ;;  %v990_v33 = vsel %vm6199_vm8, %v672_v20, %v989_v14  ;;  %v681_v50 = vsel %vm6193_vm7, %v673_v28, %v680_v41  ;;  %v407_v52 = vadd.f32 %v6145_v26, %v368_v38  ;;  %995 = vst [vmem:[#allocation2 + $0x14] sm:$0x1] %v994_v51  ;;  %v847_v58 = vrot.slane %v845_v45, 7 }
  0x36   : > { %v2040_v40 = vrot.slane %v5801_v27, 1  ;;  %991 = vst [vmem:[#allocation2 + $0xc] sm:$0xf] %v990_v33  ;;  %v839_v44 = vrot.slane %v837_v36, 7  ;;  %992 = vst [vmem:[#allocation2 + $0x10] sm:$0xf] %v681_v50  ;;  %v347_v59 = vmul.f32 %v4872_v22, %v6140_v25  ;;  %v348_v2 = vmul.f32 %v4873_v23, %v6140_v25 }
  0x37   : > { %v438_v62 = vmax.f32 %v406_v48, 0.0  ;;  %v439_v63 = vmax.f32 %v407_v52, 0.0  ;;  %v567_v1 = vsel %vm6159_vm4, 0, %v566_v43  ;;  %v480_v4 = vld [vmem:[#allocation2 + $0x18] sm:$0x1]  ;;  %v850_v9 = vor.u32 %v848_v46, %v847_v58  ;;  %v6255_v14 = vld [vmem:[%s6122_s18 + $0x60] sm:$0xff]  }
  0x38   : > { %v2041_v49 = vsel %vm1502_vm9, %v2039_v39, %v2040_v40  ;;  %v842_v56 = vor.u32 %v840_v37, %v839_v44  ;;  %v843_v57 = vrot.slane %v839_v44, 4  ;;  %v852_v11 = vrot.slane %v847_v58, 4  ;;  %568 = vst [vmem:[#allocation2 + $0x98] sm:$0x1] %v567_v1  ;;  %v5810_v21 = vld [vmem:[%s7365_s3 + $0x8] sm:$0xff]   ;;  %v5815_v34 = vld [vmem:[%s7365_s3 + $0x50] sm:$0xff]  }
  0x39   : > { %5480 = vmatprep.mubr.bf16.mxu1 %v2041_v49  ;;  %v4824_v16 = vpack.c.bf16 %v438_v62, %v438_v62  ;;  %v4825_v17 = vpack.c.bf16 %v439_v63, %v439_v63  ;;  %v386_v19 = vadd.f32 %v6145_v26, %v347_v59  ;;  %v387_v24 = vadd.f32 %v6145_v26, %v348_v2  ;;  %v513_v27 = vld [vmem:[#allocation2 + $0x9c] sm:$0x1]  ;;  %v6270_v28 = vld [vmem:[%s6122_s18 + $0x68] sm:$0xff]   ;;  %v1066_v36 = vld [vmem:[#allocation2 + $0x90] sm:$0xf] }
  0x3a   : > { %v1060_v15 = vsel %vm6199_vm8, %v842_v56, %v1059_v47  ;;  %v851_v22 = vsel %vm6193_vm7, %v843_v57, %v850_v9  ;;  %v1064_v23 = vsel %vm6149_vm3, %v852_v11, %v1063_v61  ;;  %v481_v39 = vsel %vm6149_vm3, 0, %v480_v4  ;;  %v569_v56 = vld [vmem:[#allocation2 + $0xa4] sm:$0x1]  ;;  %v5819_v4 = vld [vmem:[%s7365_s3 + $0x58] sm:$0xff]  }
  0x3b   : > { %v5803_v53 = vld [vmem:[#allocation2 + $0x78] sm:$0xff]   ;;  %v5804_v54 = vld [vmem:[#allocation2 + $0x80] ss:$0 sps:$4 sm:$0x11]   ;;  %1061 = vst [vmem:[#allocation2 + $0x84] sm:$0xf] %v1060_v15  ;;  %v4916_v43 = vunpack.c.l.bf16 %v6255_v14  ;;  %v4917_v44 = vunpack.c.h.bf16 %v6255_v14  ;;  %v4920_v45 = vunpack.c.l.bf16 %v6270_v28 }
  0x3c   : > { %v2042_v7 = vrot.slane %v5803_v53, 1  ;;  %v2043_v8 = vrot.slane %v5804_v54, 1  ;;  %1062 = vst [vmem:[#allocation2 + $0x88] sm:$0xf] %v851_v22  ;;  %1065 = vst [vmem:[#allocation2 + $0x8c] sm:$0x1] %v1064_v23 }
  0x3d   : > { %v854_v29 = vshrl.u32 %v4824_v16, 16  ;;  %v857_v31 = vshll.u32 %v4824_v16, 16  ;;  %v862_v32 = vshrl.u32 %v4825_v17, 16  ;;  %v865_v33 = vshll.u32 %v4825_v17, 16  ;;  %v6279_v41 = vld [vmem:[#allocation2 + $0xc] sm:$0xff]  }
  0x3e   : > { %v2044_v20 = vsel %vm1502_vm9, %v2042_v7, %v2043_v8  ;;  %v418_v37 = vmax.f32 %v386_v19, 0.0  ;;  %v419_v38 = vmax.f32 %v387_v24, 0.0  ;;  %v537_v40 = vsel %vm6159_vm4, 0, %v536_v5  ;;  %482 = vst [vmem:[#allocation2 + $0x18] sm:$0x1] %v481_v39 }
  0x3f   : > { %5481 = vmatmul.mubr.bf16.vlgmr.msra.gmra.mrb[0].mxu1 %v2044_v20  ;;  %v856_v42 = vrot.slane %v854_v29, 7  ;;  %538 = vst [vmem:[#allocation2 + $0x20] sm:$0x1] %v537_v40  ;;  %v5808_v46 = vld [vmem:[#allocation2 + $0x14] ss:$0 sps:$4 sm:$0x11]   ;;  %v369_v11 = vmul.f32 %v4916_v43, %v6140_v25  ;;  %v370_v23 = vmul.f32 %v4917_v44, %v6140_v25 }
  0x40   : > { %5177 = vmatpush3.bf16.msra.mxu1 %v5806_v55  ;;  %v864_v47 = vrot.slane %v862_v32, 7  ;;  %v4804_v48 = vpack.c.bf16 %v418_v37, %v418_v37  ;;  %v4805_v49 = vpack.c.bf16 %v419_v38, %v419_v38  ;;  %v514_v50 = vsel %vm6149_vm3, 0, %v513_v27  ;;  %v1070_v55 = vld [vmem:[#allocation2 + $0x98] sm:$0x1]  ;;  %v516_v29 = vld [vmem:[#allocation2 + $0xa8] sm:$0x1] }
  0x41   : > { %5178 = vmatprep.subr.bf16.mxu1 %v5809_v60  ;;  %v1808_v51 = vshrl.u32 %v6279_v41, 16  ;;  %v1810_v52 = vshll.u32 %v6279_v41, 16  ;;  %v859_v53 = vor.u32 %v857_v31, %v856_v42  ;;  %v860_v54 = vrot.slane %v856_v42, 4  ;;  %515 = vst [vmem:[#allocation2 + $0x9c] sm:$0x1] %v514_v50  ;;  %v5816_v60 = vld [vmem:[%s7365_s3 + $0x10] sm:$0xff]  }
  0x42   : > { %v1815_v57 = vshll.u32 %v5808_v46, 16  ;;  %v867_v58 = vor.u32 %v865_v33, %v864_v47  ;;  %v869_v59 = vrot.slane %v864_v47, 4  ;;  %v684_v61 = vshrl.u32 %v4804_v48, 16  ;;  %v5820_v20 = vld [vmem:[%s7365_s3 + $0x18] sm:$0xff]   ;;  %v572_v42 = vld [vmem:[#allocation2 + $0xb0] sm:$0x1] }
  0x43   : > { %v1812_v62 = vrot.slane %v1810_v52, 1  ;;  %v1067_v63 = vsel %vm6199_vm8, %v859_v53, %v1066_v36  ;;  %v687_v1 = vshll.u32 %v4804_v48, 16  ;;  %v692_v2 = vshrl.u32 %v4805_v49, 16  ;;  %v5811_v7 = vld [vmem:[#allocation2 + $0x84] sm:$0xff]   ;;  %v5011_v50 = vld [vmem:[%s6122_s18 + $0x10] sm:$0xff]  }
  0x44   : > { %5179 = vmatpush3.bf16.msra.mxu1 %v5810_v21  ;;  %v1817_v5 = vrot.slane %v1815_v57, 1  ;;  %v868_v8 = vsel %vm6193_vm7, %v860_v54, %v867_v58  ;;  %1068 = vst [vmem:[#allocation2 + $0x90] sm:$0xf] %v1067_v63  ;;  %v1071_v9 = vsel %vm6149_vm3, %v869_v59, %v1070_v55  ;;  %v5812_v15 = vld [vmem:[#allocation2 + $0x8c] ss:$0 sps:$4 sm:$0x11]   ;;  %v408_v24 = vadd.f32 %v6145_v26, %v369_v11 }
  0x45   : > { %5180 = vmatprep.subr.bf16.mxu1 %v5815_v34  ;;  %v1813_v14 = vor.u32 %v1812_v62, %v1808_v51  ;;  %1069 = vst [vmem:[#allocation2 + $0x94] sm:$0xf] %v868_v8  ;;  %1072 = vst [vmem:[#allocation2 + $0x98] sm:$0x1] %v1071_v9  ;;  %v686_v16 = vrot.slane %v684_v61, 7  ;;  %v694_v17 = vrot.slane %v692_v2, 7  ;;  %v409_v39 = vadd.f32 %v6145_v26, %v370_v23 }
  0x46   : > { %v695_v19 = vshll.u32 %v4805_v49, 16  ;;  %v2045_v21 = vrot.slane %v5811_v7, 1  ;;  %v996_v22 = vld [vmem:[#allocation2 + $0x18] sm:$0xf]  ;;  %v570_v27 = vsel %vm6159_vm4, 0, %v569_v56  ;;  %v2046_v32 = vrot.slane %v5812_v15, 1 }
  0x47   : > { %v1818_v31 = vsel %vm1293_vm10, %v1813_v14, %v1817_v5  ;;  %v689_v33 = vor.u32 %v687_v1, %v686_v16  ;;  %v690_v34 = vrot.slane %v686_v16, 4  ;;  %v1000_v36 = vld [vmem:[#allocation2 + $0x20] sm:$0x1]  ;;  %571 = vst [vmem:[#allocation2 + $0xa4] sm:$0x1] %v570_v27  ;;  %v699_v38 = vrot.slane %v694_v17, 4 }
  0x48   : > { %5181 = vmatpush3.bf16.msra.mxu1 %v5816_v60  ;;  %2304 = vmatprep.mubr.bf16.mxu0 %v1818_v31  ;;  %v697_v37 = vor.u32 %v695_v19, %v694_v17  ;;  %v440_v40 = vmax.f32 %v408_v24, 0.0  ;;  %v5825_v43 = vld [vmem:[%s7365_s3 + $0x60] sm:$0xff]   ;;  %v2047_v44 = vsel %vm1502_vm9, %v2045_v21, %v2046_v32  ;;  %v4921_v47 = vunpack.c.h.bf16 %v6270_v28  ;;  %v5829_v28 = vld [vmem:[%s7365_s3 + $0x68] sm:$0xff]   ;;  %v1073_v14 = vld [vmem:[#allocation2 + $0x9c] sm:$0xf] }
  0x49   : > { %5182 = vmatprep.subr.bf16.mxu1 %v5819_v4  ;;  %2305 = vmatmul.mubr.bf16.vlgmr.msra.gmra.mrb[0].mxu0 %v6279_v41  ;;  %v997_v46 = vsel %vm6199_vm8, %v689_v33, %v996_v22  ;;  %v371_v48 = vmul.f32 %v4920_v45, %v6140_v25  ;;  %v5826_v49 = vld [vmem:[%s7365_s3 + $0x20] sm:$0xff]   ;;  %v1001_v52 = vsel %vm6149_vm3, %v699_v38, %v1000_v36  ;;  %v441_v53 = vmax.f32 %v409_v39, 0.0  ;;  %v5830_v19 = vld [vmem:[%s7365_s3 + $0x28] sm:$0xff]  }
  0x4a   : > { %v483_v51 = vld [vmem:[#allocation2 + $0x24] sm:$0x1]  ;;  %5449 = vmatpush3.bf16.msra.mxu0 %v6036_v0  ;;  %5484 = vmatprep.mubr.bf16.mxu1 %v2047_v44  ;;  %v698_v41 = vsel %vm6193_vm7, %v690_v34, %v697_v37  ;;  %998 = vst [vmem:[#allocation2 + $0x18] sm:$0xf] %v997_v46  ;;  %v4826_v54 = vpack.c.bf16 %v440_v40, %v440_v40  ;;  %1002 = vst [vmem:[#allocation2 + $0x20] sm:$0x1] %v1001_v52  ;;  %v4876_v60 = vunpack.c.l.bf16 %v5011_v50 }
  0x4b   : > { %999 = vst [vmem:[#allocation2 + $0x1c] sm:$0xf] %v698_v41  ;;  %v372_v45 = vmul.f32 %v4921_v47, %v6140_v25  ;;  %v410_v0 = vadd.f32 %v6145_v26, %v371_v48  ;;  %v517_v55 = vsel %vm6149_vm3, 0, %v516_v29  ;;  %v573_v56 = vsel %vm6159_vm4, 0, %v572_v42  ;;  %5450 = vmatprep.subr.bf16.mxu0 %v6049_v3  ;;  %v539_v33 = vld [vmem:[#allocation2 + $0x2c] sm:$0x1] }
  0x4c   : > { %5183 = vmatpush3.bf16.msra.mxu1 %v5820_v20  ;;  %v5813_v57 = vld [vmem:[#allocation2 + $0x90] sm:$0xff]   ;;  %v4827_v58 = vpack.c.bf16 %v441_v53, %v441_v53  ;;  %v871_v59 = vshrl.u32 %v4826_v54, 16  ;;  %518 = vst [vmem:[#allocation2 + $0xa8] sm:$0x1] %v517_v55  ;;  %574 = vst [vmem:[#allocation2 + $0xb0] sm:$0x1] %v573_v56  ;;  %v4877_v61 = vunpack.c.h.bf16 %v5011_v50  ;;  %v349_v17 = vmul.f32 %v4876_v60, %v6140_v25 }
  0x4d   : > { %5184 = vmatprep.subr.bf16.mxu1 %v5825_v43  ;;  %v5814_v62 = vld [vmem:[#allocation2 + $0x98] ss:$0 sps:$4 sm:$0x11]   ;;  %v874_v63 = vshll.u32 %v4826_v54, 16  ;;  %v411_v1 = vadd.f32 %v6145_v26, %v372_v45  ;;  %v442_v2 = vmax.f32 %v410_v0, 0.0  ;;  %v484_v4 = vsel %vm6149_vm3, 0, %v483_v51 }
  0x4e   : > { %v2048_v5 = vrot.slane %v5813_v57, 1  ;;  %v873_v7 = vrot.slane %v871_v59, 7  ;;  %v879_v8 = vshrl.u32 %v4827_v58, 16  ;;  %v882_v9 = vshll.u32 %v4827_v58, 16  ;;  %485 = vst [vmem:[#allocation2 + $0x24] sm:$0x1] %v484_v4  ;;  %5451 = vmatpush3.bf16.msra.mxu0 %v6049_v3 }
  0x4f   : > { %v2049_v11 = vrot.slane %v5814_v62, 1  ;;  %v443_v15 = vmax.f32 %v411_v1, 0.0  ;;  %v4828_v16 = vpack.c.bf16 %v442_v2, %v442_v2  ;;  %v5835_v20 = vld [vmem:[%s7365_s3 + $0x70] sm:$0xff]   ;;  %5452 = vmatprep.subr.bf16.mxu0 %v6061_v6  ;;  %v1077_v23 = vld [vmem:[#allocation2 + $0xa4] sm:$0x1]  ;;  %v350_v24 = vmul.f32 %v4877_v61, %v6140_v25  ;;  %v5839_v55 = vld [vmem:[%s7365_s3 + $0x78] sm:$0xff]  }
  0x50   : > { %5185 = vmatpush3.bf16.msra.mxu1 %v5826_v49  ;;  %v876_v21 = vor.u32 %v874_v63, %v873_v7  ;;  %v877_v22 = vrot.slane %v873_v7, 4  ;;  %v881_v3 = vrot.slane %v879_v8, 7  ;;  %v5836_v34 = vld [vmem:[%s7365_s3 + $0x30] sm:$0xff]   ;;  %v388_v40 = vadd.f32 %v6145_v26, %v349_v17  ;;  %v5840_v1 = vld [vmem:[%s7365_s3 + $0x38] sm:$0xff]   ;;  %v6397_v17 = vld [vmem:[%s7365_s3 + $0x80] sm:$0xff]  }
  0x51   : > { %5186 = vmatprep.subr.bf16.mxu1 %v5829_v28  ;;  %v2050_v27 = vsel %vm1502_vm9, %v2048_v5, %v2049_v11  ;;  %v4829_v29 = vpack.c.bf16 %v443_v15, %v443_v15  ;;  %v888_v31 = vshrl.u32 %v4828_v16, 16  ;;  %v891_v32 = vshll.u32 %v4828_v16, 16  ;;  %v5818_v42 = vld [vmem:[#allocation2 + $0x20] ss:$0 sps:$4 sm:$0x11]   ;;  %v5023_v48 = vld [vmem:[%s6122_s18 + $0x70] sm:$0xff]  }
  0x52   : > { %5485 = vmatmul.mubr.bf16.gmra.mrb[4].mxu1 %v2050_v27  ;;  %v6357_v36 = vld [vmem:[#allocation2 + $0x18] sm:$0xff]   ;;  %v884_v37 = vor.u32 %v882_v9, %v881_v3  ;;  %v886_v38 = vrot.slane %v881_v3, 4  ;;  %v1074_v39 = vsel %vm6199_vm8, %v876_v21, %v1073_v14  ;;  %5453 = vmatpush3.bf16.msra.mxu0 %v6061_v6  ;;  %v389_v47 = vadd.f32 %v6145_v26, %v350_v24  ;;  %v519_v52 = vld [vmem:[#allocation2 + $0xb4] sm:$0x1]  ;;  %v522_v16 = vld [vmem:[#allocation2 + $0xc0] sm:$0x1] }
  0x53   : > { %1075 = vst [vmem:[#allocation2 + $0x9c] sm:$0xf] %v1074_v39  ;;  %v890_v43 = vrot.slane %v888_v31, 7  ;;  %v896_v44 = vshrl.u32 %v4829_v29, 16  ;;  %v899_v46 = vshll.u32 %v4829_v29, 16  ;;  %5454 = vmatprep.subr.bf16.mxu0 %v6074_v10  ;;  %v1820_v49 = vshrl.u32 %v6357_v36, 16 }
  0x54   : > { %5187 = vmatpush3.bf16.msra.mxu1 %v5830_v19  ;;  %v1822_v50 = vshll.u32 %v6357_v36, 16  ;;  %v885_v51 = vsel %vm6193_vm7, %v877_v22, %v884_v37  ;;  %v1078_v6 = vsel %vm6149_vm3, %v886_v38, %v1077_v23  ;;  %v1080_v41 = vld [vmem:[#allocation2 + $0xa8] sm:$0xf]  ;;  %v1827_v53 = vshll.u32 %v5818_v42, 16  ;;  %v1084_v0 = vld [vmem:[#allocation2 + $0xb0] sm:$0x1] }
  0x55   : > { %5188 = vmatprep.subr.bf16.mxu1 %v5835_v20  ;;  %1076 = vst [vmem:[#allocation2 + $0xa0] sm:$0xf] %v885_v51  ;;  %1079 = vst [vmem:[#allocation2 + $0xa4] sm:$0x1] %v1078_v6  ;;  %v893_v54 = vor.u32 %v891_v32, %v890_v43  ;;  %v894_v28 = vrot.slane %v890_v43, 4  ;;  %v898_v45 = vrot.slane %v896_v44, 7  ;;  %v4925_v14 = vunpack.c.h.bf16 %v5023_v48 }
  0x56   : > { %v1824_v56 = vrot.slane %v1822_v50, 1  ;;  %v420_v57 = vmax.f32 %v388_v40, 0.0  ;;  %v421_v58 = vmax.f32 %v389_v47, 0.0  ;;  %v540_v59 = vsel %vm6159_vm4, 0, %v539_v33  ;;  %5455 = vmatpush3.bf16.msra.mxu0 %v6074_v10  ;;  %v575_v7 = vld [vmem:[#allocation2 + $0xbc] sm:$0x1] }
  0x57   : > { %v1829_v60 = vrot.slane %v1827_v53, 1  ;;  %v901_v61 = vor.u32 %v899_v46, %v898_v45  ;;  %v903_v62 = vrot.slane %v898_v45, 4  ;;  %v1081_v63 = vsel %vm6199_vm8, %v893_v54, %v1080_v41  ;;  %541 = vst [vmem:[#allocation2 + $0x2c] sm:$0x1] %v540_v59  ;;  %5456 = vmatprep.subr.bf16.mxu0 %v6089_v13  ;;  %v5024_v8 = vld [vmem:[%s6122_s18 + $0x78] sm:$0xff]   ;;  %v5945_v3 = vld [vmem:[%s7365_s3 + $0x160] sm:$0xff]  }
  0x58   : > { %5189 = vmatpush3.bf16.msra.mxu1 %v5836_v34  ;;  %v1825_v2 = vor.u32 %v1824_v56, %v1820_v49  ;;  %1082 = vst [vmem:[#allocation2 + $0xa8] sm:$0xf] %v1081_v63  ;;  %v4806_v4 = vpack.c.bf16 %v420_v57, %v420_v57  ;;  %v4807_v5 = vpack.c.bf16 %v421_v58, %v421_v58  ;;  %v4924_v10 = vunpack.c.l.bf16 %v5023_v48  ;;  %v6392_v13 = vld [vmem:[%s6122_s18 + $0x18] sm:$0xff]   ;;  %v1003_v24 = vld [vmem:[#allocation2 + $0x24] sm:$0xf]  ;;  %v5947_v53 = vld [vmem:[%s7365_s3 + $0x170] sm:$0xff]  }
  0x59   : > { %5190 = vmatprep.subr.bf16.mxu1 %v5839_v55  ;;  %v902_v9 = vsel %vm6193_vm7, %v894_v28, %v901_v61  ;;  %v1085_v11 = vsel %vm6149_vm3, %v903_v62, %v1084_v0  ;;  %v520_v15 = vsel %vm6149_vm3, 0, %v519_v52  ;;  %v374_v29 = vmul.f32 %v4925_v14, %v6140_v25  ;;  %v578_v51 = vld [vmem:[#allocation2 + $0xc8] sm:$0x1]  ;;  %v6432_v0 = vld [vmem:[%s7364_s2] ss:$0 sm:$0xff] }
  0x5a   : > { %v1830_v19 = vsel %vm1293_vm10, %v1825_v2, %v1829_v60  ;;  %1083 = vst [vmem:[#allocation2 + $0xac] sm:$0xf] %v902_v9  ;;  %1086 = vst [vmem:[#allocation2 + $0xb0] sm:$0x1] %v1085_v11  ;;  %v701_v20 = vshrl.u32 %v4806_v4, 16  ;;  %v704_v21 = vshll.u32 %v4806_v4, 16  ;;  %5457 = vmatpush3.bf16.msra.mxu0 %v5945_v3  ;;  %v373_v27 = vmul.f32 %v4924_v10, %v6140_v25 }
  0x5b   : > { %v709_v22 = vshrl.u32 %v4807_v5, 16  ;;  %521 = vst [vmem:[#allocation2 + $0xb4] sm:$0x1] %v520_v15  ;;  %2312 = vmatprep.mubr.bf16.mxu0 %v1830_v19  ;;  %v712_v23 = vshll.u32 %v4807_v5, 16  ;;  %v576_v31 = vsel %vm6159_vm4, 0, %v575_v7  ;;  %v4928_v34 = vunpack.c.l.bf16 %v5024_v8  ;;  %v5950_v9 = vld [vmem:[%s7365_s3 + $0x178] sm:$0xff]  }
  0x5c   : > { %5191 = vmatpush3.bf16.msra.mxu1 %v5840_v1  ;;  %2313 = vmatmul.mubr.bf16.gmra.mrb[4].mxu0 %v6357_v36  ;;  %v5821_v32 = vld [vmem:[#allocation2 + $0x9c] sm:$0xff]   ;;  %v703_v33 = vrot.slane %v701_v20, 7  ;;  %577 = vst [vmem:[#allocation2 + $0xbc] sm:$0x1] %v576_v31  ;;  %v4929_v37 = vunpack.c.h.bf16 %v5024_v8  ;;  %v4880_v38 = vunpack.c.l.bf16 %v6392_v13  ;;  %v412_v42 = vadd.f32 %v6145_v26, %v373_v27  ;;  %v5946_v36 = vld [vmem:[%s7365_s3 + $0x168] sm:$0xff]  }
  0x5d   : > { %5496 = vmatprep.subr.bf16.mxu1 %v6397_v17  ;;  %v5822_v39 = vld [vmem:[#allocation2 + $0xa4] ss:$0 sps:$4 sm:$0x11]   ;;  %v711_v40 = vrot.slane %v709_v22, 7  ;;  %v413_v43 = vadd.f32 %v6145_v26, %v374_v29  ;;  %v523_v44 = vsel %vm6149_vm3, 0, %v522_v16  ;;  %5458 = vmatprep.subr.bf16.mxu0 %v5946_v36  ;;  %v2051_v46 = vrot.slane %v5821_v32, 1 }
  0x5e   : > { %v706_v47 = vor.u32 %v704_v21, %v703_v33  ;;  %v707_v48 = vrot.slane %v703_v33, 4  ;;  %v1007_v49 = vld [vmem:[#allocation2 + $0x2c] sm:$0x1]  ;;  %v375_v50 = vmul.f32 %v4928_v34, %v6140_v25  ;;  %524 = vst [vmem:[#allocation2 + $0xc0] sm:$0x1] %v523_v44  ;;  %5459 = vmatpush3.bf16.msra.mxu0 %v5946_v36  ;;  %v2052_v6 = vrot.slane %v5822_v39, 1 }
  0x5f   : > { %v714_v41 = vor.u32 %v712_v23, %v711_v40  ;;  %v716_v26 = vrot.slane %v711_v40, 4  ;;  %v444_v52 = vmax.f32 %v412_v42, 0.0  ;;  %5460 = vmatprep.subr.bf16.mxu0 %v5947_v53  ;;  %v445_v28 = vmax.f32 %v413_v43, 0.0  ;;  %v6426_v25 = vld [vmem:[%s7363_s1] ss:$0 sm:$0xff] }
  0x60   : > { %v1004_v54 = vsel %vm6199_vm8, %v706_v47, %v1003_v24  ;;  %v376_v45 = vmul.f32 %v6426_v25, %v4929_v37  ;;  %v414_v55 = vadd.f32 %v6432_v0, %v375_v50  ;;  %v2053_v56 = vsel %vm1502_vm9, %v2051_v46, %v2052_v6  ;;  %v486_v8 = vld [vmem:[#allocation2 + $0x30] sm:$0x1]  ;;  %v542_v3 = vld [vmem:[#allocation2 + $0x38] sm:$0x1]  ;;  %v474_v44 = vld [vmem:[#allocation2] sm:$0x1] }
  0x61   : > { %v5823_v57 = vld [vmem:[#allocation2 + $0xa8] sm:$0xff]   ;;  %v715_v58 = vsel %vm6193_vm7, %v707_v48, %v714_v41  ;;  %1005 = vst [vmem:[#allocation2 + $0x24] sm:$0xf] %v1004_v54  ;;  %v1008_v59 = vsel %vm6149_vm3, %v716_v26, %v1007_v49  ;;  %v4830_v60 = vpack.c.bf16 %v444_v52, %v444_v52  ;;  %5488 = vmatprep.mubr.bf16.mxu1 %v2053_v56  ;;  %v5824_v61 = vld [vmem:[#allocation2 + $0xb0] ss:$0 sps:$4 sm:$0x11]   ;;  %v4881_v2 = vunpack.c.h.bf16 %v6392_v13 }
  0x62   : > { %1006 = vst [vmem:[#allocation2 + $0x28] sm:$0xf] %v715_v58  ;;  %1009 = vst [vmem:[#allocation2 + $0x2c] sm:$0x1] %v1008_v59  ;;  %v4831_v62 = vpack.c.bf16 %v445_v28, %v445_v28  ;;  %v415_v63 = vadd.f32 %v6432_v0, %v376_v45  ;;  %v446_v1 = vmax.f32 %v414_v55, 0.0  ;;  %5461 = vmatpush3.bf16.msra.mxu0 %v5947_v53  ;;  %v2054_v4 = vrot.slane %v5823_v57, 1 }
  0x63   : > { %v905_v5 = vshrl.u32 %v4830_v60, 16  ;;  %v908_v10 = vshll.u32 %v4830_v60, 16  ;;  %v579_v7 = vsel %vm6159_vm4, 0, %v578_v51  ;;  %5462 = vmatprep.subr.bf16.mxu0 %v5950_v9  ;;  %v2055_v11 = vrot.slane %v5824_v61, 1  ;;  %v1087_v13 = vld [vmem:[#allocation2 + $0xb4] sm:$0xf] }
  0x64   : > { %v913_v14 = vshrl.u32 %v4831_v62, 16  ;;  %v916_v15 = vshll.u32 %v4831_v62, 16  ;;  %v447_v16 = vmax.f32 %v415_v63, 0.0  ;;  %580 = vst [vmem:[#allocation2 + $0xc8] sm:$0x1] %v579_v7  ;;  %v4832_v20 = vpack.c.bf16 %v446_v1, %v446_v1  ;;  %v5013_v60 = vld [vmem:[%s6122_s18 + $0x20] sm:$0xff]  }
  0x65   : > { %v907_v19 = vrot.slane %v905_v5, 7  ;;  %v351_v21 = vmul.f32 %v6426_v25, %v4880_v38  ;;  %v352_v22 = vmul.f32 %v6426_v25, %v4881_v2  ;;  %v2056_v23 = vsel %vm1502_vm9, %v2054_v4, %v2055_v11  ;;  %v1091_v27 = vld [vmem:[#allocation2 + $0xbc] sm:$0x1]  ;;  %v1094_v43 = vld [vmem:[#allocation2 + $0xc0] sm:$0xf] }
  0x66   : > { %v915_v24 = vrot.slane %v913_v14, 7  ;;  %v4833_v29 = vpack.c.bf16 %v447_v16, %v447_v16  ;;  %v487_v31 = vsel %vm6149_vm3, 0, %v486_v8  ;;  %5463 = vmatpush3.bf16.msra.mxu0 %v5950_v9  ;;  %5489 = vmatmul.mubr.bf16.gmra.mrb[8].mxu1 %v2056_v23  ;;  %v922_v34 = vshrl.u32 %v4832_v20, 16  ;;  %v530_v52 = vld [vmem:[#allocation2 + $0x8] sm:$0x1] }
  0x67   : > { %v910_v32 = vor.u32 %v908_v10, %v907_v19  ;;  %v911_v33 = vrot.slane %v907_v19, 4  ;;  %v925_v37 = vshll.u32 %v4832_v20, 16  ;;  %488 = vst [vmem:[#allocation2 + $0x30] sm:$0x1] %v487_v31  ;;  %v390_v48 = vadd.f32 %v6432_v0, %v351_v21  ;;  %v489_v2 = vld [vmem:[#allocation2 + $0x3c] sm:$0x1] }
  0x68   : > { %v918_v39 = vor.u32 %v916_v15, %v915_v24  ;;  %v920_v38 = vrot.slane %v915_v24, 4  ;;  %v930_v40 = vshrl.u32 %v4833_v29, 16  ;;  %v933_v42 = vshll.u32 %v4833_v29, 16  ;;  %v5014_v15 = vld [vmem:[%s6122_s18 + $0x28] sm:$0xff]   ;;  %v6477_v21 = vld [vmem:[%s6122_s18 + $0x30] sm:$0xff]  }
  0x69   : > { %v5827_v36 = vld [vmem:[#allocation2 + $0x24] sm:$0xff]   ;;  %v1088_v46 = vsel %vm6199_vm8, %v910_v32, %v1087_v13  ;;  %v924_v47 = vrot.slane %v922_v34, 7  ;;  %v391_v49 = vadd.f32 %v6432_v0, %v352_v22  ;;  %v5828_v50 = vld [vmem:[#allocation2 + $0x2c] ss:$0 sps:$4 sm:$0x11]   ;;  %v543_v26 = vsel %vm6159_vm4, 0, %v542_v3 }
  0x6a   : > { %v919_v51 = vsel %vm6193_vm7, %v911_v33, %v918_v39  ;;  %1089 = vst [vmem:[#allocation2 + $0xb4] sm:$0xf] %v1088_v46  ;;  %v1092_v6 = vsel %vm6149_vm3, %v920_v38, %v1091_v27  ;;  %v932_v41 = vrot.slane %v930_v40, 7  ;;  %v1832_v53 = vshrl.u32 %v5827_v36, 16  ;;  %544 = vst [vmem:[#allocation2 + $0x38] sm:$0x1] %v543_v26 }
  0x6b   : > { %v1834_v54 = vshll.u32 %v5827_v36, 16  ;;  %1090 = vst [vmem:[#allocation2 + $0xb8] sm:$0xf] %v919_v51  ;;  %1093 = vst [vmem:[#allocation2 + $0xbc] sm:$0x1] %v1092_v6  ;;  %v927_v28 = vor.u32 %v925_v37, %v924_v47  ;;  %v928_v45 = vrot.slane %v924_v47, 4  ;;  %v4884_v14 = vunpack.c.l.bf16 %v5013_v60 }
  0x6c   : > { %v1098_v55 = vld [vmem:[#allocation2 + $0xc8] sm:$0x1]  ;;  %v1839_v56 = vshll.u32 %v5828_v50, 16  ;;  %v935_v57 = vor.u32 %v933_v42, %v932_v41  ;;  %v937_v58 = vrot.slane %v932_v41, 4  ;;  %v422_v59 = vmax.f32 %v390_v48, 0.0  ;;  %v6486_v41 = vld [vmem:[#allocation2 + $0xc] sm:$0xff]  }
  0x6d   : > { %v1836_v61 = vrot.slane %v1834_v54, 1  ;;  %v1095_v62 = vsel %vm6199_vm8, %v927_v28, %v1094_v43  ;;  %v423_v63 = vmax.f32 %v391_v49, 0.0  ;;  %v475_v1 = vsel %vm6149_vm3, 0, %v474_v44  ;;  %v545_v42 = vld [vmem:[#allocation2 + $0x44] sm:$0x1] }
  0x6e   : > { %v1841_v4 = vrot.slane %v1839_v56, 1  ;;  %v936_v5 = vsel %vm6193_vm7, %v928_v45, %v935_v57  ;;  %1096 = vst [vmem:[#allocation2 + $0xc0] sm:$0xf] %v1095_v62  ;;  %v1099_v10 = vsel %vm6149_vm3, %v937_v58, %v1098_v55  ;;  %v4808_v7 = vpack.c.bf16 %v422_v59, %v422_v59  ;;  %476 = vst [vmem:[#allocation2] sm:$0x1] %v475_v1 }
  0x6f   : > { %v1837_v8 = vor.u32 %v1836_v61, %v1832_v53  ;;  %1097 = vst [vmem:[#allocation2 + $0xc4] sm:$0xf] %v936_v5  ;;  %1100 = vst [vmem:[#allocation2 + $0xc8] sm:$0x1] %v1099_v10  ;;  %v4809_v9 = vpack.c.bf16 %v423_v63, %v423_v63  ;;  %v531_v11 = vsel %vm6159_vm4, 0, %v530_v52  ;;  %v4885_v13 = vunpack.c.h.bf16 %v5013_v60 }
  0x70   : > { %v718_v16 = vshrl.u32 %v4808_v7, 16  ;;  %v721_v19 = vshll.u32 %v4808_v7, 16  ;;  %532 = vst [vmem:[#allocation2 + $0x8] sm:$0x1] %v531_v11  ;;  %v490_v20 = vsel %vm6149_vm3, 0, %v489_v2  ;;  %v353_v27 = vmul.f32 %v6426_v25, %v4884_v14 }
  0x71   : > { %v1842_v22 = vsel %vm1293_vm10, %v1837_v8, %v1841_v4  ;;  %v726_v3 = vshrl.u32 %v4809_v9, 16  ;;  %v729_v23 = vshll.u32 %v4809_v9, 16  ;;  %v1010_v24 = vld [vmem:[#allocation2 + $0x30] sm:$0xf]  ;;  %491 = vst [vmem:[#allocation2 + $0x3c] sm:$0x1] %v490_v20  ;;  %v354_v32 = vmul.f32 %v6426_v25, %v4885_v13 }
  0x72   : > { %2320 = vmatprep.mubr.bf16.mxu0 %v1842_v22  ;;  %v5831_v29 = vld [vmem:[#allocation2 + $0xb4] sm:$0xff]   ;;  %v720_v31 = vrot.slane %v718_v16, 7  ;;  %v4888_v33 = vunpack.c.l.bf16 %v5014_v15  ;;  %v4889_v34 = vunpack.c.h.bf16 %v5014_v15  ;;  %v5832_v37 = vld [vmem:[#allocation2 + $0xbc] ss:$0 sps:$4 sm:$0x11]   ;;  %v392_v40 = vadd.f32 %v6432_v0, %v353_v27 }
  0x73   : > { %2321 = vmatmul.mubr.bf16.gmra.mrb[8].mxu0 %v5827_v36  ;;  %v728_v39 = vrot.slane %v726_v3, 7  ;;  %v1014_v38 = vld [vmem:[#allocation2 + $0x38] sm:$0x1]  ;;  %v4892_v43 = vunpack.c.l.bf16 %v6477_v21  ;;  %v4893_v44 = vunpack.c.h.bf16 %v6477_v21  ;;  %v2057_v46 = vrot.slane %v5831_v29, 1  ;;  %v492_v27 = vld [vmem:[#allocation2 + $0x48] sm:$0x1] }
  0x74   : > { %v723_v47 = vor.u32 %v721_v19, %v720_v31  ;;  %v724_v48 = vrot.slane %v720_v31, 4  ;;  %v393_v49 = vadd.f32 %v6432_v0, %v354_v32  ;;  %v2058_v50 = vrot.slane %v5832_v37, 1  ;;  %v5847_v36 = vld [vmem:[#allocation2 + $0x14] ss:$0 sps:$4 sm:$0x11]  }
  0x75   : > { %v731_v51 = vor.u32 %v729_v23, %v728_v39  ;;  %v733_v6 = vrot.slane %v728_v39, 4  ;;  %v355_v26 = vmul.f32 %v6426_v25, %v4888_v33  ;;  %v424_v54 = vmax.f32 %v392_v40, 0.0  ;;  %v6500_v59 = vld [vmem:[#allocation2] sm:$0xff]  }
  0x76   : > { %v5833_v52 = vld [vmem:[#allocation2 + $0xc0] sm:$0xff]   ;;  %v1011_v53 = vsel %vm6199_vm8, %v723_v47, %v1010_v24  ;;  %v356_v28 = vmul.f32 %v6426_v25, %v4889_v34  ;;  %v6493_v45 = vmul.f32 %v6426_v25, %v4892_v43  ;;  %v2059_v55 = vsel %vm1502_vm9, %v2057_v46, %v2058_v50  ;;  %v5834_v56 = vld [vmem:[#allocation2 + $0xc8] ss:$0 sps:$4 sm:$0x11]   ;;  %v548_v34 = vld [vmem:[#allocation2 + $0x50] sm:$0x1] }
  0x77   : > { %v732_v57 = vsel %vm6193_vm7, %v724_v48, %v731_v51  ;;  %1012 = vst [vmem:[#allocation2 + $0x30] sm:$0xf] %v1011_v53  ;;  %v1015_v58 = vsel %vm6149_vm3, %v733_v6, %v1014_v38  ;;  %v394_v60 = vadd.f32 %v6432_v0, %v355_v26  ;;  %5492 = vmatprep.mubr.bf16.mxu1 %v2059_v55  ;;  %v2060_v61 = vrot.slane %v5833_v52, 1  ;;  %v5842_v62 = vld [vmem:[#allocation2 + $0x8] ss:$0 sps:$4 sm:$0x11]  }
  0x78   : > { %1013 = vst [vmem:[#allocation2 + $0x34] sm:$0xf] %v732_v57  ;;  %1016 = vst [vmem:[#allocation2 + $0x38] sm:$0x1] %v1015_v58  ;;  %v425_v63 = vmax.f32 %v393_v49, 0.0  ;;  %v546_v1 = vsel %vm6159_vm4, 0, %v545_v42  ;;  %v4810_v2 = vpack.c.bf16 %v424_v54, %v424_v54  ;;  %v395_v33 = vadd.f32 %v6432_v0, %v356_v28 }
  0x79   : > { %v2061_v4 = vrot.slane %v5834_v56, 1  ;;  %v1295_v5 = vshrl.u32 %v6500_v59, 16  ;;  %v1297_v10 = vshll.u32 %v6500_v59, 16  ;;  %547 = vst [vmem:[#allocation2 + $0x44] sm:$0x1] %v546_v1  ;;  %v1307_v7 = vshrl.u32 %v6486_v41, 16 }
  0x7a   : > { %v1302_v8 = vshll.u32 %v5842_v62, 16  ;;  %v4811_v9 = vpack.c.bf16 %v425_v63, %v425_v63  ;;  %v735_v11 = vshrl.u32 %v4810_v2, 16  ;;  %v738_v14 = vshll.u32 %v4810_v2, 16  ;;  %v1017_v24 = vld [vmem:[#allocation2 + $0x3c] sm:$0xf] }
  0x7b   : > { %v2062_v15 = vsel %vm1502_vm9, %v2060_v61, %v2061_v4  ;;  %v1299_v16 = vrot.slane %v1297_v10, 1  ;;  %v1309_v19 = vshll.u32 %v6486_v41, 16  ;;  %v1314_v13 = vshll.u32 %v5847_v36, 16  ;;  %v6511_v42 = vld [vmem:[#allocation2 + $0x18] sm:$0xff]   ;;  %v495_v2 = vld [vmem:[#allocation2 + $0x54] sm:$0x1] }
  0x7c   : > { %5493 = vmatmul.mubr.bf16.gmra.mrb[12].mxu1 %v2062_v15  ;;  %v1304_v20 = vrot.slane %v1302_v8, 1  ;;  %v737_v22 = vrot.slane %v735_v11, 7  ;;  %v743_v3 = vshrl.u32 %v4811_v9, 16  ;;  %v746_v23 = vshll.u32 %v4811_v9, 16  ;;  %v551_v8 = vld [vmem:[#allocation2 + $0x5c] sm:$0x1] }
  0x7d   : > { %v1300_v29 = vor.u32 %v1299_v16, %v1295_v5  ;;  %v1311_v31 = vrot.slane %v1309_v19, 1  ;;  %v1316_v32 = vrot.slane %v1314_v13, 1  ;;  %v426_v40 = vmax.f32 %v394_v60, 0.0  ;;  %v5851_v43 = vld [vmem:[#allocation2 + $0x20] ss:$0 sps:$4 sm:$0x11]  }
  0x7e   : > { %v740_v37 = vor.u32 %v738_v14, %v737_v22  ;;  %v741_v39 = vrot.slane %v737_v22, 4  ;;  %v745_v38 = vrot.slane %v743_v3, 7  ;;  %v427_v49 = vmax.f32 %v395_v33, 0.0  ;;  %v6542_v16 = vld [vmem:[#allocation2 + $0x24] sm:$0xff]   ;;  %v5016_v3 = vld [vmem:[%s6122_s18 + $0x38] sm:$0xff]  }
  0x7f   : > { %v6513_v46 = vld [vmem:[#allocation2 + $0x30] sm:$0xff]   ;;  %v1305_v47 = vsel %vm1293_vm10, %v1300_v29, %v1304_v20  ;;  %v1312_v48 = vor.u32 %v1311_v31, %v1307_v7  ;;  %v358_v50 = vmul.f32 %v6426_v25, %v4893_v44  ;;  %v6519_v51 = vld [vmem:[#allocation2 + $0x38] ss:$0 sps:$4 sm:$0x11]   ;;  %v4812_v53 = vpack.c.bf16 %v426_v40, %v426_v40  ;;  %v5854_v44 = vld [vmem:[%s7365_s3 + $0x88] sm:$0xff]  }
  0x80   : > { %2770 = vmatprep.mubr.bf16.mxu1 %v1305_v47  ;;  %v748_v6 = vor.u32 %v746_v23, %v745_v38  ;;  %v750_v36 = vrot.slane %v745_v38, 4  ;;  %v1018_v26 = vsel %vm6199_vm8, %v740_v37, %v1017_v24  ;;  %v1021_v52 = vld [vmem:[#allocation2 + $0x44] sm:$0x1]  ;;  %v1844_v54 = vshrl.u32 %v6513_v46, 16 }
  0x81   : > { %v1846_v28 = vshll.u32 %v6513_v46, 16  ;;  %1019 = vst [vmem:[#allocation2 + $0x3c] sm:$0xf] %v1018_v26  ;;  %v1317_v55 = vsel %vm1293_vm10, %v1312_v48, %v1316_v32  ;;  %v493_v21 = vsel %vm6149_vm3, 0, %v492_v27  ;;  %v1851_v56 = vshll.u32 %v6519_v51, 16  ;;  %v5882_v47 = vld [vmem:[%s7365_s3 + $0x1c0] sm:$0xff]  }
  0x82   : > { %v749_v57 = vsel %vm6193_vm7, %v741_v39, %v748_v6  ;;  %v1022_v58 = vsel %vm6149_vm3, %v750_v36, %v1021_v52  ;;  %494 = vst [vmem:[#allocation2 + $0x48] sm:$0x1] %v493_v21  ;;  %v549_v60 = vsel %vm6159_vm4, 0, %v548_v34  ;;  %v4813_v62 = vpack.c.bf16 %v427_v49, %v427_v49  ;;  %v5856_v34 = vld [vmem:[#allocation2 + $0x2c] ss:$0 sps:$4 sm:$0x11]   ;;  %5312 = vmatprep.subr.bf16.mxu0 %v5882_v47 }
  0x83   : > { %v1848_v61 = vrot.slane %v1846_v28, 1  ;;  %1020 = vst [vmem:[#allocation2 + $0x40] sm:$0xf] %v749_v57  ;;  %1023 = vst [vmem:[#allocation2 + $0x44] sm:$0x1] %v1022_v58  ;;  %v752_v63 = vshrl.u32 %v4812_v53, 16  ;;  %v396_v20 = vadd.f32 %v6432_v0, %v6493_v45  ;;  %v397_v22 = vadd.f32 %v6432_v0, %v358_v50 }
  0x84   : > { %550 = vst [vmem:[#allocation2 + $0x50] sm:$0x1] %v549_v60  ;;  %v755_v1 = vshll.u32 %v4812_v53, 16  ;;  %v1853_v4 = vrot.slane %v1851_v56, 1  ;;  %2771 = vmatmul.mubr.bf16.vlgmr.msra.gmra.mrb[16].mxu1 %v6500_v59  ;;  %v1319_v5 = vshrl.u32 %v6511_v42, 16  ;;  %v1321_v10 = vshll.u32 %v6511_v42, 16 }
  0x85   : > { %v1326_v7 = vshll.u32 %v5851_v43, 16  ;;  %v1849_v9 = vor.u32 %v1848_v61, %v1844_v54  ;;  %5497 = vmatpush3.bf16.msra.mxu1 %v6397_v17  ;;  %2778 = vmatprep.mubr.bf16.mxu1 %v1317_v55  ;;  %v754_v11 = vrot.slane %v752_v63, 7  ;;  %v760_v14 = vshrl.u32 %v4813_v62, 16  ;;  %v5861_v59 = vld [vmem:[%s7365_s3 + $0x90] sm:$0xff]   ;;  %v5866_v45 = vld [vmem:[%s7365_s3 + $0x98] sm:$0xff]   ;;  %v5871_v58 = vld [vmem:[%s7365_s3 + $0xa0] sm:$0xff]  }
  0x86   : > { %v763_v15 = vshll.u32 %v4813_v62, 16  ;;  %v1323_v19 = vrot.slane %v1321_v10, 1  ;;  %5498 = vmatprep.subr.bf16.mxu1 %v5854_v44  ;;  %v428_v31 = vmax.f32 %v396_v20, 0.0  ;;  %v429_v32 = vmax.f32 %v397_v22, 0.0  ;;  %v554_v20 = vld [vmem:[#allocation2 + $0x68] sm:$0x1] }
  0x87   : > { %v1328_v13 = vrot.slane %v1326_v7, 1  ;;  %v1854_v17 = vsel %vm1293_vm10, %v1849_v9, %v1853_v4  ;;  %v757_v23 = vor.u32 %v755_v1, %v754_v11  ;;  %v758_v24 = vrot.slane %v754_v11, 4  ;;  %v498_v9 = vld [vmem:[#allocation2 + $0x60] sm:$0x1] }
  0x88   : > { %v762_v27 = vrot.slane %v760_v14, 7  ;;  %2328 = vmatprep.mubr.bf16.mxu0 %v1854_v17  ;;  %v1324_v29 = vor.u32 %v1323_v19, %v1319_v5  ;;  %v496_v33 = vsel %vm6149_vm3, 0, %v495_v2  ;;  %v552_v40 = vsel %vm6159_vm4, 0, %v551_v8 }
  0x89   : > { %2329 = vmatmul.mubr.bf16.gmra.mrb[12].mxu0 %v6513_v46  ;;  %v1024_v38 = vld [vmem:[#allocation2 + $0x48] sm:$0xf]  ;;  %497 = vst [vmem:[#allocation2 + $0x54] sm:$0x1] %v496_v33  ;;  %5499 = vmatpush3.bf16.msra.mxu1 %v5854_v44  ;;  %v1331_v43 = vshrl.u32 %v6542_v16, 16  ;;  %v4814_v6 = vpack.c.bf16 %v428_v31, %v428_v31  ;;  %v4815_v36 = vpack.c.bf16 %v429_v32, %v429_v32  ;;  %v1333_v54 = vshll.u32 %v6542_v16, 16 }
  0x8a   : > { %v765_v37 = vor.u32 %v763_v15, %v762_v27  ;;  %v767_v39 = vrot.slane %v762_v27, 4  ;;  %v6564_v48 = vld [vmem:[#allocation2 + $0x3c] sm:$0xff]   ;;  %v1025_v49 = vsel %vm6199_vm8, %v757_v23, %v1024_v38  ;;  %v1329_v50 = vsel %vm1293_vm10, %v1324_v29, %v1328_v13  ;;  %553 = vst [vmem:[#allocation2 + $0x5c] sm:$0x1] %v552_v40  ;;  %5500 = vmatprep.subr.bf16.mxu1 %v5861_v59  ;;  %v6597_v33 = vld [vmem:[#allocation2 + $0x30] sm:$0xff]  }
  0x8b   : > { %v6569_v26 = vld [vmem:[#allocation2 + $0x44] ss:$0 sps:$4 sm:$0x11]   ;;  %1026 = vst [vmem:[#allocation2 + $0x48] sm:$0xf] %v1025_v49  ;;  %v4896_v28 = vunpack.c.l.bf16 %v5016_v3  ;;  %v4897_v55 = vunpack.c.h.bf16 %v5016_v3  ;;  %v1856_v21 = vshrl.u32 %v6564_v48, 16 }
  0x8c   : > { %v766_v52 = vsel %vm6193_vm7, %v758_v24, %v765_v37  ;;  %v1028_v53 = vld [vmem:[#allocation2 + $0x50] sm:$0x1]  ;;  %v1858_v44 = vshll.u32 %v6564_v48, 16  ;;  %2779 = vmatmul.mubr.bf16.gmra.mrb[20].mxu1 %v6486_v41  ;;  %v769_v57 = vshrl.u32 %v4814_v6, 16  ;;  %v1863_v60 = vshll.u32 %v6569_v26, 16 }
  0x8d   : > { %1027 = vst [vmem:[#allocation2 + $0x4c] sm:$0xf] %v766_v52  ;;  %v1029_v56 = vsel %vm6149_vm3, %v767_v39, %v1028_v53  ;;  %2786 = vmatprep.mubr.bf16.mxu1 %v1329_v50  ;;  %v772_v61 = vshll.u32 %v4814_v6, 16  ;;  %v777_v62 = vshrl.u32 %v4815_v36, 16  ;;  %v780_v63 = vshll.u32 %v4815_v36, 16  ;;  %5501 = vmatpush3.bf16.msra.mxu1 %v5861_v59  ;;  %v5876_v59 = vld [vmem:[%s7365_s3 + $0xa8] sm:$0xff]  }
  0x8e   : > { %1030 = vst [vmem:[#allocation2 + $0x50] sm:$0x1] %v1029_v56  ;;  %v1860_v1 = vrot.slane %v1858_v44, 1  ;;  %v771_v2 = vrot.slane %v769_v57, 7  ;;  %v1335_v41 = vrot.slane %v1333_v54, 1  ;;  %v1338_v4 = vshll.u32 %v5856_v34, 16  ;;  %5502 = vmatprep.subr.bf16.mxu1 %v5866_v45 }
  0x8f   : > { %v1865_v5 = vrot.slane %v1863_v60, 1  ;;  %v779_v10 = vrot.slane %v777_v62, 7  ;;  %v359_v7 = vmul.f32 %v6426_v25, %v4896_v28  ;;  %v360_v8 = vmul.f32 %v6426_v25, %v4897_v55  ;;  %v6589_v27 = vld [vmem:[#allocation2 + $0x38] ss:$0 sps:$4 sm:$0x11]   ;;  %v5881_v53 = vld [vmem:[%s7365_s3 + $0xb0] sm:$0xff]  }
  0x90   : > { %v1861_v11 = vor.u32 %v1860_v1, %v1856_v21  ;;  %v774_v14 = vor.u32 %v772_v61, %v771_v2  ;;  %v775_v15 = vrot.slane %v771_v2, 4  ;;  %v1031_v19 = vld [vmem:[#allocation2 + $0x54] sm:$0xf]  ;;  %v1336_v13 = vor.u32 %v1335_v41, %v1331_v43  ;;  %v6621_v41 = vld [vmem:[#allocation2 + $0x3c] sm:$0xff]  }
  0x91   : > { %v782_v22 = vor.u32 %v780_v63, %v779_v10  ;;  %v784_v3 = vrot.slane %v779_v10, 4  ;;  %v1035_v17 = vld [vmem:[#allocation2 + $0x5c] sm:$0x1]  ;;  %v1340_v23 = vrot.slane %v1338_v4, 1  ;;  %v398_v24 = vadd.f32 %v6432_v0, %v359_v7  ;;  %5503 = vmatpush3.bf16.msra.mxu1 %v5866_v45 }
  0x92   : > { %v1866_v25 = vsel %vm1293_vm10, %v1861_v11, %v1865_v5  ;;  %v1032_v29 = vsel %vm6199_vm8, %v774_v14, %v1031_v19  ;;  %v399_v31 = vadd.f32 %v6432_v0, %v360_v8  ;;  %v499_v32 = vsel %vm6149_vm3, 0, %v498_v9  ;;  %5504 = vmatprep.subr.bf16.mxu1 %v5871_v58  ;;  %v6623_v4 = vld [vmem:[#allocation2 + $0x44] ss:$0 sps:$4 sm:$0x11]  }
  0x93   : > { %2336 = vmatprep.mubr.bf16.mxu0 %v1866_v25  ;;  %v783_v37 = vsel %vm6193_vm7, %v775_v15, %v782_v22  ;;  %1033 = vst [vmem:[#allocation2 + $0x54] sm:$0xf] %v1032_v29  ;;  %v1036_v45 = vsel %vm6149_vm3, %v784_v3, %v1035_v17  ;;  %v1341_v39 = vsel %vm1293_vm10, %v1336_v13, %v1340_v23  ;;  %v430_v38 = vmax.f32 %v398_v24, 0.0 }
  0x94   : > { %v6599_v34 = vld [vmem:[#allocation2 + $0x48] sm:$0xff]   ;;  %500 = vst [vmem:[#allocation2 + $0x60] sm:$0x1] %v499_v32  ;;  %2337 = vmatmul.mubr.bf16.gmra.mrb[16].mxu0 %v6564_v48  ;;  %2787 = vmatmul.mubr.bf16.gmra.mrb[24].mxu1 %v6511_v42  ;;  %1034 = vst [vmem:[#allocation2 + $0x58] sm:$0xf] %v783_v37  ;;  %v431_v40 = vmax.f32 %v399_v31, 0.0 }
  0x95   : > { %v6607_v0 = vld [vmem:[#allocation2 + $0x50] ss:$0 sps:$4 sm:$0x11]   ;;  %1037 = vst [vmem:[#allocation2 + $0x5c] sm:$0x1] %v1036_v45  ;;  %v1868_v43 = vshrl.u32 %v6599_v34, 16  ;;  %2794 = vmatprep.mubr.bf16.mxu1 %v1341_v39  ;;  %v4816_v50 = vpack.c.bf16 %v430_v38, %v430_v38  ;;  %5505 = vmatpush3.bf16.msra.mxu1 %v5871_v58 }
  0x96   : > { %v1870_v47 = vshll.u32 %v6599_v34, 16  ;;  %v555_v49 = vsel %vm6159_vm4, 0, %v554_v20  ;;  %v1875_v6 = vshll.u32 %v6607_v0, 16  ;;  %v4817_v36 = vpack.c.bf16 %v431_v40, %v431_v40  ;;  %5506 = vmatprep.subr.bf16.mxu1 %v5876_v59  ;;  %v6637_v22 = vld [vmem:[#allocation2 + $0x50] ss:$0 sps:$4 sm:$0x11]  }
  0x97   : > { %556 = vst [vmem:[#allocation2 + $0x68] sm:$0x1] %v555_v49  ;;  %v1343_v52 = vshrl.u32 %v6597_v33, 16  ;;  %v1345_v42 = vshll.u32 %v6597_v33, 16  ;;  %v786_v28 = vshrl.u32 %v4816_v50, 16  ;;  %v789_v55 = vshll.u32 %v4816_v50, 16 }
  0x98   : > { %v1872_v54 = vrot.slane %v1870_v47, 1  ;;  %v1350_v21 = vshll.u32 %v6589_v27, 16  ;;  %v1877_v44 = vrot.slane %v1875_v6, 1  ;;  %v794_v56 = vshrl.u32 %v4817_v36, 16  ;;  %v6644_v23 = vld [vmem:[#allocation2 + $0x48] sm:$0xff]  }
  0x99   : > { %v797_v57 = vshll.u32 %v4817_v36, 16  ;;  %v1347_v58 = vrot.slane %v1345_v42, 1  ;;  %v788_v61 = vrot.slane %v786_v28, 7  ;;  %5507 = vmatpush3.bf16.msra.mxu1 %v5876_v59  ;;  %v1355_v18 = vshrl.u32 %v6621_v41, 16  ;;  %v6648_v31 = vld [vmem:[#allocation2 + $0x6c] sm:$0xff]  }
  0x9a   : > { %v1873_v60 = vor.u32 %v1872_v54, %v1868_v43  ;;  %v1352_v62 = vrot.slane %v1350_v21, 1  ;;  %v796_v63 = vrot.slane %v794_v56, 7  ;;  %5508 = vmatprep.subr.bf16.mxu1 %v5881_v53  ;;  %v1357_v25 = vshll.u32 %v6621_v41, 16  ;;  %v5952_v42 = vld [vmem:[#allocation2 + $0x74] ss:$0 sps:$4 sm:$0x11]  }
  0x9b   : > { %v1038_v1 = vld [vmem:[#allocation2 + $0x60] sm:$0xf]  ;;  %v1348_v2 = vor.u32 %v1347_v58, %v1343_v52  ;;  %v6626_v10 = vld [vmem:[#allocation2 + $0x54] sm:$0xff]   ;;  %v791_v7 = vor.u32 %v789_v55, %v788_v61  ;;  %v792_v8 = vrot.slane %v788_v61, 4  ;;  %v1906_v12 = vshll.u32 %v6648_v31, 16 }
  0x9c   : > { %v1878_v5 = vsel %vm1293_vm10, %v1873_v60, %v1877_v44  ;;  %v6628_v9 = vld [vmem:[#allocation2 + $0x5c] ss:$0 sps:$4 sm:$0x11]   ;;  %2795 = vmatmul.mubr.bf16.gmra.mrb[28].mxu1 %v6542_v16  ;;  %v799_v11 = vor.u32 %v797_v57, %v796_v63  ;;  %v801_v14 = vrot.slane %v796_v63, 4  ;;  %v1880_v19 = vshrl.u32 %v6626_v10, 16  ;;  %v6656_v50 = vld [vmem:[#allocation2 + $0x54] sm:$0xff]  }
  0x9d   : > { %2344 = vmatprep.mubr.bf16.mxu0 %v1878_v5  ;;  %v1353_v15 = vsel %vm1293_vm10, %v1348_v2, %v1352_v62  ;;  %v1882_v13 = vshll.u32 %v6626_v10, 16  ;;  %v1039_v20 = vsel %vm6199_vm8, %v791_v7, %v1038_v1  ;;  %v1887_v3 = vshll.u32 %v6628_v9, 16  ;;  %5509 = vmatpush3.bf16.msra.mxu1 %v5881_v53  ;;  %v6662_v28 = vld [vmem:[#allocation2 + $0x5c] ss:$0 sps:$4 sm:$0x11]  }
  0x9e   : > { %2345 = vmatmul.mubr.bf16.gmra.mrb[20].mxu0 %v6599_v34  ;;  %v1042_v59 = vld [vmem:[#allocation2 + $0x68] sm:$0x1]  ;;  %2802 = vmatprep.mubr.bf16.mxu1 %v1353_v15  ;;  %v800_v16 = vsel %vm6193_vm7, %v792_v8, %v799_v11  ;;  %1040 = vst [vmem:[#allocation2 + $0x60] sm:$0xf] %v1039_v20  ;;  %v1362_v32 = vshll.u32 %v6623_v4, 16  ;;  %v1359_v45 = vrot.slane %v1357_v25, 1 }
  0x9f   : > { %v1043_v17 = vsel %vm6149_vm3, %v801_v14, %v1042_v59  ;;  %v1884_v24 = vrot.slane %v1882_v13, 1  ;;  %1041 = vst [vmem:[#allocation2 + $0x64] sm:$0xf] %v800_v16  ;;  %v1889_v29 = vrot.slane %v1887_v3, 1  ;;  %v1367_v38 = vshrl.u32 %v6644_v23, 16  ;;  %v6672_v1 = vld [vmem:[#allocation2 + $0x78] sm:$0xff]  }
  0xa0   : > { %1044 = vst [vmem:[#allocation2 + $0x68] sm:$0x1] %v1043_v17  ;;  %v1364_v39 = vrot.slane %v1362_v32, 1  ;;  %v1369_v40 = vshll.u32 %v6644_v23, 16  ;;  %v1360_v47 = vor.u32 %v1359_v45, %v1355_v18  ;;  %v1374_v49 = vshll.u32 %v6637_v22, 16  ;;  %v5894_v20 = vld [vmem:[%s7365_s3 + $0xb8] sm:$0xff]  }
  0xa1   : > { %v1885_v37 = vor.u32 %v1884_v24, %v1880_v19  ;;  %v1904_v6 = vshrl.u32 %v6648_v31, 16  ;;  %v1908_v36 = vrot.slane %v1906_v12, 1  ;;  %v1911_v53 = vshll.u32 %v5952_v42, 16  ;;  %v5954_v17 = vld [vmem:[#allocation2 + $0x80] ss:$0 sps:$4 sm:$0x11]   ;;  %5510 = vmatprep.subr.bf16.mxu1 %v5894_v20 }
  0xa2   : > { %v1371_v52 = vrot.slane %v1369_v40, 1  ;;  %v1365_v54 = vsel %vm1293_vm10, %v1360_v47, %v1364_v39  ;;  %v1376_v44 = vrot.slane %v1374_v49, 1  ;;  %v1381_v57 = vshll.u32 %v6656_v50, 16  ;;  %5511 = vmatpush3.bf16.msra.mxu1 %v5894_v20  ;;  %v6691_v39 = vld [vmem:[#allocation2 + $0x84] sm:$0xff]  }
  0xa3   : > { %v1890_v43 = vsel %vm1293_vm10, %v1885_v37, %v1889_v29  ;;  %v1909_v61 = vor.u32 %v1908_v36, %v1904_v6  ;;  %v1913_v63 = vrot.slane %v1911_v53, 1  ;;  %v1918_v2 = vshll.u32 %v6672_v1, 16  ;;  %v6697_v6 = vld [vmem:[#allocation2 + $0x6c] sm:$0xff]   ;;  %v6700_v36 = vld [vmem:[#allocation2 + $0x74] ss:$0 sps:$4 sm:$0x11]  }
  0xa4   : > { %2352 = vmatprep.mubr.bf16.mxu0 %v1890_v43  ;;  %2803 = vmatmul.mubr.bf16.gmra.mrb[32].mxu1 %v6597_v33  ;;  %v1372_v21 = vor.u32 %v1371_v52, %v1367_v38  ;;  %v1379_v5 = vshrl.u32 %v6656_v50, 16  ;;  %v1383_v11 = vrot.slane %v1381_v57, 1  ;;  %v1386_v14 = vshll.u32 %v6662_v28, 16  ;;  %v5956_v53 = vld [vmem:[#allocation2 + $0x8c] ss:$0 sps:$4 sm:$0x11]  }
  0xa5   : > { %2810 = vmatprep.mubr.bf16.mxu1 %v1365_v54  ;;  %v1914_v59 = vsel %vm1293_vm10, %v1909_v61, %v1913_v63  ;;  %v1916_v3 = vshrl.u32 %v6672_v1, 16  ;;  %v1920_v16 = vrot.slane %v1918_v2, 1  ;;  %v1923_v24 = vshll.u32 %v5954_v17, 16  ;;  %v6706_v61 = vld [vmem:[#allocation2 + $0x90] sm:$0xff]   ;;  %v6710_v2 = vld [vmem:[#allocation2 + $0x78] sm:$0xff]  }
  0xa6   : > { %2353 = vmatmul.mubr.bf16.gmra.mrb[24].mxu0 %v6626_v10  ;;  %v6664_v55 = vld [vmem:[#allocation2 + $0x60] sm:$0xff]   ;;  %v1377_v8 = vsel %vm1293_vm10, %v1372_v21, %v1376_v44  ;;  %v1384_v29 = vor.u32 %v1383_v11, %v1379_v5  ;;  %v1388_v12 = vrot.slane %v1386_v14, 1  ;;  %v1930_v38 = vshll.u32 %v6691_v39, 16 }
  0xa7   : > { %v6666_v56 = vld [vmem:[#allocation2 + $0x68] ss:$0 sps:$4 sm:$0x11]   ;;  %v1892_v58 = vshrl.u32 %v6664_v55, 16  ;;  %v1894_v60 = vshll.u32 %v6664_v55, 16  ;;  %v6678_v15 = vld [vmem:[#allocation2 + $0x60] sm:$0xff]   ;;  %v1921_v37 = vor.u32 %v1920_v16, %v1916_v3 }
  0xa8   : > { %v1899_v62 = vshll.u32 %v6666_v56, 16  ;;  %v6686_v18 = vld [vmem:[#allocation2 + $0x68] ss:$0 sps:$4 sm:$0x11]   ;;  %v1393_v32 = vshll.u32 %v6678_v15, 16  ;;  %v1925_v45 = vrot.slane %v1923_v24, 1  ;;  %v1389_v40 = vsel %vm1293_vm10, %v1384_v29, %v1388_v12 }
  0xa9   : > { %v1896_v7 = vrot.slane %v1894_v60, 1  ;;  %v1391_v43 = vshrl.u32 %v6678_v15, 16  ;;  %v1398_v49 = vshll.u32 %v6686_v18, 16  ;;  %v1928_v42 = vshrl.u32 %v6691_v39, 16 }
  0xaa   : > { %v1901_v19 = vrot.slane %v1899_v62, 1  ;;  %v1395_v47 = vrot.slane %v1393_v32, 1  ;;  %v1926_v52 = vsel %vm1293_vm10, %v1921_v37, %v1925_v45  ;;  %v1935_v54 = vshll.u32 %v5956_v53, 16  ;;  %v6714_v14 = vld [vmem:[#allocation2 + $0x80] ss:$0 sps:$4 sm:$0x11]  }
  0xab   : > { %v1897_v13 = vor.u32 %v1896_v7, %v1892_v58  ;;  %v1932_v21 = vrot.slane %v1930_v38, 1  ;;  %v1400_v57 = vrot.slane %v1398_v49, 1  ;;  %v1405_v58 = vshll.u32 %v6697_v6, 16  ;;  %v6727_v45 = vld [vmem:[#allocation2 + $0x84] sm:$0xff]  }
  0xac   : > { %2811 = vmatmul.mubr.bf16.gmra.mrb[36].mxu1 %v6621_v41  ;;  %v1396_v44 = vor.u32 %v1395_v47, %v1391_v43  ;;  %v1937_v60 = vrot.slane %v1935_v54, 1  ;;  %v1942_v62 = vshll.u32 %v6706_v61, 16  ;;  %v1403_v63 = vshrl.u32 %v6697_v6, 16  ;;  %v6736_v54 = vld [vmem:[#allocation2 + $0x8c] ss:$0 sps:$4 sm:$0x11]  }
  0xad   : > { %2818 = vmatprep.mubr.bf16.mxu1 %v1377_v8  ;;  %v1902_v25 = vsel %vm1293_vm10, %v1897_v13, %v1901_v19  ;;  %v1933_v5 = vor.u32 %v1932_v21, %v1928_v42  ;;  %v1407_v8 = vrot.slane %v1405_v58, 1  ;;  %v1410_v11 = vshll.u32 %v6700_v36, 16  ;;  %v5958_v19 = vld [vmem:[#allocation2 + $0x98] ss:$0 sps:$4 sm:$0x11]  }
  0xae   : > { %2360 = vmatprep.mubr.bf16.mxu0 %v1902_v25  ;;  %v1401_v7 = vsel %vm1293_vm10, %v1396_v44, %v1400_v57  ;;  %v1947_v13 = vshll.u32 %v5958_v19, 16  ;;  %v1944_v20 = vrot.slane %v1942_v62, 1  ;;  %v1417_v25 = vshll.u32 %v6710_v2, 16  ;;  %v5960_v42 = vld [vmem:[#allocation2 + $0xa4] ss:$0 sps:$4 sm:$0x11]  }
  0xaf   : > { %2361 = vmatmul.mubr.bf16.gmra.mrb[28].mxu0 %v6664_v55  ;;  %v1938_v16 = vsel %vm1293_vm10, %v1933_v5, %v1937_v60  ;;  %v1408_v17 = vor.u32 %v1407_v8, %v1403_v63  ;;  %v1412_v24 = vrot.slane %v1410_v11, 1  ;;  %v2024_v29 = vrot.slane %v6513_v46, 1  ;;  %v6747_v5 = vld [vmem:[#allocation2 + $0xa8] sm:$0xff]   ;;  %v6751_v8 = vld [vmem:[#allocation2 + $0x90] sm:$0xff]  }
  0xb0   : > { %2368 = vmatprep.mubr.bf16.mxu0 %v1914_v59  ;;  %v6718_v59 = vld [vmem:[#allocation2 + $0x9c] sm:$0xff]   ;;  %v1949_v12 = vrot.slane %v1947_v13, 1  ;;  %v1422_v37 = vshll.u32 %v6714_v14, 16  ;;  %v2025_v38 = vrot.slane %v6519_v51, 1  ;;  %v1415_v47 = vshrl.u32 %v6710_v2, 16 }
  0xb1   : > { %v1954_v3 = vshll.u32 %v6718_v59, 16  ;;  %v1952_v32 = vshrl.u32 %v6718_v59, 16  ;;  %v1413_v49 = vsel %vm1293_vm10, %v1408_v17, %v1412_v24  ;;  %v1959_v53 = vshll.u32 %v5960_v42, 16  ;;  %v6763_v17 = vld [vmem:[#allocation2 + $0x98] ss:$0 sps:$4 sm:$0x11]  }
  0xb2   : > { %v6733_v46 = vsel %vm1502_vm9, %v2024_v29, %v2025_v38  ;;  %v2028_v21 = vrot.slane %v6569_v26, 1  ;;  %v1424_v51 = vrot.slane %v1422_v37, 1  ;;  %v2030_v44 = vrot.slane %v6599_v34, 1  ;;  %v6776_v38 = vld [vmem:[#allocation2 + $0xb4] sm:$0xff]   ;;  %v6786_v42 = vld [vmem:[#allocation2 + $0x9c] sm:$0xff]  }
  0xb3   : > { %v1956_v43 = vrot.slane %v1954_v3, 1  ;;  %v1429_v57 = vshll.u32 %v6727_v45, 16  ;;  %v2031_v60 = vrot.slane %v6607_v0, 1  ;;  %v1961_v63 = vrot.slane %v1959_v53, 1 }
  0xb4   : > { %2819 = vmatmul.mubr.bf16.gmra.mrb[40].mxu1 %v6644_v23  ;;  %v1966_v26 = vshll.u32 %v6747_v5, 16  ;;  %v1434_v0 = vshll.u32 %v6736_v54, 16  ;;  %v2034_v19 = vrot.slane %v6628_v9, 1  ;;  %v2036_v3 = vrot.slane %v6664_v55, 1 }
  0xb5   : > { %2826 = vmatprep.mubr.bf16.mxu1 %v1389_v40  ;;  %v6754_v34 = vsel %vm1502_vm9, %v2030_v44, %v2031_v60  ;;  %v1431_v11 = vrot.slane %v1429_v57, 1  ;;  %v1957_v13 = vor.u32 %v1956_v43, %v1952_v32  ;;  %v1441_v55 = vshll.u32 %v6751_v8, 16  ;;  %v6782_v43 = vld [vmem:[%s7365_s3 + $0x200] sm:$0xff]   ;;  %v5964_v53 = vld [vmem:[#allocation2 + $0xbc] ss:$0 sps:$4 sm:$0x11]  }
  0xb6   : > { %5544 = vmatprep.subr.bf16.mxu1 %v6782_v43  ;;  %v1976_v44 = vshrl.u32 %v6776_v38, 16  ;;  %v1515_v60 = vrot.slane %v6597_v33, 1  ;;  %v6807_v33 = vld [vmem:[#allocation2 + $0xc0] sm:$0xff]  }
  0xb7   : > { %2369 = vmatmul.mubr.bf16.gmra.mrb[32].mxu0 %v6648_v31  ;;  %v1940_v31 = vshrl.u32 %v6706_v61, 16 }
  0xb8   : > { %2376 = vmatprep.mubr.bf16.mxu0 %v1926_v52  ;;  %v1419_v52 = vrot.slane %v1417_v25, 1  ;;  %v1968_v25 = vrot.slane %v1966_v26, 1  ;;  %v1519_v26 = vrot.slane %v6623_v4, 1  ;;  %v1521_v4 = vrot.slane %v6644_v23, 1 }
  0xb9   : > { %v1945_v40 = vor.u32 %v1944_v20, %v1940_v31  ;;  %v2033_v31 = vrot.slane %v6626_v10, 1  ;;  %v5962_v10 = vld [vmem:[#allocation2 + $0xb0] ss:$0 sps:$4 sm:$0x11]  }
  0xba   : > { %v1420_v62 = vor.u32 %v1419_v52, %v1415_v47  ;;  %v1971_v29 = vshll.u32 %v5962_v10, 16  ;;  %v1443_v52 = vrot.slane %v1441_v55, 1  ;;  %v1451_v10 = vshrl.u32 %v6786_v42, 16  ;;  %v5966_v55 = vld [vmem:[#allocation2 + $0xc8] ss:$0 sps:$4 sm:$0x11]  }
  0xbb   : > { %v6766_v24 = vsel %vm1502_vm9, %v2033_v31, %v2034_v19 }
  0xbc   : > { %2827 = vmatmul.mubr.bf16.gmra.mrb[44].mxu1 %v6656_v50  ;;  %v1425_v20 = vsel %vm1293_vm10, %v1420_v62, %v1424_v51  ;;  %v1973_v37 = vrot.slane %v1971_v29, 1  ;;  %v6790_v51 = vld [vmem:[#allocation2 + $0xa4] ss:$0 sps:$4 sm:$0x11]  }
  0xbd   : > { %2834 = vmatprep.mubr.bf16.mxu1 %v1401_v7  ;;  %v1427_v7 = vshrl.u32 %v6727_v45, 16 }
  0xbf   : > { %2377 = vmatmul.mubr.bf16.gmra.mrb[36].mxu0 %v6672_v1  ;;  %v2027_v1 = vrot.slane %v6564_v48, 1  ;;  %v1950_v48 = vsel %vm1293_vm10, %v1945_v40, %v1949_v12  ;;  %v1436_v12 = vrot.slane %v1434_v0, 1  ;;  %v1432_v32 = vor.u32 %v1431_v11, %v1427_v7 }
  0xc0   : > { %2384 = vmatprep.mubr.bf16.mxu0 %v1938_v16  ;;  %v2037_v16 = vrot.slane %v6666_v56, 1  ;;  %v1962_v56 = vsel %vm1293_vm10, %v1957_v13, %v1961_v63  ;;  %v1978_v40 = vshll.u32 %v6776_v38, 16  ;;  %v1518_v63 = vrot.slane %v6621_v41, 1 }
  0xc1   : > { %v6743_v58 = vsel %vm1502_vm9, %v2027_v1, %v2028_v21  ;;  %v1446_v1 = vshll.u32 %v6763_v17, 16  ;;  %v1983_v21 = vshll.u32 %v5964_v53, 16  ;;  %v1453_v0 = vshll.u32 %v6786_v42, 16 }
  0xc2   : > { %v6771_v9 = vsel %vm1502_vm9, %v2036_v3, %v2037_v16  ;;  %v1980_v57 = vrot.slane %v1978_v40, 1  ;;  %v6804_v13 = vsel %vm1502_vm9, %v1518_v63, %v1519_v26  ;;  %v1990_v41 = vshll.u32 %v6807_v33, 16 }
  0xc3   : > { %v1448_v11 = vrot.slane %v1446_v1, 1  ;;  %v1985_v19 = vrot.slane %v1983_v21, 1  ;;  %v1458_v3 = vshll.u32 %v6790_v51, 16  ;;  %v1522_v16 = vrot.slane %v6637_v22, 1 }
  0xc4   : > { %2835 = vmatmul.mubr.bf16.gmra.mrb[48].mxu1 %v6678_v15  ;;  %v1455_v29 = vrot.slane %v1453_v0, 1  ;;  %v1992_v40 = vrot.slane %v1990_v41, 1  ;;  %v1533_v21 = vrot.slane %v6710_v2, 1  ;;  %v1542_v0 = vrot.slane %v6786_v42, 1 }
  0xc5   : > { %2842 = vmatprep.mubr.bf16.mxu1 %v1413_v49  ;;  %v1439_v49 = vshrl.u32 %v6751_v8, 16  ;;  %v6821_v23 = vsel %vm1502_vm9, %v1521_v4, %v1522_v16 }
  0xc6   : > { %v1456_v1 = vor.u32 %v1455_v29, %v1451_v10 }
  0xc7   : > { %2385 = vmatmul.mubr.bf16.gmra.mrb[40].mxu0 %v6691_v39  ;;  %v1964_v39 = vshrl.u32 %v6747_v5, 16  ;;  %v1444_v7 = vor.u32 %v1443_v52, %v1439_v49  ;;  %v1530_v49 = vrot.slane %v6697_v6, 1  ;;  %v1531_v52 = vrot.slane %v6700_v36, 1  ;;  %v6842_v36 = vld [vmem:[#allocation2 + $0xb4] sm:$0xff]  }
  0xc8   : > { %2392 = vmatprep.mubr.bf16.mxu0 %v1950_v48  ;;  %v1516_v48 = vrot.slane %v6589_v27, 1  ;;  %v1981_v27 = vor.u32 %v1980_v57, %v1976_v44  ;;  %v1477_v41 = vshll.u32 %v6842_v36, 16  ;;  %v1548_v10 = vrot.slane %v6842_v36, 1 }
  0xc9   : > { %v1969_v47 = vor.u32 %v1968_v25, %v1964_v39  ;;  %v1524_v39 = vrot.slane %v6656_v50, 1  ;;  %v1525_v25 = vrot.slane %v6662_v28, 1  ;;  %v1527_v50 = vrot.slane %v6678_v15, 1 }
  0xca   : > { %v6801_v31 = vsel %vm1502_vm9, %v1515_v60, %v1516_v48  ;;  %v1986_v22 = vsel %vm1293_vm10, %v1981_v27, %v1985_v19  ;;  %v1528_v28 = vrot.slane %v6686_v18, 1  ;;  %v6838_v44 = vsel %vm1502_vm9, %v1530_v49, %v1531_v52  ;;  %v5970_v49 = vld [vmem:[#allocation2 + $0x20] ss:$0 sps:$4 sm:$0x11]  }
  0xcb   : > { %v1974_v62 = vsel %vm1293_vm10, %v1969_v47, %v1973_v37  ;;  %v6824_v37 = vsel %vm1502_vm9, %v1524_v39, %v1525_v25  ;;  %v1460_v47 = vrot.slane %v1458_v3, 1  ;;  %v1534_v18 = vrot.slane %v6714_v14, 1  ;;  %v5898_v14 = vld [vmem:[#allocation2 + $0xbc] ss:$0 sps:$4 sm:$0x11]  }
  0xcc   : > { %2843 = vmatmul.mubr.bf16.gmra.mrb[52].mxu1 %v6697_v6  ;;  %v6834_v53 = vsel %vm1502_vm9, %v1527_v50, %v1528_v28  ;;  %v1536_v60 = vrot.slane %v6727_v45, 1  ;;  %v1537_v48 = vrot.slane %v6736_v54, 1  ;;  %v1543_v19 = vrot.slane %v6790_v51, 1  ;;  %v5968_v25 = vld [vmem:[#allocation2 + $0x14] ss:$0 sps:$4 sm:$0x11]  }
  0xcd   : > { %2850 = vmatprep.mubr.bf16.mxu1 %v1425_v20  ;;  %v6810_v20 = vld [vmem:[#allocation2 + $0xa8] sm:$0xff]   ;;  %v6849_v26 = vsel %vm1502_vm9, %v1533_v21, %v1534_v18  ;;  %v1475_v51 = vshrl.u32 %v6842_v36, 16  ;;  %v1549_v29 = vrot.slane %v5898_v14, 1  ;;  %v2019_v52 = vrot.slane %v5970_v49, 1 }
  0xce   : > { %v1545_v3 = vrot.slane %v6810_v20, 1  ;;  %v5972_v21 = vld [vmem:[#allocation2 + $0x2c] ss:$0 sps:$4 sm:$0x11]  }
  0xcf   : > { %2393 = vmatmul.mubr.bf16.gmra.mrb[44].mxu0 %v6706_v61  ;;  %v1437_v61 = vsel %vm1293_vm10, %v1432_v32, %v1436_v12  ;;  %v1988_v12 = vshrl.u32 %v6807_v33, 16  ;;  %v5891_v32 = vld [vmem:[#allocation2 + $0xb0] ss:$0 sps:$4 sm:$0x11]  }
  0xd0   : > { %2400 = vmatprep.mubr.bf16.mxu0 %v1962_v56  ;;  %v1995_v56 = vshll.u32 %v5966_v55, 16  ;;  %v1470_v57 = vshll.u32 %v5891_v32, 16  ;;  %v1546_v39 = vrot.slane %v5891_v32, 1  ;;  %v1479_v55 = vrot.slane %v1477_v41, 1  ;;  %v5977_v41 = vld [vmem:[#allocation2 + $0x18] sm:$0xff]  }
  0xd1   : > { %v1993_v6 = vor.u32 %v1992_v40, %v1988_v12  ;;  %v5969_v40 = vld [vmem:[#allocation2 + $0x18] sm:$0xff]  }
  0xd2   : > { %v1997_v15 = vrot.slane %v1995_v56, 1  ;;  %v1482_v56 = vshll.u32 %v5898_v14, 16  ;;  %v1480_v50 = vor.u32 %v1479_v55, %v1475_v51  ;;  %v6916_v51 = vld [vmem:[#allocation2 + $0x20] ss:$0 sps:$4 sm:$0x11]  }
  0xd3   : > { %v3261_v49 = vshll.u32 %v6916_v51, 16 }
  0xd4   : > { %2851 = vmatmul.mubr.bf16.gmra.mrb[56].mxu1 %v6710_v2  ;;  %v1463_v2 = vshrl.u32 %v6810_v20, 16  ;;  %v1998_v54 = vsel %vm1293_vm10, %v1993_v6, %v1997_v15  ;;  %v1484_v28 = vrot.slane %v1482_v56, 1  ;;  %v2022_v15 = vrot.slane %v5972_v21, 1  ;;  %v5883_v6 = vld [vmem:[%s7365_s3 + $0x180] sm:$0xff]   ;;  %v5901_v21 = vld [vmem:[%s7365_s3 + $0x1f0] sm:$0xff]  }
  0xd5   : > { %2858 = vmatprep.mubr.bf16.mxu1 %v1437_v61  ;;  %v1465_v61 = vshll.u32 %v6810_v20, 16  ;;  %v5896_v56 = vld [vmem:[%s7365_s3 + $0x1a0] sm:$0xff]  }
  0xd6   : > { %v1485_v18 = vsel %vm1293_vm10, %v1480_v50, %v1484_v28  ;;  %v5980_v28 = vld [vmem:[#allocation2 + $0x2c] ss:$0 sps:$4 sm:$0x11]  }
  0xd7   : > { %2401 = vmatmul.mubr.bf16.gmra.mrb[48].mxu0 %v6718_v59  ;;  %v1449_v59 = vsel %vm1293_vm10, %v1444_v7, %v1448_v11  ;;  %v1467_v63 = vrot.slane %v1465_v61, 1  ;;  %v1539_v7 = vrot.slane %v6751_v8, 1  ;;  %v1472_v11 = vrot.slane %v1470_v57, 1 }
  0xd8   : > { %2408 = vmatprep.mubr.bf16.mxu0 %v1974_v62  ;;  %v1461_v62 = vsel %vm1293_vm10, %v1456_v1, %v1460_v47  ;;  %v2018_v47 = vrot.slane %v5969_v40, 1  ;;  %v5971_v1 = vld [vmem:[#allocation2 + $0x24] sm:$0xff]   ;;  %v1513_v40 = vrot.slane %v5980_v28, 1 }
  0xd9   : > { %v1468_v27 = vor.u32 %v1467_v63, %v1463_v2  ;;  %v2021_v61 = vrot.slane %v5971_v1, 1  ;;  %v5888_v63 = vld [vmem:[%s7365_s3 + $0x1d0] sm:$0xff]   ;;  %v5900_v1 = vld [vmem:[%s7365_s3 + $0x1a8] sm:$0xff]  }
  0xdb   : > { %v1473_v12 = vsel %vm1293_vm10, %v1468_v27, %v1472_v11  ;;  %v2023_v57 = vsel %vm1502_vm9, %v2021_v61, %v2022_v15  ;;  %v5976_v11 = vld [vmem:[#allocation2 + $0x14] ss:$0 sps:$4 sm:$0x11]   ;;  %v6905_v27 = vld [vmem:[#allocation2 + $0x18] sm:$0xff]  }
  0xdc   : > { %2859 = vmatmul.mubr.bf16.gmra.mrb[60].mxu1 %v6727_v45  ;;  %v1540_v45 = vrot.slane %v6763_v17, 1  ;;  %v5967_v17 = vld [vmem:[#allocation2 + $0xc] sm:$0xff]   ;;  %v3254_v35 = vshrl.u32 %v6905_v27, 16 }
  0xdd   : > { %2866 = vmatprep.mubr.bf16.mxu1 %v1449_v59  ;;  %v2015_v16 = vrot.slane %v5967_v17, 1  ;;  %v2016_v59 = vrot.slane %v5968_v25, 1  ;;  %v5978_v17 = vld [vmem:[#allocation2 + $0x20] ss:$0 sps:$4 sm:$0x11]  }
  0xde   : > { %v6862_v4 = vsel %vm1502_vm9, %v1539_v7, %v1540_v45  ;;  %v5889_v7 = vld [vmem:[%s7365_s3 + $0x190] sm:$0xff]   ;;  %v525_v25 = vld [vmem:[#allocation2 + $0xcc] sm:$0x1] }
  0xdf   : > { %2409 = vmatmul.mubr.bf16.gmra.mrb[52].mxu0 %v6747_v5  ;;  %v6852_v5 = vsel %vm1502_vm9, %v1536_v60, %v1537_v48  ;;  %v2017_v32 = vsel %vm1502_vm9, %v2015_v16, %v2016_v59  ;;  %v5973_v60 = vld [vmem:[#allocation2] sm:$0xff]   ;;  %v5975_v45 = vld [vmem:[#allocation2 + $0xc] sm:$0xff]   ;;  %v1510_v16 = vrot.slane %v5978_v17, 1 }
  0xe0   : > { %2416 = vmatprep.mubr.bf16.mxu0 %v1986_v22  ;;  %v6873_v22 = vsel %vm1502_vm9, %v1545_v3, %v1546_v39  ;;  %v1503_v48 = vrot.slane %v5973_v60, 1  ;;  %v1509_v3 = vrot.slane %v5977_v41, 1  ;;  %v5895_v59 = vld [vmem:[%s7365_s3 + $0x1e0] sm:$0xff]  }
  0xe1   : > { %v6986_v41 = vld [vmem:[#allocation2 + $0x3c] sm:$0xff]   ;;  %v6992_v17 = vld [vmem:[#allocation2 + $0x44] ss:$0 sps:$4 sm:$0x11]  }
  0xe4   : > { %2867 = vmatmul.mubr.bf16.gmra.mrb[64].mxu1 %v6751_v8  ;;  %v6866_v8 = vsel %vm1502_vm9, %v1542_v0, %v1543_v19  ;;  %v1507_v0 = vrot.slane %v5976_v11, 1  ;;  %v5892_v19 = vld [vmem:[%s7365_s3 + $0x1d8] sm:$0xff]  }
  0xe5   : > { %2874 = vmatprep.mubr.bf16.mxu1 %v1461_v62  ;;  %v5974_v62 = vld [vmem:[#allocation2 + $0x8] ss:$0 sps:$4 sm:$0x11]  }
  0xe6   : > { %v1504_v2 = vrot.slane %v5974_v62, 1 }
  0xe7   : > { %2417 = vmatmul.mubr.bf16.gmra.mrb[56].mxu0 %v6776_v38  ;;  %v6876_v38 = vsel %vm1502_vm9, %v1548_v10, %v1549_v29  ;;  %v3256_v10 = vshll.u32 %v6905_v27, 16  ;;  %v5910_v29 = vld [vmem:[%s7365_s3 + $0x208] sm:$0xff]  }
  0xe8   : > { %2424 = vmatprep.mubr.bf16.mxu0 %v1998_v54  ;;  %v1505_v14 = vsel %vm1502_vm9, %v1503_v48, %v1504_v2  ;;  %v1506_v54 = vrot.slane %v5975_v45, 1  ;;  %v6966_v2 = vld [vmem:[#allocation2 + $0x30] sm:$0xff]  }
  0xe9   : > { %v3280_v45 = vshll.u32 %v6966_v2, 16  ;;  %v3278_v11 = vshrl.u32 %v6966_v2, 16 }
  0xea   : > { %v1508_v39 = vsel %vm1502_vm9, %v1506_v54, %v1507_v0  ;;  %v5922_v54 = vld [vmem:[%s7365_s3 + $0x228] sm:$0xff]  }
  0xeb   : > { %v3282_v0 = vrot.slane %v3280_v45, 1 }
  0xec   : > { %2875 = vmatmul.mubr.bf16.gmra.mrb[68].mxu1 %v6786_v42  ;;  %v2020_v42 = vsel %vm1502_vm9, %v2018_v47, %v2019_v52  ;;  %v3258_v47 = vrot.slane %v3256_v10, 1  ;;  %v6936_v52 = vld [vmem:[#allocation2 + $0x24] sm:$0xff]  }
  0xed   : > { %2882 = vmatprep.mubr.bf16.mxu1 %v1473_v12  ;;  %v581_v12 = vld [vmem:[#allocation2 + $0xd4] sm:$0x1]  ;;  %v3266_v60 = vshrl.u32 %v6936_v52, 16 }
  0xee   : > { %v582_v55 = vsel %vm6159_vm4, 0, %v581_v12  ;;  %v3259_v15 = vor.u32 %v3258_v47, %v3254_v35 }
  0xef   : > { %2425 = vmatmul.mubr.bf16.gmra.mrb[60].mxu0 %v6807_v33  ;;  %v5886_v33 = vld [vmem:[%s7365_s3 + $0x1c8] sm:$0xff]   ;;  %583 = vst [vmem:[#allocation2 + $0xd4] sm:$0x1] %v582_v55 }
  0xf0   : > { %5464 = vmatprep.mubr.bf16.mxu0 %v2017_v32  ;;  %v5979_v32 = vld [vmem:[#allocation2 + $0x24] sm:$0xff]  }
  0xf1   : > { %v1512_v50 = vrot.slane %v5979_v32, 1 }
  0xf3   : > { %v1514_v61 = vsel %vm1502_vm9, %v1512_v50, %v1513_v40  ;;  %v7010_v50 = vld [vmem:[#allocation2 + $0x50] ss:$0 sps:$4 sm:$0x11]   ;;  %v7015_v40 = vld [vmem:[#allocation2 + $0x54] sm:$0xff]  }
  0xf4   : > { %2883 = vmatmul.mubr.bf16.gmra.mrb[72].mxu1 %v6810_v20  ;;  %v5887_v20 = vld [vmem:[%s7365_s3 + $0x188] sm:$0xff]  }
  0xf5   : > { %2890 = vmatprep.mubr.bf16.mxu1 %v1485_v18  ;;  %v3263_v18 = vrot.slane %v3261_v49, 1  ;;  %v3309_v49 = vshll.u32 %v7010_v50, 16 }
  0xf7   : > { %5465 = vmatmul.mubr.bf16.vlgmr.msra.gmra.mrb[64].mxu0 %v2020_v42  ;;  %v6950_v42 = vld [vmem:[#allocation2 + $0x2c] ss:$0 sps:$4 sm:$0x11]  }
  0xf8   : > { %5313 = vmatpush3.bf16.msra.mxu0 %v5883_v6  ;;  %5468 = vmatprep.mubr.bf16.mxu0 %v2023_v57  ;;  %v5916_v6 = vld [vmem:[%s7365_s3 + $0x218] sm:$0xff]   ;;  %v3264_v57 = vsel %vm1293_vm10, %v3259_v15, %v3263_v18  ;;  %v3273_v62 = vshll.u32 %v6950_v42, 16 }
  0xf9   : > { %5314 = vmatprep.subr.bf16.mxu0 %v5886_v33  ;;  %v5903_v33 = vld [vmem:[%s7365_s3 + $0x1f8] sm:$0xff]  }
  0xfc   : > { %2891 = vmatmul.mubr.bf16.gmra.mrb[76].mxu1 %v6842_v36  ;;  %5315 = vmatpush3.bf16.msra.mxu0 %v5887_v20  ;;  %v5893_v36 = vld [vmem:[%s7365_s3 + $0x198] sm:$0xff]  }
  0xfd   : > { %5512 = vmatprep.mubr.bf16.mxu1 %v1505_v14  ;;  %5316 = vmatprep.subr.bf16.mxu0 %v5888_v63  ;;  %v5904_v20 = vld [vmem:[%s7365_s3 + $0x1b8] sm:$0xff]   ;;  %v3275_v14 = vrot.slane %v3273_v62, 1 }
  0xff   : > { %5469 = vmatmul.mubr.bf16.gmra.mrb[68].mxu0 %v6733_v46  ;;  %v1511_v46 = vsel %vm1502_vm9, %v1509_v3, %v1510_v16  ;;  %v5925_v3 = vld [vmem:[%s7365_s3 + $0x230] sm:$0xff]   ;;  %v3292_v16 = vshll.u32 %v6986_v41, 16 }
 0x100   : > { %5317 = vmatpush3.bf16.msra.mxu0 %v5889_v7  ;;  %5472 = vmatprep.mubr.bf16.mxu0 %v6743_v58  ;;  %v526_v58 = vsel %vm6149_vm3, 0, %v525_v25  ;;  %v6975_v7 = vld [vmem:[#allocation2 + $0x38] ss:$0 sps:$4 sm:$0x11]   ;;  %v3290_v25 = vshrl.u32 %v6986_v41, 16 }
 0x101   : > { %5318 = vmatprep.subr.bf16.mxu0 %v5892_v19  ;;  %527 = vst [vmem:[#allocation2 + $0xcc] sm:$0x1] %v526_v58  ;;  %v3285_v19 = vshll.u32 %v6975_v7, 16  ;;  %v7003_v58 = vld [vmem:[#allocation2 + $0x48] sm:$0xff]  }
 0x102   : > { %v3304_v28 = vshll.u32 %v7003_v58, 16  ;;  %v3302_v35 = vshrl.u32 %v7003_v58, 16 }
 0x104   : > { %5513 = vmatmul.mubr.bf16.vlgmr.msra.gmra.mrb[80].mxu1 %v1508_v39  ;;  %5319 = vmatpush3.bf16.msra.mxu0 %v5893_v36  ;;  %v5928_v36 = vld [vmem:[%s7365_s3 + $0x238] sm:$0xff]   ;;  %v3306_v47 = vrot.slane %v3304_v28, 1 }
 0x105   : > { %5545 = vmatpush3.bf16.msra.mxu1 %v6782_v43  ;;  %5320 = vmatprep.subr.bf16.mxu0 %v5895_v59  ;;  %v5913_v43 = vld [vmem:[%s7365_s3 + $0x210] sm:$0xff]  }
 0x106   : > { %5516 = vmatprep.mubr.bf16.mxu1 %v1511_v46  ;;  %5546 = vmatprep.subr.bf16.mxu1 %v5910_v29  ;;  %v3294_v46 = vrot.slane %v3292_v16, 1  ;;  %v3465_v16 = vrot.slane %v6950_v42, 1 }
 0x107   : > { %5473 = vmatmul.mubr.bf16.gmra.mrb[72].mxu0 %v6754_v34  ;;  %v3268_v34 = vshll.u32 %v6936_v52, 16 }
 0x108   : > { %5321 = vmatpush3.bf16.msra.mxu0 %v5896_v56  ;;  %5476 = vmatprep.mubr.bf16.mxu0 %v6766_v24  ;;  %v5902_v24 = vld [vmem:[%s7365_s3 + $0x1b0] sm:$0xff]  }
 0x109   : > { %5322 = vmatprep.subr.bf16.mxu0 %v5899_v30  ;;  %5547 = vmatpush3.bf16.msra.mxu1 %v5910_v29  ;;  %v3270_v48 = vrot.slane %v3268_v34, 1  ;;  %v3297_v29 = vshll.u32 %v6992_v17, 16  ;;  %v7029_v34 = vld [vmem:[#allocation2 + $0x60] sm:$0xff]  }
 0x10a   : > { %5548 = vmatprep.subr.bf16.mxu1 %v5913_v43  ;;  %v3328_v62 = vshll.u32 %v7029_v34, 16 }
 0x10b   : > { %v3271_v63 = vor.u32 %v3270_v48, %v3266_v60  ;;  %v3299_v32 = vrot.slane %v3297_v29, 1  ;;  %v7034_v48 = vld [vmem:[#allocation2 + $0x68] ss:$0 sps:$4 sm:$0x11]  }
 0x10c   : > { %5517 = vmatmul.mubr.bf16.gmra.mrb[84].mxu1 %v1514_v61  ;;  %5323 = vmatpush3.bf16.msra.mxu0 %v5900_v1  ;;  %v3316_v1 = vshll.u32 %v7015_v40, 16  ;;  %v3307_v61 = vor.u32 %v3306_v47, %v3302_v35  ;;  %v3330_v45 = vrot.slane %v3328_v62, 1  ;;  %v7065_v29 = vld [vmem:[#allocation2 + $0x80] ss:$0 sps:$4 sm:$0x11]   ;;  %v3473_v35 = vrot.slane %v7003_v58, 1 }
 0x10d   : > { %5520 = vmatprep.mubr.bf16.mxu1 %v6801_v31  ;;  %5324 = vmatprep.subr.bf16.mxu0 %v5901_v21  ;;  %v5919_v31 = vld [vmem:[%s7365_s3 + $0x220] sm:$0xff]   ;;  %v3357_v28 = vshll.u32 %v7065_v29, 16  ;;  %v3474_v47 = vrot.slane %v7010_v50, 1  ;;  %v7093_v62 = vld [vmem:[#allocation2 + $0x90] sm:$0xff]  }
 0x10e   : > { %5549 = vmatpush3.bf16.msra.mxu1 %v5913_v43  ;;  %v7021_v43 = vld [vmem:[#allocation2 + $0x5c] ss:$0 sps:$4 sm:$0x11]   ;;  %v3318_v21 = vrot.slane %v3316_v1, 1 }
 0x10f   : > { %5550 = vmatprep.subr.bf16.mxu1 %v5916_v6  ;;  %5477 = vmatmul.mubr.bf16.gmra.mrb[76].mxu0 %v6771_v9  ;;  %v3276_v9 = vsel %vm1293_vm10, %v3271_v63, %v3275_v14  ;;  %v3321_v15 = vshll.u32 %v7021_v43, 16  ;;  %v3326_v63 = vshrl.u32 %v7029_v34, 16  ;;  %v7043_v14 = vld [vmem:[#allocation2 + $0x6c] sm:$0xff]  }
 0x110   : > { %5325 = vmatpush3.bf16.msra.mxu0 %v5902_v24  ;;  %3750 = vmatprep.mubr.bf16.mxu0 %v3264_v57 }
 0x111   : > { %5326 = vmatprep.subr.bf16.mxu0 %v5903_v33  ;;  %v3323_v57 = vrot.slane %v3321_v15, 1 }
 0x112   : > { %5551 = vmatpush3.bf16.msra.mxu1 %v5916_v6 }
 0x113   : > { %5552 = vmatprep.subr.bf16.mxu1 %v5919_v31 }
 0x114   : > { %5521 = vmatmul.mubr.bf16.gmra.mrb[88].mxu1 %v6804_v13  ;;  %5327 = vmatpush3.bf16.msra.mxu0 %v5904_v20  ;;  %v3283_v13 = vor.u32 %v3282_v0, %v3278_v11  ;;  %v3462_v11 = vrot.slane %v6916_v51, 1  ;;  %v7049_v0 = vld [vmem:[#allocation2 + $0x74] ss:$0 sps:$4 sm:$0x11]   ;;  %v3464_v51 = vrot.slane %v6936_v52, 1 }
 0x115   : > { %5524 = vmatprep.mubr.bf16.mxu1 %v6821_v23  ;;  %v3287_v23 = vrot.slane %v3285_v19, 1  ;;  %v3331_v19 = vor.u32 %v3330_v45, %v3326_v63  ;;  %v5934_v45 = vld [vmem:[#allocation2 + $0x98] ss:$0 sps:$4 sm:$0x11]  }
 0x116   : > { %5553 = vmatpush3.bf16.msra.mxu1 %v5919_v31 }
 0x117   : > { %5554 = vmatprep.subr.bf16.mxu1 %v5922_v54  ;;  %3751 = vmatmul.mubr.bf16.vlgmr.msra.gmra.mrb[80].mxu0 %v6905_v27  ;;  %v3288_v10 = vsel %vm1293_vm10, %v3283_v13, %v3287_v23  ;;  %v3338_v13 = vshrl.u32 %v7043_v14, 16 }
 0x118   : > { %3758 = vmatprep.mubr.bf16.mxu0 %v3276_v9  ;;  %v3461_v9 = vrot.slane %v6905_v27, 1  ;;  %v3345_v27 = vshll.u32 %v7049_v0, 16 }
 0x11a   : > { %5555 = vmatpush3.bf16.msra.mxu1 %v5922_v54  ;;  %v3333_v54 = vshll.u32 %v7034_v48, 16 }
 0x11b   : > { %5556 = vmatprep.subr.bf16.mxu1 %v5925_v3 }
 0x11c   : > { %5525 = vmatmul.mubr.bf16.gmra.mrb[92].mxu1 %v6824_v37  ;;  %v5056_v39 = vpop.f32.mrb[0].mxu0 }
 0x11d   : > { %5528 = vmatprep.mubr.bf16.mxu1 %v6834_v53  ;;  %v5057_v59 = vpop.f32.mrb[1].mxu0  ;;  %v3295_v53 = vor.u32 %v3294_v46, %v3290_v25  ;;  %v3467_v25 = vrot.slane %v6966_v2, 1  ;;  %v3466_v46 = vsel %vm1502_vm9, %v3464_v51, %v3465_v16 }
 0x11e   : > { %5557 = vmatpush3.bf16.msra.mxu1 %v5925_v3  ;;  %v7005_v12 = vadd.f32 %v5057_v59, %v5056_v39  ;;  %v5059_v55 = vpop.f32.mrb[2].mxu0  ;;  %v3335_v3 = vrot.slane %v3333_v54, 1  ;;  %v7059_v39 = vld [vmem:[#allocation2 + $0x78] sm:$0xff]   ;;  %v3468_v59 = vrot.slane %v6975_v7, 1  ;;  %v3470_v7 = vrot.slane %v6986_v41, 1 }
 0x11f   : > { %v5060_v56 = vpop.f32.mrb[3].mxu0  ;;  %5558 = vmatprep.subr.bf16.mxu1 %v5928_v36  ;;  %3759 = vmatmul.mubr.bf16.gmra.mrb[84].mxu0 %v6936_v52  ;;  %v3300_v30 = vsel %vm1293_vm10, %v3295_v53, %v3299_v32  ;;  %v3352_v52 = vshll.u32 %v7059_v39, 16  ;;  %v7073_v53 = vld [vmem:[#allocation2 + $0x84] sm:$0xff]  }
 0x120   : > { %v7008_v37 = vadd.f32 %v5060_v56, %v5059_v55  ;;  %3766 = vmatprep.mubr.bf16.mxu0 %v3288_v10  ;;  %v3347_v10 = vrot.slane %v3345_v27, 1  ;;  %v3469_v42 = vsel %vm1502_vm9, %v3467_v25, %v3468_v59  ;;  %v3471_v56 = vrot.slane %v6992_v17, 1 }
 0x121   : > { %v3354_v32 = vrot.slane %v3352_v52, 1  ;;  %v3362_v50 = vshrl.u32 %v7073_v53, 16 }
 0x122   : > { %5559 = vmatpush3.bf16.msra.mxu1 %v5928_v36  ;;  %v3336_v36 = vsel %vm1293_vm10, %v3331_v19, %v3335_v3  ;;  %v7104_v19 = vld [vmem:[#allocation2 + $0x9c] sm:$0xff]  }
 0x123   : > { %v3388_v25 = vshll.u32 %v7104_v19, 16 }
 0x124   : > { %5529 = vmatmul.mubr.bf16.gmra.mrb[0].mxu1 %v6838_v44  ;;  %v3311_v44 = vrot.slane %v3309_v49, 1 }
 0x125   : > { %5532 = vmatprep.mubr.bf16.mxu1 %v6849_v26  ;;  %v3314_v26 = vshrl.u32 %v7015_v40, 16 }
 0x126   : > { %v3312_v18 = vsel %vm1293_vm10, %v3307_v61, %v3311_v44  ;;  %v3364_v44 = vshll.u32 %v7073_v53, 16 }
 0x127   : > { %3767 = vmatmul.mubr.bf16.gmra.mrb[88].mxu0 %v6966_v2  ;;  %v3319_v33 = vor.u32 %v3318_v21, %v3314_v26  ;;  %v3350_v2 = vshrl.u32 %v7059_v39, 16  ;;  %v3359_v21 = vrot.slane %v3357_v28, 1 }
 0x128   : > { %3774 = vmatprep.mubr.bf16.mxu0 %v3300_v30 }
 0x129   : > { %v3324_v20 = vsel %vm1293_vm10, %v3319_v33, %v3323_v57  ;;  %v3355_v26 = vor.u32 %v3354_v32, %v3350_v2  ;;  %v3477_v33 = vrot.slane %v7021_v43, 1  ;;  %v3376_v43 = vshll.u32 %v7093_v62, 16 }
 0x12b   : > { %v3360_v57 = vsel %vm1293_vm10, %v3355_v26, %v3359_v21 }
 0x12c   : > { %5533 = vmatmul.mubr.bf16.gmra.mrb[4].mxu1 %v6852_v5 }
 0x12d   : > { %5536 = vmatprep.mubr.bf16.mxu1 %v6862_v4 }
 0x12f   : > { %v5062_v6 = vpop.f32.mrb[4].mxu0  ;;  %3775 = vmatmul.mubr.bf16.gmra.mrb[92].mxu0 %v6986_v41  ;;  %v3472_v41 = vsel %vm1502_vm9, %v3470_v7, %v3471_v56  ;;  %v3488_v7 = vrot.slane %v7073_v53, 1 }
 0x130   : > { %v5063_v24 = vpop.f32.mrb[5].mxu0  ;;  %3782 = vmatprep.mubr.bf16.mxu0 %v3312_v18  ;;  %v7085_v18 = vld [vmem:[#allocation2 + $0x8c] ss:$0 sps:$4 sm:$0x11]  }
 0x131   : > { %v7032_v60 = vadd.f32 %v5063_v24, %v5062_v6  ;;  %v5065_v5 = vpop.f32.mrb[6].mxu0  ;;  %v3366_v6 = vrot.slane %v3364_v44, 1  ;;  %v3476_v24 = vrot.slane %v7015_v40, 1  ;;  %v3489_v56 = vrot.slane %v7085_v18, 1 }
 0x132   : > { %v5066_v31 = vpop.f32.mrb[7].mxu0 }
 0x133   : > { %v7037_v4 = vadd.f32 %v5066_v31, %v5065_v5  ;;  %v3369_v5 = vshll.u32 %v7085_v18, 16  ;;  %v3479_v31 = vrot.slane %v7029_v34, 1  ;;  %v3478_v63 = vsel %vm1502_vm9, %v3476_v24, %v3477_v33 }
 0x134   : > { %5537 = vmatmul.mubr.bf16.gmra.mrb[8].mxu1 %v6866_v8  ;;  %v3340_v8 = vshll.u32 %v7043_v14, 16  ;;  %v3367_v54 = vor.u32 %v3366_v6, %v3362_v50  ;;  %v3490_v18 = vsel %vm1502_vm9, %v3488_v7, %v3489_v56 }
 0x135   : > { %5540 = vmatprep.mubr.bf16.mxu1 %v6873_v22  ;;  %v3463_v22 = vsel %vm1502_vm9, %v3461_v9, %v3462_v11  ;;  %v3374_v11 = vshrl.u32 %v7093_v62, 16 }
 0x136   : > { %v3342_v23 = vrot.slane %v3340_v8, 1  ;;  %v3381_v8 = vshll.u32 %v5934_v45, 16 }
 0x137   : > { %3783 = vmatmul.mubr.bf16.gmra.mrb[96].mxu0 %v7003_v58  ;;  %v3475_v58 = vsel %vm1502_vm9, %v3473_v35, %v3474_v47  ;;  %v7123_v35 = vld [vmem:[#allocation2 + $0xa8] sm:$0xff]   ;;  %v3491_v47 = vrot.slane %v7093_v62, 1 }
 0x138   : > { %3790 = vmatprep.mubr.bf16.mxu0 %v3324_v20  ;;  %v3480_v20 = vrot.slane %v7034_v48, 1  ;;  %v3483_v48 = vrot.slane %v7049_v0, 1  ;;  %v5936_v0 = vld [vmem:[#allocation2 + $0xa4] ss:$0 sps:$4 sm:$0x11]   ;;  %v3400_v33 = vshll.u32 %v7123_v35, 16 }
 0x139   : > { %v3393_v2 = vshll.u32 %v5936_v0, 16 }
 0x13a   : > { %v3481_v9 = vsel %vm1502_vm9, %v3479_v31, %v3480_v20  ;;  %v3494_v20 = vrot.slane %v7104_v19, 1 }
 0x13b   : > { %v3395_v6 = vrot.slane %v3393_v2, 1 }
 0x13c   : > { %5541 = vmatmul.mubr.bf16.gmra.mrb[12].mxu1 %v6876_v38  ;;  %v3343_v38 = vor.u32 %v3342_v23, %v3338_v13  ;;  %v3485_v13 = vrot.slane %v7059_v39, 1  ;;  %v3486_v23 = vrot.slane %v7065_v29, 1 }
 0x13d   : > { %5560 = vmatprep.mubr.bf16.mxu1 %v3463_v22  ;;  %v3378_v22 = vrot.slane %v3376_v43, 1  ;;  %v3497_v43 = vrot.slane %v7123_v35, 1 }
 0x13e   : > { %v3348_v55 = vsel %vm1293_vm10, %v3343_v38, %v3347_v10  ;;  %v3383_v38 = vrot.slane %v3381_v8, 1 }
 0x13f   : > { %3791 = vmatmul.mubr.bf16.gmra.mrb[100].mxu0 %v7015_v40  ;;  %v3371_v40 = vrot.slane %v3369_v5, 1  ;;  %v3379_v59 = vor.u32 %v3378_v22, %v3374_v11 }
 0x140   : > { %3798 = vmatprep.mubr.bf16.mxu0 %v3336_v36 }
 0x141   : > { %v3372_v3 = vsel %vm1293_vm10, %v3367_v54, %v3371_v40  ;;  %v3402_v54 = vrot.slane %v3400_v33, 1  ;;  %v7139_v40 = vld [vmem:[#allocation2 + $0xb4] sm:$0xff]  }
 0x144   : > { %5561 = vmatmul.mubr.bf16.vlgmr.msra.gmra.mrb[80].mxu1 %v3466_v46  ;;  %v3487_v46 = vsel %vm1502_vm9, %v3485_v13, %v3486_v23 }
 0x145   : > { %5564 = vmatprep.mubr.bf16.mxu1 %v3469_v42 }
 0x146   : > { %v5068_v30 = vpop.f32.mrb[8].mxu0 }
 0x147   : > { %v5069_v49 = vpop.f32.mrb[9].mxu0  ;;  %3799 = vmatmul.mubr.bf16.gmra.mrb[104].mxu0 %v7029_v34  ;;  %v3482_v34 = vrot.slane %v7043_v14, 1 }
 0x148   : > { %v7079_v1 = vadd.f32 %v5069_v49, %v5068_v30  ;;  %v5071_v61 = vpop.f32.mrb[10].mxu0  ;;  %3806 = vmatprep.mubr.bf16.mxu0 %v3348_v55  ;;  %v3390_v55 = vrot.slane %v3388_v25, 1  ;;  %v3384_v30 = vsel %vm1293_vm10, %v3379_v59, %v3383_v38  ;;  %v3492_v49 = vrot.slane %v5934_v45, 1 }
 0x149   : > { %v5072_v17 = vpop.f32.mrb[11].mxu0  ;;  %v3412_v59 = vshll.u32 %v7139_v40, 16 }
 0x14a   : > { %v7083_v15 = vadd.f32 %v5072_v17, %v5071_v61 }
 0x14b   : > { %v3414_v56 = vrot.slane %v3412_v59, 1 }
 0x14c   : > { %5565 = vmatmul.mubr.bf16.gmra.mrb[84].mxu1 %v3472_v41 }
 0x14d   : > { %5568 = vmatprep.mubr.bf16.mxu1 %v3475_v58  ;;  %v5938_v58 = vld [vmem:[#allocation2 + $0xb0] ss:$0 sps:$4 sm:$0x11]  }
 0x14e   : > { %v3405_v31 = vshll.u32 %v5938_v58, 16 }
 0x14f   : > { %3807 = vmatmul.mubr.bf16.gmra.mrb[108].mxu0 %v7043_v14  ;;  %v3484_v14 = vsel %vm1502_vm9, %v3482_v34, %v3483_v48 }
 0x150   : > { %3814 = vmatprep.mubr.bf16.mxu0 %v3360_v57  ;;  %v3493_v57 = vsel %vm1502_vm9, %v3491_v47, %v3492_v49 }
 0x154   : > { %5569 = vmatmul.mubr.bf16.gmra.mrb[88].mxu1 %v3478_v63  ;;  %v3495_v63 = vrot.slane %v5936_v0, 1  ;;  %v3407_v0 = vrot.slane %v3405_v31, 1 }
 0x155   : > { %5572 = vmatprep.mubr.bf16.mxu1 %v3481_v9  ;;  %v3498_v9 = vrot.slane %v5938_v58, 1 }
 0x157   : > { %v5192_v27 = vpop.f32.mrb[16].mxu1  ;;  %3815 = vmatmul.mubr.bf16.gmra.mrb[112].mxu0 %v7059_v39  ;;  %v3386_v39 = vshrl.u32 %v7104_v19, 16 }
 0x158   : > { %v5193_v51 = vpop.f32.mrb[17].mxu1  ;;  %3822 = vmatprep.mubr.bf16.mxu0 %v3372_v3  ;;  %v5940_v3 = vld [vmem:[#allocation2 + $0xbc] ss:$0 sps:$4 sm:$0x11]  }
 0x159   : > { %v7110_v16 = vadd.f32 %v5193_v51, %v5192_v27  ;;  %v5195_v36 = vpop.f32.mrb[18].mxu1  ;;  %v3391_v50 = vor.u32 %v3390_v55, %v3386_v39  ;;  %v3496_v51 = vsel %vm1502_vm9, %v3494_v20, %v3495_v63  ;;  %v5942_v39 = vld [vmem:[#allocation2 + $0xc8] ss:$0 sps:$4 sm:$0x11]   ;;  %v3500_v55 = vrot.slane %v7139_v40, 1 }
 0x15a   : > { %v5196_v10 = vpop.f32.mrb[19].mxu1  ;;  %v3501_v2 = vrot.slane %v5940_v3, 1 }
 0x15b   : > { %v7115_v52 = vadd.f32 %v5196_v10, %v5195_v36  ;;  %v3396_v45 = vsel %vm1293_vm10, %v3391_v50, %v3395_v6  ;;  %v7164_v50 = vld [vmem:[#allocation2 + $0xcc] sm:$0xff]   ;;  %v5944_v6 = vld [vmem:[#allocation2 + $0xd4] ss:$0 sps:$4 sm:$0x11]  }
 0x15c   : > { %v5074_v29 = vpop.f32.mrb[12].mxu0  ;;  %5573 = vmatmul.mubr.bf16.gmra.mrb[92].mxu1 %v3484_v14  ;;  %v3502_v58 = vsel %vm1502_vm9, %v3500_v55, %v3501_v2 }
 0x15d   : > { %v5075_v42 = vpop.f32.mrb[13].mxu0  ;;  %5576 = vmatprep.mubr.bf16.mxu1 %v3487_v46  ;;  %v3417_v46 = vshll.u32 %v5940_v3, 16 }
 0x15e   : > { %v7120_v32 = vadd.f32 %v5075_v42, %v5074_v29  ;;  %v5077_v28 = vpop.f32.mrb[14].mxu0  ;;  %v7154_v29 = vld [vmem:[#allocation2 + $0xc0] sm:$0xff]   ;;  %v3410_v42 = vshrl.u32 %v7139_v40, 16 }
 0x15f   : > { %v5078_v61 = vpop.f32.mrb[15].mxu0  ;;  %v5198_v41 = vpop.f32.mrb[20].mxu1  ;;  %3823 = vmatmul.mubr.bf16.gmra.mrb[116].mxu0 %v7073_v53  ;;  %v3398_v53 = vshrl.u32 %v7123_v35, 16 }
 0x160   : > { %v7127_v17 = vadd.f32 %v5078_v61, %v5077_v28  ;;  %v5199_v44 = vpop.f32.mrb[21].mxu1  ;;  %3830 = vmatprep.mubr.bf16.mxu0 %v3384_v30  ;;  %v3503_v28 = vrot.slane %v7154_v29, 1  ;;  %v3504_v30 = vrot.slane %v5942_v39, 1  ;;  %v3419_v61 = vrot.slane %v3417_v46, 1 }
 0x161   : > { %v7129_v26 = vadd.f32 %v5199_v44, %v5198_v41  ;;  %v5201_v21 = vpop.f32.mrb[22].mxu1  ;;  %v3403_v14 = vor.u32 %v3402_v54, %v3398_v53  ;;  %v3506_v54 = vrot.slane %v7164_v50, 1 }
 0x162   : > { %v5202_v24 = vpop.f32.mrb[23].mxu1  ;;  %v3505_v31 = vsel %vm1502_vm9, %v3503_v28, %v3504_v30  ;;  %v3441_v28 = vshll.u32 %v5944_v6, 16 }
 0x163   : > { %v7134_v5 = vadd.f32 %v5202_v24, %v5201_v21  ;;  %v3408_v7 = vsel %vm1293_vm10, %v3403_v14, %v3407_v0 }
 0x164   : > { %5577 = vmatmul.mubr.bf16.gmra.mrb[0].mxu1 %v3490_v18 }
 0x165   : > { %5580 = vmatprep.mubr.bf16.mxu1 %v3493_v57  ;;  %v3415_v57 = vor.u32 %v3414_v56, %v3410_v42 }
 0x167   : > { %v5080_v11 = vpop.f32.mrb[16].mxu0  ;;  %v5204_v8 = vpop.f32.mrb[24].mxu1  ;;  %3831 = vmatmul.mubr.bf16.gmra.mrb[120].mxu0 %v7093_v62  ;;  %v3499_v62 = vsel %vm1502_vm9, %v3497_v43, %v3498_v9  ;;  %v3507_v43 = vrot.slane %v5944_v6, 1  ;;  %v3420_v9 = vsel %vm1293_vm10, %v3415_v57, %v3419_v61 }
 0x168   : > { %v5081_v34 = vpop.f32.mrb[17].mxu0  ;;  %v5205_v48 = vpop.f32.mrb[25].mxu1  ;;  %3838 = vmatprep.mubr.bf16.mxu0 %v3396_v45 }
 0x169   : > { %v7143_v22 = vadd.f32 %v5081_v34, %v5080_v11  ;;  %v5083_v13 = vpop.f32.mrb[18].mxu0  ;;  %v7145_v23 = vadd.f32 %v5205_v48, %v5204_v8  ;;  %v5207_v27 = vpop.f32.mrb[26].mxu1  ;;  %v3422_v11 = vshrl.u32 %v7154_v29, 16  ;;  %v3429_v34 = vshll.u32 %v5942_v39, 16 }
 0x16a   : > { %v5084_v36 = vpop.f32.mrb[19].mxu0  ;;  %v5208_v25 = vpop.f32.mrb[27].mxu1  ;;  %v3508_v14 = vsel %vm1502_vm9, %v3506_v54, %v3507_v43  ;;  %v3436_v39 = vshll.u32 %v7164_v50, 16 }
 0x16b   : > { %v7150_v38 = vadd.f32 %v5084_v36, %v5083_v13  ;;  %v7152_v10 = vadd.f32 %v5208_v25, %v5207_v27 }
 0x16c   : > { %5581 = vmatmul.mubr.bf16.gmra.mrb[4].mxu1 %v3496_v51  ;;  %v3438_v56 = vrot.slane %v3436_v39, 1 }
 0x16d   : > { %5584 = vmatprep.mubr.bf16.mxu1 %v3499_v62  ;;  %v3431_v62 = vrot.slane %v3429_v34, 1 }
 0x16f   : > { %v5210_v47 = vpop.f32.mrb[28].mxu1  ;;  %3839 = vmatmul.mubr.bf16.gmra.mrb[124].mxu0 %v7104_v19  ;;  %v3424_v19 = vshll.u32 %v7154_v29, 16 }
 0x170   : > { %v5211_v41 = vpop.f32.mrb[29].mxu1  ;;  %3846 = vmatprep.mubr.bf16.mxu0 %v3408_v7  ;;  %v3434_v7 = vshrl.u32 %v7164_v50, 16 }
 0x171   : > { %v5086_v49 = vpop.f32.mrb[20].mxu0  ;;  %v7161_v21 = vadd.f32 %v5211_v41, %v5210_v47  ;;  %v5213_v18 = vpop.f32.mrb[30].mxu1  ;;  %v3426_v8 = vrot.slane %v3424_v19, 1 }
 0x172   : > { %v5087_v44 = vpop.f32.mrb[21].mxu0  ;;  %v5214_v53 = vpop.f32.mrb[31].mxu1  ;;  %v3439_v41 = vor.u32 %v3438_v56, %v3434_v7 }
 0x173   : > { %v7166_v24 = vadd.f32 %v5087_v44, %v5086_v49  ;;  %v5089_v33 = vpop.f32.mrb[22].mxu0  ;;  %v7170_v63 = vadd.f32 %v5214_v53, %v5213_v18  ;;  %v3427_v59 = vor.u32 %v3426_v8, %v3422_v11  ;;  %v3443_v44 = vrot.slane %v3441_v28, 1 }
 0x174   : > { %v5090_v20 = vpop.f32.mrb[23].mxu0  ;;  %5585 = vmatmul.mubr.bf16.gmra.mrb[8].mxu1 %v3502_v58 }
 0x175   : > { %v7172_v45 = vadd.f32 %v5090_v20, %v5089_v33  ;;  %5588 = vmatprep.mubr.bf16.mxu1 %v3505_v31  ;;  %v3432_v2 = vsel %vm1293_vm10, %v3427_v59, %v3431_v62  ;;  %v3444_v6 = vsel %vm1293_vm10, %v3439_v41, %v3443_v44 }
 0x177   : > { %v5216_v48 = vpop.f32.mrb[32].mxu1  ;;  %3847 = vmatmul.mubr.bf16.gmra.mrb[128].mxu0 %v7123_v35 }
 0x178   : > { %v5217_v13 = vpop.f32.mrb[33].mxu1  ;;  %3854 = vmatprep.mubr.bf16.mxu0 %v3420_v9 }
 0x179   : > { %v5092_v3 = vpop.f32.mrb[24].mxu0  ;;  %v7178_v51 = vadd.f32 %v5217_v13, %v5216_v48  ;;  %v5219_v36 = vpop.f32.mrb[34].mxu1 }
 0x17a   : > { %v5093_v27 = vpop.f32.mrb[25].mxu0  ;;  %v5220_v46 = vpop.f32.mrb[35].mxu1 }
 0x17b   : > { %v7181_v0 = vadd.f32 %v5093_v27, %v5092_v3  ;;  %v5095_v25 = vpop.f32.mrb[26].mxu0  ;;  %v7184_v55 = vadd.f32 %v5220_v46, %v5219_v36 }
 0x17c   : > { %v5096_v42 = vpop.f32.mrb[27].mxu0  ;;  %5589 = vmatmul.mubr.bf16.gmra.mrb[12].mxu1 %v3508_v14 }
 0x17d   : > { %v7186_v35 = vadd.f32 %v5096_v42, %v5095_v25 }
 0x17f   : > { %v5222_v30 = vpop.f32.mrb[36].mxu1  ;;  %3855 = vmatmul.mubr.bf16.gmra.mrb[132].mxu0 %v7139_v40 }
 0x180   : > { %v5223_v47 = vpop.f32.mrb[37].mxu1  ;;  %3862 = vmatprep.mubr.bf16.mxu0 %v3432_v2 }
 0x181   : > { %v7191_v49 = vadd.f32 %v5223_v47, %v5222_v30  ;;  %v5225_v61 = vpop.f32.mrb[38].mxu1 }
 0x182   : > { %v5226_v18 = vpop.f32.mrb[39].mxu1  ;;  %v5098_v58 = vpop.f32.mrb[28].mxu0 }
 0x183   : > { %v7193_v33 = vadd.f32 %v5226_v18, %v5225_v61  ;;  %v5099_v57 = vpop.f32.mrb[29].mxu0 }
 0x184   : > { %v7195_v53 = vadd.f32 %v5099_v57, %v5098_v58  ;;  %v5101_v19 = vpop.f32.mrb[30].mxu0 }
 0x185   : > { %v5102_v31 = vpop.f32.mrb[31].mxu0 }
 0x186   : > { %v7198_v20 = vadd.f32 %v5102_v31, %v5101_v19 }
 0x187   : > { %v5228_v40 = vpop.f32.mrb[40].mxu1  ;;  %3863 = vmatmul.mubr.bf16.gmra.mrb[136].mxu0 %v7154_v29 }
 0x188   : > { %v5229_v54 = vpop.f32.mrb[41].mxu1  ;;  %3870 = vmatprep.mubr.bf16.mxu0 %v3444_v6 }
 0x189   : > { %v7201_v43 = vadd.f32 %v5229_v54, %v5228_v40  ;;  %v5231_v9 = vpop.f32.mrb[42].mxu1 }
 0x18a   : > { %v5232_v11 = vpop.f32.mrb[43].mxu1  ;;  %v5104_v8 = vpop.f32.mrb[32].mxu0 }
 0x18b   : > { %v7203_v34 = vadd.f32 %v5232_v11, %v5231_v9  ;;  %v5105_v48 = vpop.f32.mrb[33].mxu0 }
 0x18c   : > { %v5106_v3 = vadd.f32 %v5105_v48, %v5104_v8  ;;  %v5107_v13 = vpop.f32.mrb[34].mxu0 }
 0x18d   : > { %v5108_v27 = vpop.f32.mrb[35].mxu0 }
 0x18e   : > { %v5109_v36 = vadd.f32 %v5108_v27, %v5107_v13 }
 0x18f   : > { %v5234_v14 = vpop.f32.mrb[44].mxu1  ;;  %3871 = vmatmul.mubr.bf16.gmra.mrb[140].mxu0 %v7164_v50 }
 0x190   : > { %v5235_v25 = vpop.f32.mrb[45].mxu1 }
 0x191   : > { %v7206_v59 = vadd.f32 %v5235_v25, %v5234_v14  ;;  %v5237_v29 = vpop.f32.mrb[46].mxu1 }
 0x192   : > { %v5238_v62 = vpop.f32.mrb[47].mxu1  ;;  %v5110_v46 = vpop.f32.mrb[36].mxu0 }
 0x193   : > { %v7208_v39 = vadd.f32 %v5238_v62, %v5237_v29  ;;  %v5111_v42 = vpop.f32.mrb[37].mxu0 }
 0x194   : > { %v5112_v2 = vadd.f32 %v5111_v42, %v5110_v46  ;;  %v5113_v7 = vpop.f32.mrb[38].mxu0 }
 0x195   : > { %v5114_v56 = vpop.f32.mrb[39].mxu0 }
 0x196   : > { %v5115_v28 = vadd.f32 %v5114_v56, %v5113_v7 }
 0x197   : > { %v5240_v30 = vpop.f32.mrb[48].mxu1 }
 0x198   : > { %v5241_v47 = vpop.f32.mrb[49].mxu1 }
 0x199   : > { %v5242_v61 = vadd.f32 %v5241_v47, %v5240_v30  ;;  %v5243_v41 = vpop.f32.mrb[50].mxu1 }
 0x19a   : > { %v5244_v44 = vpop.f32.mrb[51].mxu1  ;;  %v5116_v18 = vpop.f32.mrb[40].mxu0 }
 0x19b   : > { %v7210_v50 = vadd.f32 %v5242_v61, %v5106_v3  ;;  %v5245_v58 = vadd.f32 %v5244_v44, %v5243_v41  ;;  %v5117_v57 = vpop.f32.mrb[41].mxu0 }
 0x19c   : > { %v5118_v19 = vadd.f32 %v5117_v57, %v5116_v18  ;;  %v5119_v31 = vpop.f32.mrb[42].mxu0 }
 0x19d   : > { %v7212_v6 = vadd.f32 %v5245_v58, %v5109_v36  ;;  %v5120_v40 = vpop.f32.mrb[43].mxu0 }
 0x19e   : > { %v5121_v54 = vadd.f32 %v5120_v40, %v5119_v31 }
 0x19f   : > { %v5246_v9 = vpop.f32.mrb[52].mxu1 }
 0x1a0   : > { %v5247_v11 = vpop.f32.mrb[53].mxu1 }
 0x1a1   : > { %v5248_v8 = vadd.f32 %v5247_v11, %v5246_v9  ;;  %v5249_v48 = vpop.f32.mrb[54].mxu1 }
 0x1a2   : > { %v5250_v13 = vpop.f32.mrb[55].mxu1  ;;  %v5122_v27 = vpop.f32.mrb[44].mxu0 }
 0x1a3   : > { %v7214_v14 = vadd.f32 %v5248_v8, %v5112_v2  ;;  %v5251_v25 = vadd.f32 %v5250_v13, %v5249_v48  ;;  %v5123_v29 = vpop.f32.mrb[45].mxu0 }
 0x1a4   : > { %v5124_v3 = vadd.f32 %v5123_v29, %v5122_v27  ;;  %v5125_v62 = vpop.f32.mrb[46].mxu0 }
 0x1a5   : > { %v7216_v46 = vadd.f32 %v5251_v25, %v5115_v28  ;;  %v5126_v42 = vpop.f32.mrb[47].mxu0 }
 0x1a6   : > { %v5127_v7 = vadd.f32 %v5126_v42, %v5125_v62 }
 0x1a7   : > { %v5252_v36 = vpop.f32.mrb[56].mxu1 }
 0x1a8   : > { %v5253_v56 = vpop.f32.mrb[57].mxu1 }
 0x1a9   : > { %v5254_v30 = vadd.f32 %v5253_v56, %v5252_v36  ;;  %v5255_v47 = vpop.f32.mrb[58].mxu1 }
 0x1aa   : > { %v5256_v61 = vpop.f32.mrb[59].mxu1  ;;  %v5128_v41 = vpop.f32.mrb[48].mxu0 }
 0x1ab   : > { %v7218_v44 = vadd.f32 %v5254_v30, %v5118_v19  ;;  %v5257_v18 = vadd.f32 %v5256_v61, %v5255_v47  ;;  %v5129_v58 = vpop.f32.mrb[49].mxu0 }
 0x1ac   : > { %v5130_v2 = vadd.f32 %v5129_v58, %v5128_v41  ;;  %v5131_v57 = vpop.f32.mrb[50].mxu0 }
 0x1ad   : > { %v7220_v31 = vadd.f32 %v5257_v18, %v5121_v54  ;;  %v5132_v40 = vpop.f32.mrb[51].mxu0 }
 0x1ae   : > { %v5133_v9 = vadd.f32 %v5132_v40, %v5131_v57 }
 0x1af   : > { %v5258_v28 = vpop.f32.mrb[60].mxu1 }
 0x1b0   : > { %v5259_v11 = vpop.f32.mrb[61].mxu1 }
 0x1b1   : > { %v5260_v8 = vadd.f32 %v5259_v11, %v5258_v28  ;;  %v5261_v48 = vpop.f32.mrb[62].mxu1 }
 0x1b2   : > { %v5262_v13 = vpop.f32.mrb[63].mxu1  ;;  %v5134_v27 = vpop.f32.mrb[52].mxu0 }
 0x1b3   : > { %v7222_v25 = vadd.f32 %v5260_v8, %v5124_v3  ;;  %v5263_v29 = vadd.f32 %v5262_v13, %v5261_v48  ;;  %v5135_v62 = vpop.f32.mrb[53].mxu0 }
 0x1b4   : > { %v5136_v19 = vadd.f32 %v5135_v62, %v5134_v27  ;;  %v5137_v42 = vpop.f32.mrb[54].mxu0 }
 0x1b5   : > { %v7224_v36 = vadd.f32 %v5263_v29, %v5127_v7  ;;  %v5138_v56 = vpop.f32.mrb[55].mxu0 }
 0x1b6   : > { %v5139_v30 = vadd.f32 %v5138_v56, %v5137_v42 }
 0x1b7   : > { %7377 = vst [vmem:[#allocation3_spill] sm:$0xff] %v7224_v36  ;;  %v5264_v54 = vpop.f32.mrb[64].mxu1 }
 0x1b8   : > { %v5265_v47 = vpop.f32.mrb[65].mxu1 }
 0x1b9   : > { %v5266_v61 = vadd.f32 %v5265_v47, %v5264_v54  ;;  %v5267_v41 = vpop.f32.mrb[66].mxu1 }
 0x1ba   : > { %v5268_v18 = vpop.f32.mrb[67].mxu1  ;;  %v5140_v58 = vpop.f32.mrb[56].mxu0 }
 0x1bb   : > { %v7226_v57 = vadd.f32 %v5266_v61, %v5130_v2  ;;  %v5269_v40 = vadd.f32 %v5268_v18, %v5267_v41  ;;  %v5141_v28 = vpop.f32.mrb[57].mxu0 }
 0x1bc   : > { %v5142_v3 = vadd.f32 %v5141_v28, %v5140_v58  ;;  %v5143_v11 = vpop.f32.mrb[58].mxu0 }
 0x1bd   : > { %v7228_v8 = vadd.f32 %v5269_v40, %v5133_v9  ;;  %v5144_v48 = vpop.f32.mrb[59].mxu0 }
 0x1be   : > { %v5145_v13 = vadd.f32 %v5144_v48, %v5143_v11 }
 0x1bf   : > { %7378 = vst [vmem:[#allocation4_spill] sm:$0xff] %v7228_v8  ;;  %v5270_v7 = vpop.f32.mrb[68].mxu1 }
 0x1c0   : > { %v5271_v27 = vpop.f32.mrb[69].mxu1 }
 0x1c1   : > { %v5272_v29 = vadd.f32 %v5271_v27, %v5270_v7  ;;  %v5273_v62 = vpop.f32.mrb[70].mxu1 }
 0x1c2   : > { %v5274_v42 = vpop.f32.mrb[71].mxu1  ;;  %v5146_v56 = vpop.f32.mrb[60].mxu0 }
 0x1c3   : > { %v7230_v54 = vadd.f32 %v5272_v29, %v5136_v19  ;;  %v5275_v47 = vadd.f32 %v5274_v42, %v5273_v62  ;;  %v5147_v36 = vpop.f32.mrb[61].mxu0 }
 0x1c4   : > { %v5148_v2 = vadd.f32 %v5147_v36, %v5146_v56  ;;  %v5149_v61 = vpop.f32.mrb[62].mxu0 }
 0x1c5   : > { %v7232_v41 = vadd.f32 %v5275_v47, %v5139_v30  ;;  %v5150_v18 = vpop.f32.mrb[63].mxu0 }
 0x1c6   : > { %v5151_v58 = vadd.f32 %v5150_v18, %v5149_v61 }
 0x1c7   : > { %v5276_v9 = vpop.f32.mrb[72].mxu1 }
 0x1c8   : > { %v5277_v40 = vpop.f32.mrb[73].mxu1 }
 0x1c9   : > { %v5278_v28 = vadd.f32 %v5277_v40, %v5276_v9  ;;  %v5279_v11 = vpop.f32.mrb[74].mxu1 }
 0x1ca   : > { %v5280_v48 = vpop.f32.mrb[75].mxu1  ;;  %v5466_v8 = vpop.f32.mrb[64].mxu0 }
 0x1cb   : > { %v7234_v7 = vadd.f32 %v5278_v28, %v5142_v3  ;;  %v5281_v27 = vadd.f32 %v5280_v48, %v5279_v11  ;;  %v2476_v19 = vadd.f32 %v5466_v8, %v7032_v60  ;;  %v2467_v29 = vpop.f32.mrb[65].mxu0 }
 0x1cc   : > { %v2468_v62 = vadd.f32 %v7005_v12, %v2467_v29  ;;  %v5467_v36 = vpop.f32.mrb[66].mxu0 }
 0x1cd   : > { %v7238_v42 = vadd.f32 %v5281_v27, %v5145_v13  ;;  %v7241_v30 = vadd.f32 %v7129_v26, %v2476_v19  ;;  %v2479_v56 = vadd.f32 %v5467_v36, %v7037_v4  ;;  %v2470_v47 = vpop.f32.mrb[67].mxu0 }
 0x1ce   : > { %v2773_v61 = vadd.f32 %v7110_v16, %v2468_v62  ;;  %v2471_v3 = vadd.f32 %v7008_v37, %v2470_v47 }
 0x1cf   : > { %v5282_v18 = vpop.f32.mrb[76].mxu1  ;;  %v2784_v9 = vadd.f32 %v7134_v5, %v2479_v56 }
 0x1d0   : > { %v5283_v60 = vpop.f32.mrb[77].mxu1  ;;  %v2776_v8 = vadd.f32 %v7115_v52, %v2471_v3 }
 0x1d1   : > { %v5284_v12 = vadd.f32 %v5283_v60, %v5282_v18  ;;  %v5285_v40 = vpop.f32.mrb[78].mxu1 }
 0x1d2   : > { %v5286_v13 = vpop.f32.mrb[79].mxu1  ;;  %v5470_v28 = vpop.f32.mrb[68].mxu0 }
 0x1d3   : > { %v7248_v11 = vadd.f32 %v5284_v12, %v5148_v2  ;;  %v5287_v26 = vadd.f32 %v5286_v13, %v5285_v40  ;;  %v2492_v4 = vadd.f32 %v5470_v28, %v7120_v32  ;;  %v2483_v48 = vpop.f32.mrb[69].mxu0 }
 0x1d4   : > { %v2484_v16 = vadd.f32 %v7079_v1, %v2483_v48  ;;  %v5471_v27 = vpop.f32.mrb[70].mxu0 }
 0x1d5   : > { %v7252_v37 = vadd.f32 %v5287_v26, %v5151_v58  ;;  %v2797_v5 = vadd.f32 %v7161_v21, %v2492_v4  ;;  %v2495_v19 = vadd.f32 %v5471_v27, %v7127_v17  ;;  %v2486_v52 = vpop.f32.mrb[71].mxu0 }
 0x1d6   : > { %v2789_v29 = vadd.f32 %v7145_v23, %v2484_v16  ;;  %v2487_v62 = vadd.f32 %v7083_v15, %v2486_v52 }
 0x1d7   : > { %v2800_v2 = vadd.f32 %v7170_v63, %v2495_v19 }
 0x1d8   : > { %v2792_v36 = vadd.f32 %v7152_v10, %v2487_v62 }
 0x1da   : > { %v5474_v32 = vpop.f32.mrb[72].mxu0 }
 0x1db   : > { %v2508_v56 = vadd.f32 %v5474_v32, %v7166_v24  ;;  %v2499_v1 = vpop.f32.mrb[73].mxu0 }
 0x1dc   : > { %v2500_v58 = vadd.f32 %v7143_v22, %v2499_v1  ;;  %v5475_v47 = vpop.f32.mrb[74].mxu0 }
 0x1dd   : > { %v7263_v21 = vadd.f32 %v7191_v49, %v2508_v56  ;;  %v2511_v17 = vadd.f32 %v5475_v47, %v7172_v45  ;;  %v2502_v3 = vpop.f32.mrb[75].mxu0 }
 0x1de   : > { %v2805_v23 = vadd.f32 %v7178_v51, %v2500_v58  ;;  %v2503_v15 = vadd.f32 %v7150_v38, %v2502_v3 }
 0x1df   : > { %v7269_v63 = vadd.f32 %v7193_v33, %v2511_v17 }
 0x1e0   : > { %v2808_v10 = vadd.f32 %v7184_v55, %v2503_v15 }
 0x1e2   : > { %v5478_v24 = vpop.f32.mrb[76].mxu0 }
 0x1e3   : > { %v2524_v18 = vadd.f32 %v5478_v24, %v7195_v53  ;;  %v2515_v22 = vpop.f32.mrb[77].mxu0 }
 0x1e4   : > { %v2516_v60 = vadd.f32 %v7181_v0, %v2515_v22  ;;  %v5479_v49 = vpop.f32.mrb[78].mxu0 }
 0x1e5   : > { %v7275_v12 = vadd.f32 %v7206_v59, %v2524_v18  ;;  %v2527_v45 = vadd.f32 %v5479_v49, %v7198_v20  ;;  %v2518_v51 = vpop.f32.mrb[79].mxu0 }
 0x1e6   : > { %v7279_v38 = vadd.f32 %v7201_v43, %v2516_v60  ;;  %v2519_v33 = vadd.f32 %v7186_v35, %v2518_v51 }
 0x1e7   : > { %v7283_v55 = vadd.f32 %v7208_v39, %v2527_v45 }
 0x1e8   : > { %v7286_v53 = vadd.f32 %v7203_v34, %v2519_v33 }
 0x1ea   : > { %v5328_v40 = vpop.f32.mrb[80].mxu0 }
 0x1eb   : > { %v5329_v0 = vpop.f32.mrb[81].mxu0 }
 0x1ec   : > { %v5330_v13 = vadd.f32 %v5329_v0, %v5328_v40  ;;  %v5331_v28 = vpop.f32.mrb[82].mxu0 }
 0x1ed   : > { %v5332_v59 = vpop.f32.mrb[83].mxu0 }
 0x1ee   : > { %v5333_v26 = vadd.f32 %v5332_v59, %v5331_v28  ;;  %v5614_v4 = vadd.f32 %v5330_v13, %v2773_v61 }
 0x1f0   : > { %v5622_v20 = vadd.f32 %v5333_v26, %v2776_v8 }
 0x1f2   : > { %v5334_v48 = vpop.f32.mrb[84].mxu0 }
 0x1f3   : > { %v5335_v16 = vpop.f32.mrb[85].mxu0 }
 0x1f4   : > { %v5336_v43 = vadd.f32 %v5335_v16, %v5334_v48  ;;  %v5337_v27 = vpop.f32.mrb[86].mxu0 }
 0x1f5   : > { %v5338_v19 = vpop.f32.mrb[87].mxu0 }
 0x1f6   : > { %v5339_v35 = vadd.f32 %v5338_v19, %v5337_v27  ;;  %v5610_v39 = vadd.f32 %v5336_v43, %v7241_v30 }
 0x1f8   : > { %v5618_v52 = vadd.f32 %v5339_v35, %v2784_v9 }
 0x1fa   : > { %v5340_v62 = vpop.f32.mrb[88].mxu0 }
 0x1fb   : > { %v5341_v34 = vpop.f32.mrb[89].mxu0 }
 0x1fc   : > { %v5342_v32 = vadd.f32 %v5341_v34, %v5340_v62  ;;  %v5343_v56 = vpop.f32.mrb[90].mxu0 }
 0x1fd   : > { %v5344_v1 = vpop.f32.mrb[91].mxu0 }
 0x1fe   : > { %v5345_v58 = vadd.f32 %v5344_v1, %v5343_v56  ;;  %v5630_v47 = vadd.f32 %v5342_v32, %v2789_v29 }
 0x200   : > { %v7289_v17 = vadd.f32 %v5345_v58, %v2792_v36 }
 0x202   : > { %v5346_v61 = vpop.f32.mrb[92].mxu0 }
 0x203   : > { %v5347_v8 = vpop.f32.mrb[93].mxu0 }
 0x204   : > { %v5348_v3 = vadd.f32 %v5347_v8, %v5346_v61  ;;  %v5349_v15 = vpop.f32.mrb[94].mxu0 }
 0x205   : > { %v5350_v24 = vpop.f32.mrb[95].mxu0 }
 0x206   : > { %v5351_v18 = vadd.f32 %v5350_v24, %v5349_v15  ;;  %v5626_v22 = vadd.f32 %v5348_v3, %v2797_v5 }
 0x208   : > { %v5634_v60 = vadd.f32 %v5351_v18, %v2800_v2 }
 0x20a   : > { %v5352_v49 = vpop.f32.mrb[96].mxu0 }
 0x20b   : > { %v5353_v30 = vpop.f32.mrb[97].mxu0 }
 0x20c   : > { %v5354_v9 = vadd.f32 %v5353_v30, %v5352_v49  ;;  %v5355_v45 = vpop.f32.mrb[98].mxu0 }
 0x20d   : > { %v5356_v51 = vpop.f32.mrb[99].mxu0 }
 0x20e   : > { %v5357_v33 = vadd.f32 %v5356_v51, %v5355_v45  ;;  %v7291_v40 = vadd.f32 %v5354_v9, %v2805_v23 }
 0x210   : > { %v7293_v0 = vadd.f32 %v5357_v33, %v2808_v10 }
 0x212   : > { %v5358_v29 = vpop.f32.mrb[100].mxu0 }
 0x213   : > { %v5359_v36 = vpop.f32.mrb[101].mxu0 }
 0x214   : > { %v5360_v13 = vadd.f32 %v5359_v36, %v5358_v29  ;;  %v5361_v28 = vpop.f32.mrb[102].mxu0 }
 0x215   : > { %v5362_v59 = vpop.f32.mrb[103].mxu0 }
 0x216   : > { %v5363_v26 = vadd.f32 %v5362_v59, %v5361_v28  ;;  %v5642_v5 = vadd.f32 %v5360_v13, %v7263_v21 }
 0x217   : > { %v5562_v48 = vpop.f32.mrb[80].mxu1 }
 0x218   : > { %v5611_v2 = vadd.f32 %v5610_v39, %v5562_v48  ;;  %v3913_v16 = vpop.f32.mrb[81].mxu1  ;;  %v7297_v19 = vadd.f32 %v5363_v26, %v7269_v63 }
 0x219   : > { %v5615_v43 = vadd.f32 %v5614_v4, %v3913_v16  ;;  %v5563_v27 = vpop.f32.mrb[82].mxu1 }
 0x21a   : > { %v5619_v23 = vadd.f32 %v5618_v52, %v5563_v27  ;;  %v3916_v10 = vpop.f32.mrb[83].mxu1  ;;  %v5364_v35 = vpop.f32.mrb[104].mxu0  ;;  %v4111_v58 = vmul.f32 %v5611_v2, %v5611_v2 }
 0x21b   : > { %v5623_v62 = vadd.f32 %v5622_v20, %v3916_v10  ;;  %v5365_v21 = vpop.f32.mrb[105].mxu0  ;;  %v4109_v39 = vmul.f32 %v5615_v43, %v5615_v43 }
 0x21c   : > { %v4938_v34 = vpack.c.bf16 %v5619_v23, %v5611_v2  ;;  %v5366_v4 = vadd.f32 %v5365_v21, %v5364_v35  ;;  %v5367_v32 = vpop.f32.mrb[106].mxu0  ;;  %v4112_v20 = vmul.f32 %v5619_v23, %v5619_v23 }
 0x21d   : > { %v4072_v56 = vadd.f32 %v5623_v62, %v5615_v43  ;;  %v4110_v63 = vmul.f32 %v5623_v62, %v5623_v62  ;;  %v4933_v1 = vpack.c.bf16 %v5623_v62, %v5615_v43  ;;  %v5368_v52 = vpop.f32.mrb[107].mxu0 }
 0x21e   : > { %5025 = vst [vmem:[%s7304_s20 + $0x8] sm:$0xff] %v4938_v34   ;;  %v5369_v61 = vadd.f32 %v5368_v52, %v5367_v32  ;;  %v7309_v24 = vadd.f32 %v5366_v4, %v7279_v38 }
 0x21f   : > { %v4073_v8 = vadd.f32 %v5611_v2, %v4072_v56  ;;  %v4141_v3 = vadd.f32 %v4110_v63, %v4109_v39  ;;  %4934 = vst [vmem:[%s7304_s20] sm:$0xff] %v4933_v1   ;;  %v5566_v15 = vpop.f32.mrb[84].mxu1 }
 0x220   : > { %v5627_v18 = vadd.f32 %v5626_v22, %v5566_v15  ;;  %v3929_v49 = vpop.f32.mrb[85].mxu1  ;;  %v7312_v33 = vadd.f32 %v5369_v61, %v7286_v53 }
 0x221   : > { %v4142_v30 = vadd.f32 %v4141_v3, %v4111_v58  ;;  %v5631_v9 = vadd.f32 %v5630_v47, %v3929_v49  ;;  %v4074_v45 = vadd.f32 %v5619_v23, %v4073_v8  ;;  %v5567_v51 = vpop.f32.mrb[86].mxu1 }
 0x222   : > { %v5635_v29 = vadd.f32 %v5634_v60, %v5567_v51  ;;  %v3932_v36 = vpop.f32.mrb[87].mxu1  ;;  %v5370_v13 = vpop.f32.mrb[108].mxu0  ;;  %v4115_v53 = vmul.f32 %v5627_v18, %v5627_v18 }
 0x223   : > { %v4075_v28 = vadd.f32 %v5631_v9, %v4074_v45  ;;  %v4113_v59 = vmul.f32 %v5631_v9, %v5631_v9  ;;  %v4143_v26 = vadd.f32 %v4142_v30, %v4112_v20  ;;  %v5639_v38 = vadd.f32 %v7289_v17, %v3932_v36  ;;  %v5371_v48 = vpop.f32.mrb[109].mxu0 }
 0x224   : > { %v4948_v2 = vpack.c.bf16 %v5635_v29, %v5627_v18  ;;  %v5372_v22 = vadd.f32 %v5371_v48, %v5370_v13  ;;  %v5373_v16 = vpop.f32.mrb[110].mxu0  ;;  %v4116_v34 = vmul.f32 %v5635_v29, %v5635_v29 }
 0x225   : > { %v4144_v47 = vadd.f32 %v4143_v26, %v4113_v59  ;;  %v4076_v43 = vadd.f32 %v5639_v38, %v4075_v28  ;;  %v4114_v27 = vmul.f32 %v5639_v38, %v5639_v38  ;;  %v5374_v23 = vpop.f32.mrb[111].mxu0  ;;  %v4943_v60 = vpack.c.bf16 %v5639_v38, %v5631_v9 }
 0x226   : > { %5027 = vst [vmem:[%s7304_s20 + $0x18] sm:$0xff] %v4948_v2   ;;  %v5375_v10 = vadd.f32 %v5374_v23, %v5373_v16  ;;  %v5658_v39 = vadd.f32 %v5372_v22, %v7275_v12 }
 0x227   : > { %v4077_v35 = vadd.f32 %v5627_v18, %v4076_v43  ;;  %v4145_v62 = vadd.f32 %v4144_v47, %v4114_v27  ;;  %v5570_v21 = vpop.f32.mrb[88].mxu1  ;;  %5026 = vst [vmem:[%s7304_s20 + $0x10] sm:$0xff] %v4943_v60  }
 0x228   : > { %v5643_v17 = vadd.f32 %v5642_v5, %v5570_v21  ;;  %v3945_v4 = vpop.f32.mrb[89].mxu1  ;;  %v5666_v52 = vadd.f32 %v5375_v10, %v7283_v55 }
 0x229   : > { %v4146_v32 = vadd.f32 %v4145_v62, %v4115_v53  ;;  %v5647_v56 = vadd.f32 %v7291_v40, %v3945_v4  ;;  %v4078_v63 = vadd.f32 %v5635_v29, %v4077_v35  ;;  %v5571_v1 = vpop.f32.mrb[90].mxu1 }
 0x22a   : > { %v5651_v58 = vadd.f32 %v7297_v19, %v5571_v1  ;;  %v3948_v61 = vpop.f32.mrb[91].mxu1  ;;  %v5376_v8 = vpop.f32.mrb[112].mxu0  ;;  %v4119_v55 = vmul.f32 %v5643_v17, %v5643_v17 }
 0x22b   : > { %v4079_v3 = vadd.f32 %v5647_v56, %v4078_v63  ;;  %v4117_v15 = vmul.f32 %v5647_v56, %v5647_v56  ;;  %v4147_v20 = vadd.f32 %v4146_v32, %v4116_v34  ;;  %v5655_v12 = vadd.f32 %v7293_v0, %v3948_v61  ;;  %v5377_v18 = vpop.f32.mrb[113].mxu0 }
 0x22c   : > { %v4958_v5 = vpack.c.bf16 %v5651_v58, %v5643_v17  ;;  %v5378_v49 = vadd.f32 %v5377_v18, %v5376_v8  ;;  %v5379_v30 = vpop.f32.mrb[114].mxu0  ;;  %v4120_v26 = vmul.f32 %v5651_v58, %v5651_v58 }
 0x22d   : > { %v4148_v40 = vadd.f32 %v4147_v20, %v4117_v15  ;;  %v4080_v9 = vadd.f32 %v5655_v12, %v4079_v3  ;;  %v4118_v45 = vmul.f32 %v5655_v12, %v5655_v12  ;;  %v5380_v51 = vpop.f32.mrb[115].mxu0  ;;  %v4953_v19 = vpack.c.bf16 %v5655_v12, %v5647_v56 }
 0x22e   : > { %5029 = vst [vmem:[%s7304_s20 + $0x28] sm:$0xff] %v4958_v5   ;;  %v5381_v29 = vadd.f32 %v5380_v51, %v5379_v30  ;;  %v5676_v59 = vadd.f32 %v7210_v50, %v5378_v49 }
 0x22f   : > { %v4081_v36 = vadd.f32 %v5643_v17, %v4080_v9  ;;  %v4149_v13 = vadd.f32 %v4148_v40, %v4118_v45  ;;  %v5574_v28 = vpop.f32.mrb[92].mxu1  ;;  %5028 = vst [vmem:[%s7304_s20 + $0x20] sm:$0xff] %v4953_v19  }
 0x230   : > { %v5659_v0 = vadd.f32 %v5658_v39, %v5574_v28  ;;  %v3961_v38 = vpop.f32.mrb[93].mxu1  ;;  %v5682_v47 = vadd.f32 %v7212_v6, %v5381_v29 }
 0x231   : > { %v4150_v48 = vadd.f32 %v4149_v13, %v4119_v55  ;;  %v5663_v2 = vadd.f32 %v7309_v24, %v3961_v38  ;;  %v4082_v22 = vadd.f32 %v5651_v58, %v4081_v36  ;;  %v5575_v16 = vpop.f32.mrb[94].mxu1 }
 0x232   : > { %v5667_v43 = vadd.f32 %v5666_v52, %v5575_v16  ;;  %v3964_v27 = vpop.f32.mrb[95].mxu1  ;;  %v5382_v23 = vpop.f32.mrb[116].mxu0  ;;  %v4123_v32 = vmul.f32 %v5659_v0, %v5659_v0 }
 0x233   : > { %v4083_v53 = vadd.f32 %v5663_v2, %v4082_v22  ;;  %v4121_v60 = vmul.f32 %v5663_v2, %v5663_v2  ;;  %v4151_v10 = vadd.f32 %v4150_v48, %v4120_v26  ;;  %v5671_v50 = vadd.f32 %v7312_v33, %v3964_v27  ;;  %v5383_v35 = vpop.f32.mrb[117].mxu0 }
 0x234   : > { %v4968_v62 = vpack.c.bf16 %v5667_v43, %v5659_v0  ;;  %v5384_v21 = vadd.f32 %v5383_v35, %v5382_v23  ;;  %v5385_v39 = vpop.f32.mrb[118].mxu0  ;;  %v4124_v61 = vmul.f32 %v5667_v43, %v5667_v43 }
 0x235   : > { %v4152_v34 = vadd.f32 %v4151_v10, %v4121_v60  ;;  %v4084_v24 = vadd.f32 %v5671_v50, %v4083_v53  ;;  %v4122_v17 = vmul.f32 %v5671_v50, %v5671_v50  ;;  %v5386_v4 = vpop.f32.mrb[119].mxu0  ;;  %v4963_v6 = vpack.c.bf16 %v5671_v50, %v5663_v2 }
 0x236   : > { %5031 = vst [vmem:[%s7304_s20 + $0x38] sm:$0xff] %v4968_v62   ;;  %v5387_v56 = vadd.f32 %v5386_v4, %v5385_v39  ;;  %v5673_v58 = vadd.f32 %v7214_v14, %v5384_v21 }
 0x237   : > { %v4085_v63 = vadd.f32 %v5659_v0, %v4084_v24  ;;  %v4153_v1 = vadd.f32 %v4152_v34, %v4122_v17  ;;  %v5578_v52 = vpop.f32.mrb[0].mxu1  ;;  %5030 = vst [vmem:[%s7304_s20 + $0x30] sm:$0xff] %v4963_v6  }
 0x238   : > { %v3977_v33 = vpop.f32.mrb[1].mxu1  ;;  %v5674_v3 = vadd.f32 %v5673_v58, %v5578_v52  ;;  %v5679_v18 = vadd.f32 %v7216_v46, %v5387_v56 }
 0x239   : > { %v4154_v8 = vadd.f32 %v4153_v1, %v4123_v32  ;;  %v5677_v15 = vadd.f32 %v5676_v59, %v3977_v33  ;;  %v4086_v20 = vadd.f32 %v5667_v43, %v4085_v63  ;;  %v5579_v12 = vpop.f32.mrb[2].mxu1  ;;  %v7379_v33 = vld [vmem:[#allocation3_spill] sm:$0xff] }
 0x23a   : > { %v3980_v5 = vpop.f32.mrb[3].mxu1  ;;  %v5388_v49 = vpop.f32.mrb[120].mxu0  ;;  %v5680_v51 = vadd.f32 %v5679_v18, %v5579_v12  ;;  %v4127_v48 = vmul.f32 %v5674_v3, %v5674_v3 }
 0x23b   : > { %v4087_v30 = vadd.f32 %v5677_v15, %v4086_v20  ;;  %v4125_v40 = vmul.f32 %v5677_v15, %v5677_v15  ;;  %v4155_v9 = vadd.f32 %v4154_v8, %v4124_v61  ;;  %v5389_v45 = vpop.f32.mrb[121].mxu0  ;;  %v5683_v55 = vadd.f32 %v5682_v47, %v3980_v5 }
 0x23c   : > { %v5390_v14 = vadd.f32 %v5389_v45, %v5388_v49  ;;  %v5391_v19 = vpop.f32.mrb[122].mxu0  ;;  %v4978_v13 = vpack.c.bf16 %v5680_v51, %v5674_v3  ;;  %v4128_v23 = vmul.f32 %v5680_v51, %v5680_v51 }
 0x23d   : > { %v4156_v29 = vadd.f32 %v4155_v9, %v4125_v40  ;;  %v5392_v36 = vpop.f32.mrb[123].mxu0  ;;  %v4088_v28 = vadd.f32 %v5683_v55, %v4087_v30  ;;  %v4126_v59 = vmul.f32 %v5683_v55, %v5683_v55  ;;  %v4973_v0 = vpack.c.bf16 %v5683_v55, %v5677_v15 }
 0x23e   : > { %v5393_v26 = vadd.f32 %v5392_v36, %v5391_v19  ;;  %v5688_v38 = vadd.f32 %v7218_v44, %v5390_v14  ;;  %5033 = vst [vmem:[%s7304_s20 + $0x48] sm:$0xff] %v4978_v13  }
 0x23f   : > { %v5582_v46 = vpop.f32.mrb[4].mxu1  ;;  %v4089_v2 = vadd.f32 %v5674_v3, %v4088_v28  ;;  %v4157_v22 = vadd.f32 %v4156_v29, %v4126_v59  ;;  %5032 = vst [vmem:[%s7304_s20 + $0x40] sm:$0xff] %v4973_v0   ;;  %v7380_v59 = vld [vmem:[#allocation4_spill] sm:$0xff] }
 0x240   : > { %v3993_v16 = vpop.f32.mrb[5].mxu1  ;;  %v5694_v27 = vadd.f32 %v7220_v31, %v5393_v26 }
 0x241   : > { %v5689_v47 = vadd.f32 %v5688_v38, %v3993_v16  ;;  %v5583_v43 = vpop.f32.mrb[6].mxu1  ;;  %v4158_v53 = vadd.f32 %v4157_v22, %v4127_v48  ;;  %v4090_v60 = vadd.f32 %v5680_v51, %v4089_v2 }
 0x242   : > { %v3996_v10 = vpop.f32.mrb[7].mxu1  ;;  %v5394_v50 = vpop.f32.mrb[124].mxu0 }
 0x243   : > { %v4129_v35 = vmul.f32 %v5689_v47, %v5689_v47  ;;  %v5695_v62 = vadd.f32 %v5694_v27, %v3996_v10  ;;  %v5395_v21 = vpop.f32.mrb[125].mxu0  ;;  %v4091_v44 = vadd.f32 %v5689_v47, %v4090_v60  ;;  %v4159_v39 = vadd.f32 %v4158_v53, %v4128_v23 }
 0x244   : > { %v5396_v34 = vadd.f32 %v5395_v21, %v5394_v50  ;;  %v5397_v24 = vpop.f32.mrb[126].mxu0 }
 0x245   : > { %v4130_v17 = vmul.f32 %v5695_v62, %v5695_v62  ;;  %v4983_v4 = vpack.c.bf16 %v5695_v62, %v5689_v47  ;;  %v5398_v32 = vpop.f32.mrb[127].mxu0  ;;  %v4160_v6 = vadd.f32 %v4159_v39, %v4129_v35  ;;  %v4092_v56 = vadd.f32 %v5695_v62, %v4091_v44 }
 0x246   : > { %v5399_v63 = vadd.f32 %v5398_v32, %v5397_v24  ;;  %v5685_v31 = vadd.f32 %v7222_v25, %v5396_v34 }
 0x247   : > { %5034 = vst [vmem:[%s7304_s20 + $0x50] sm:$0xff] %v4983_v4   ;;  %v5586_v1 = vpop.f32.mrb[8].mxu1  ;;  %v4161_v52 = vadd.f32 %v4160_v6, %v4130_v17 }
 0x248   : > { %v4009_v58 = vpop.f32.mrb[9].mxu1  ;;  %v5686_v61 = vadd.f32 %v5685_v31, %v5582_v46  ;;  %v5691_v8 = vadd.f32 %v7379_v33, %v5399_v63 }
 0x249   : > { %v5587_v3 = vpop.f32.mrb[10].mxu1 }
 0x24a   : > { %v4012_v15 = vpop.f32.mrb[11].mxu1  ;;  %v5400_v20 = vpop.f32.mrb[128].mxu0  ;;  %v4131_v12 = vmul.f32 %v5686_v61, %v5686_v61  ;;  %v5692_v18 = vadd.f32 %v5691_v8, %v5583_v43  ;;  %v4093_v5 = vadd.f32 %v5686_v61, %v4092_v56 }
 0x24b   : > { %v5401_v49 = vpop.f32.mrb[129].mxu0 }
 0x24c   : > { %v5402_v30 = vadd.f32 %v5401_v49, %v5400_v20  ;;  %v5403_v40 = vpop.f32.mrb[130].mxu0  ;;  %v4132_v9 = vmul.f32 %v5692_v18, %v5692_v18  ;;  %v4988_v45 = vpack.c.bf16 %v5692_v18, %v5686_v61  ;;  %v4162_v25 = vadd.f32 %v4161_v52, %v4131_v12 }
 0x24d   : > { %v5404_v51 = vpop.f32.mrb[131].mxu0  ;;  %v4094_v55 = vadd.f32 %v5692_v18, %v4093_v5 }
 0x24e   : > { %v5405_v14 = vadd.f32 %v5404_v51, %v5403_v40  ;;  %5035 = vst [vmem:[%s7304_s20 + $0x58] sm:$0xff] %v4988_v45   ;;  %v5700_v19 = vadd.f32 %v7226_v57, %v5402_v30  ;;  %v4163_v29 = vadd.f32 %v4162_v25, %v4132_v9 }
 0x24f   : > { %v5590_v36 = vpop.f32.mrb[12].mxu1 }
 0x250   : > { %v4025_v13 = vpop.f32.mrb[13].mxu1  ;;  %v5701_v28 = vadd.f32 %v5700_v19, %v4009_v58  ;;  %v5706_v26 = vadd.f32 %v7380_v59, %v5405_v14 }
 0x251   : > { %v5591_v0 = vpop.f32.mrb[14].mxu1 }
 0x252   : > { %v4028_v46 = vpop.f32.mrb[15].mxu1  ;;  %v5406_v38 = vpop.f32.mrb[132].mxu0  ;;  %v4095_v48 = vadd.f32 %v5701_v28, %v4094_v55  ;;  %v4133_v2 = vmul.f32 %v5701_v28, %v5701_v28  ;;  %v5707_v22 = vadd.f32 %v5706_v26, %v4012_v15 }
 0x253   : > { %v5407_v16 = vpop.f32.mrb[133].mxu0 }
 0x254   : > { %v5408_v47 = vadd.f32 %v5407_v16, %v5406_v38  ;;  %v5409_v43 = vpop.f32.mrb[134].mxu0  ;;  %v4164_v27 = vadd.f32 %v4163_v29, %v4133_v2  ;;  %v4096_v23 = vadd.f32 %v5707_v22, %v4095_v48  ;;  %v4134_v53 = vmul.f32 %v5707_v22, %v5707_v22 }
 0x255   : > { %v5410_v57 = vpop.f32.mrb[135].mxu0  ;;  %v4993_v60 = vpack.c.bf16 %v5707_v22, %v5701_v28 }
 0x256   : > { %v5411_v10 = vadd.f32 %v5410_v57, %v5409_v43  ;;  %v5697_v50 = vadd.f32 %v7230_v54, %v5408_v47  ;;  %v4165_v35 = vadd.f32 %v4164_v27, %v4134_v53 }
 0x257   : > { %5036 = vst [vmem:[%s7304_s20 + $0x60] sm:$0xff] %v4993_v60  }
 0x258   : > { %v5698_v62 = vadd.f32 %v5697_v50, %v5586_v1  ;;  %v5703_v21 = vadd.f32 %v7232_v41, %v5411_v10 }
 0x25a   : > { %v4135_v44 = vmul.f32 %v5698_v62, %v5698_v62  ;;  %v5704_v39 = vadd.f32 %v5703_v21, %v5587_v3  ;;  %v4097_v34 = vadd.f32 %v5698_v62, %v4096_v23  ;;  %v5412_v24 = vpop.f32.mrb[136].mxu0 }
 0x25b   : > { %v5413_v17 = vpop.f32.mrb[137].mxu0 }
 0x25c   : > { %v4136_v4 = vmul.f32 %v5704_v39, %v5704_v39  ;;  %v4998_v32 = vpack.c.bf16 %v5704_v39, %v5698_v62  ;;  %v4166_v6 = vadd.f32 %v4165_v35, %v4135_v44  ;;  %v5414_v56 = vadd.f32 %v5413_v17, %v5412_v24  ;;  %v5415_v63 = vpop.f32.mrb[138].mxu0 }
 0x25d   : > { %v5416_v31 = vpop.f32.mrb[139].mxu0  ;;  %v4098_v52 = vadd.f32 %v5704_v39, %v4097_v34 }
 0x25e   : > { %5037 = vst [vmem:[%s7304_s20 + $0x68] sm:$0xff] %v4998_v32   ;;  %v5417_v54 = vadd.f32 %v5416_v31, %v5415_v63  ;;  %v5712_v58 = vadd.f32 %v7234_v7, %v5414_v56  ;;  %v4167_v61 = vadd.f32 %v4166_v6, %v4136_v4 }
 0x260   : > { %v5713_v1 = vadd.f32 %v5712_v58, %v4025_v13  ;;  %v5718_v41 = vadd.f32 %v7238_v42, %v5417_v54 }
 0x262   : > { %v4099_v33 = vadd.f32 %v5713_v1, %v4098_v52  ;;  %v4137_v8 = vmul.f32 %v5713_v1, %v5713_v1  ;;  %v5719_v3 = vadd.f32 %v5718_v41, %v4028_v46  ;;  %v5418_v15 = vpop.f32.mrb[140].mxu0 }
 0x263   : > { %v5419_v20 = vpop.f32.mrb[141].mxu0 }
 0x264   : > { %v4168_v12 = vadd.f32 %v4167_v61, %v4137_v8  ;;  %v4100_v18 = vadd.f32 %v5719_v3, %v4099_v33  ;;  %v4138_v5 = vmul.f32 %v5719_v3, %v5719_v3  ;;  %v5003_v49 = vpack.c.bf16 %v5719_v3, %v5713_v1  ;;  %v5421_v30 = vpop.f32.mrb[142].mxu0 }
 0x265   : > { %v5420_v40 = vadd.f32 %v5419_v20, %v5418_v15  ;;  %v5422_v9 = vpop.f32.mrb[143].mxu0 }
 0x266   : > { %v4169_v45 = vadd.f32 %v4168_v12, %v4138_v5  ;;  %5038 = vst [vmem:[%s7304_s20 + $0x70] sm:$0xff] %v5003_v49   ;;  %v5423_v7 = vadd.f32 %v5422_v9, %v5421_v30 }
 0x267   : > { %v5709_v25 = vadd.f32 %v7248_v11, %v5420_v40 }
 0x268   : > { %v5715_v42 = vadd.f32 %v7252_v37, %v5423_v7 }
 0x269   : > { %v5710_v51 = vadd.f32 %v5709_v25, %v5590_v36 }
 0x26a   : > { %v5716_v55 = vadd.f32 %v5715_v42, %v5591_v0 }
 0x26b   : > { %v4101_v14 = vadd.f32 %v5710_v51, %v4100_v18  ;;  %v4139_v19 = vmul.f32 %v5710_v51, %v5710_v51 }
 0x26c   : > { %v4140_v29 = vmul.f32 %v5716_v55, %v5716_v55  ;;  %v5008_v13 = vpack.c.bf16 %v5716_v55, %v5710_v51 }
 0x26d   : > { %v4170_v28 = vadd.f32 %v4169_v45, %v4139_v19  ;;  %v4102_v59 = vadd.f32 %v5716_v55, %v4101_v14 }
 0x26e   : > { %5039 = vst [vmem:[%s7304_s20 + $0x78] sm:$0xff] %v5008_v13  }
 0x26f   : > { %v4103_v26 = vrot.slane %v4102_v59, 4  ;;  %v4171_v46 = vadd.f32 %v4170_v28, %v4140_v29 }
 0x271   : > { %v4104_v38 = vadd.f32 %v4103_v26, %v4102_v59  ;;  %v4172_v48 = vrot.slane %v4171_v46, 4 }
 0x273   : > { %v4105_v2 = vrot.slane %v4104_v38, 2  ;;  %v4173_v22 = vadd.f32 %v4172_v48, %v4171_v46 }
 0x275   : > { %v4106_v11 = vadd.f32 %v4105_v2, %v4104_v38  ;;  %v4174_v16 = vrot.slane %v4173_v22, 2 }
 0x277   : > { %v4107_v37 = vrot.slane %v4106_v11, 1  ;;  %v4175_v47 = vadd.f32 %v4174_v16, %v4173_v22 }
 0x279   : > { %v4108_v36 = vadd.f32 %v4107_v37, %v4106_v11  ;;  %v4176_v0 = vrot.slane %v4175_v47, 1 }
 0x27b   : > { %v4177_v43 = vadd.f32 %v4176_v0, %v4175_v47  ;;  %4178 = vst [vmem:[%s268_s25] sm:$0xff] %v4108_v36 }
 0x27d   : > { %4179 = vst [vmem:[%s272_s27] sm:$0xff] %v4177_v43 }
 0x27e PF: > { %s17_s21 = sadd.s32 1, %s5987_s21  }
 0x27f   : > { %p14_p4 = scmp.ge.s32.totalorder %s17_s21, 4  }
 0x281   :  { %16 = sbr.rel (!%p14_p4) target bundleno = 1 (0x1), region = 95 }

</bundles_post_ra>
